<compile_context>
chip_gen: v7x
topology: tpu7x:2x2x1
jax: 0.10.0
libtpu: 0.0.40
codegen_flags: <defaults>
</compile_context>

<pallas_src>
from functools import partial

import jax
import jax.numpy as jnp
from jax.experimental import pallas as pl
from jax.experimental.pallas import tpu as pltpu


# Scaled-down channel configuration (b7-style topology, small widths).
C_IN, STEM_CH, MID_CH, SE_CH, HEAD_CH = 3, 32, 128, 8, 128
ACT_DTYPE = jnp.bfloat16          # HBM storage dtype for activations / weights


# ----------------------------------------------------------------------------
# Tile selection with a VMEM budget (feedback item 6)
# ----------------------------------------------------------------------------
def _vmem_budget_bytes():
    try:
        cap = int(pltpu.get_tpu_info().vmem_capacity_bytes)
    except Exception:
        cap = 64 * 1024 * 1024            # v7x-safe fallback
    return cap // 8                        # headroom: double-buffers, weights, scratch


def _pick_row_tile(rows, bytes_per_row, candidates=(1024, 512, 256, 128, 64, 32, 16, 8)):
    """Largest row tile dividing `rows`, >= 2 grid steps, within the VMEM budget."""
    budget = _vmem_budget_bytes()
    for t in candidates:
        if rows % t == 0 and rows // t >= 2 and 2 * t * bytes_per_row <= budget:
            return t
    return rows


# ----------------------------------------------------------------------------
# Kernel 1: conv_stem 3x3 s2 (2x2 space-to-depth taps) + BN + SiLU
#           fused with expand 1x1 + BN + SiLU
# ----------------------------------------------------------------------------
def _stem_expand_kernel(x_ref, w4_ref, sb_ref, ew_ref, eb_ref, h_ref, e_ref, *, Ho, Wo):
    # (Ho, Wo, 12) block: only 12 lanes, so the f32 upcast here is tiny.
    x = x_ref[0].astype(jnp.float32)
    K = x.shape[-1]
    zrow = jnp.zeros((1, Wo, K), jnp.float32)
    zcol = jnp.zeros((Ho, 1, K), jnp.float32)
    acc = jnp.zeros((Ho * Wo, STEM_CH), jnp.float32)
    # 2x2 tap accumulation in space-to-depth coordinates == 3x3 stride-2 conv,
    # pad=1 (feedback item 1: no im2col, no 9x patch tensor through HBM).
    for oi in range(2):                      # 0 -> block-row offset -1, 1 -> offset 0
        xr = jnp.concatenate([zrow, x[:Ho - 1]], axis=0) if oi == 0 else x
        for oj in range(2):                  # 0 -> block-col offset -1, 1 -> offset 0
            xt = jnp.concatenate([zcol, xr[:, :Wo - 1, :]], axis=1) if oj == 0 else xr
            t = xt.reshape(Ho * Wo, K)       # leading-dim merge (Wo % 8 == 0): cheap
            # MXU note (item 9): K=12 / N=32 underuse the MXU columns, but this
            # stage is HBM-bound at these widths so the slack is free.
            acc = acc + jnp.dot(t, w4_ref[oi * 2 + oj],
                                preferred_element_type=jnp.float32)
    h = acc + sb_ref[...]                    # BN scale pre-folded into weights
    h = h * jax.nn.sigmoid(h)                # SiLU (f32)
    # TODO(synk): h is 32-wide (lane-sparse); packing it to (rows//4, 128) needs
    # a minor-dim relayout in-kernel, deferred for lowering robustness (item 5).
    h_ref[0] = h.astype(h_ref.dtype)
    e = jnp.dot(h.astype(ew_ref.dtype), ew_ref[...], preferred_element_type=jnp.float32)
    e = e + eb_ref[...]
    e = e * jax.nn.sigmoid(e)                # SiLU (f32)
    e_ref[0] = e.reshape(Ho, Wo, MID_CH).astype(e_ref.dtype)   # lane-dense (128)


def stem_expand(s2d, w4, stem_bias, exp_w, exp_bias):
    B, Ho, Wo, K = s2d.shape
    assert Wo % 8 == 0 and Ho % 8 == 0
    kernel = partial(_stem_expand_kernel, Ho=Ho, Wo=Wo)
    return pl.pallas_call(
        kernel,
        out_shape=(jax.ShapeDtypeStruct((B, Ho * Wo, STEM_CH), ACT_DTYPE),
                   jax.ShapeDtypeStruct((B, Ho, Wo, MID_CH), ACT_DTYPE)),
        grid=(B,),
        in_specs=[
            pl.BlockSpec((1, Ho, Wo, K), lambda b: (b, 0, 0, 0)),
            pl.BlockSpec((4, K, STEM_CH), lambda b: (0, 0, 0)),
            pl.BlockSpec((1, STEM_CH), lambda b: (0, 0)),
            pl.BlockSpec((STEM_CH, MID_CH), lambda b: (0, 0)),
            pl.BlockSpec((1, MID_CH), lambda b: (0, 0)),
        ],
        out_specs=(pl.BlockSpec((1, Ho * Wo, STEM_CH), lambda b: (b, 0, 0)),
                   pl.BlockSpec((1, Ho, Wo, MID_CH), lambda b: (b, 0, 0, 0))),
        compiler_params=pltpu.CompilerParams(dimension_semantics=("parallel",)),
    )(s2d, w4, stem_bias, exp_w, exp_bias)


# ----------------------------------------------------------------------------
# Kernel 2: depthwise 3x3 + BN + SiLU, plus the SE squeeze (spatial mean)
# ----------------------------------------------------------------------------
def _dw_kernel(x_ref, w_ref, b_ref, y_ref, p_ref, *, Ho, Wo):
    C = x_ref.shape[-1]
    x = x_ref[0]                                   # (Ho, Wo, C) bf16 (no eager f32 copy)
    zrow = jnp.zeros((1, Wo, C), x.dtype)
    zcol = jnp.zeros((Ho, 1, C), jnp.float32)
    acc = jnp.zeros((Ho, Wo, C), jnp.float32)
    # Halo handled in-kernel (item 2): row shifts are leading-dim slices+concat
    # (free), column shifts are sublane slices+concat with zero fill.
    for oi in (-1, 0, 1):
        if oi == -1:
            xr = jnp.concatenate([zrow, x[:Ho - 1]], axis=0)
        elif oi == 1:
            xr = jnp.concatenate([x[1:], zrow], axis=0)
        else:
            xr = x
        xr = xr.astype(jnp.float32)                # per-row-shift cast (item 4)
        for oj in (-1, 0, 1):
            if oj == -1:
                xt = jnp.concatenate([zcol, xr[:, :Wo - 1, :]], axis=1)
            elif oj == 1:
                xt = jnp.concatenate([xr[:, 1:, :], zcol], axis=1)
            else:
                xt = xr
            acc = acc + xt * w_ref[oi + 1, oj + 1, :]
    y = acc + b_ref[...].reshape(1, 1, C)          # BN scale pre-folded into w
    y = y * jax.nn.sigmoid(y)                      # SiLU (f32)
    y_ref[0] = y.reshape(Ho * Wo, C).astype(y_ref.dtype)     # lane-dense (128)
    p_ref[0] = jnp.mean(y, axis=(0, 1)).reshape(1, C)        # SE squeeze (per image)


def dw_conv(e, dw_w, dw_bias):
    """e: (B, Ho, Wo, C) -> (unscaled SiLU(BN(dw3x3(e))) as (B, Ho*Wo, C), pooled (B,1,C))."""
    B, Ho, Wo, C = e.shape
    # TODO(synk): at real b7 feature sizes (v7x 64 MiB VMEM), tile this over row
    # strips with a 1-row halo and accumulate the pool across an 'arbitrary'
    # strip axis; the SE MLP/scale already live outside this kernel (item 3).
    kernel = partial(_dw_kernel, Ho=Ho, Wo=Wo)
    return pl.pallas_call(
        kernel,
        out_shape=(jax.ShapeDtypeStruct((B, Ho * Wo, C), ACT_DTYPE),
                   jax.ShapeDtypeStruct((B, 1, C), jnp.float32)),
        grid=(B,),
        in_specs=[
            pl.BlockSpec((1, Ho, Wo, C), lambda b: (b, 0, 0, 0)),
            pl.BlockSpec((3, 3, C), lambda b: (0, 0, 0)),
            pl.BlockSpec((1, C), lambda b: (0, 0)),
        ],
        out_specs=(pl.BlockSpec((1, Ho * Wo, C), lambda b: (b, 0, 0)),
                   pl.BlockSpec((1, 1, C), lambda b: (b, 0, 0))),
        compiler_params=pltpu.CompilerParams(dimension_semantics=("parallel",)),
    )(e, dw_w, dw_bias)


# ----------------------------------------------------------------------------
# Kernel 3: SE scale + project 1x1 + BN + residual, fused with conv_head 1x1 + BN + SiLU
# ----------------------------------------------------------------------------
def _tail_kernel(y_ref, h_ref, s_ref, pw_ref, pb_ref, hw_ref, hb_ref, f_ref):
    d = y_ref[0].astype(jnp.float32) * s_ref[0]               # SE channel scale (per image)
    p = jnp.dot(d.astype(pw_ref.dtype), pw_ref[...], preferred_element_type=jnp.float32)
    p = p + pb_ref[...] + h_ref[0].astype(jnp.float32)        # project BN + residual
    f = jnp.dot(p.astype(hw_ref.dtype), hw_ref[...], preferred_element_type=jnp.float32)
    f = f + hb_ref[...]
    f = f * jax.nn.sigmoid(f)                                  # conv_head SiLU (f32)
    f_ref[0] = f.astype(f_ref.dtype)                           # bf16, lane-dense (128)


def se_project_head(y, h, s, proj_w, proj_bias, head_w, head_bias):
    B, R, C = y.shape                       # R = Ho*Wo rows per image
    Cs = proj_w.shape[1]
    Ch = head_w.shape[1]
    bytes_per_row = 2 * (C + Cs + Ch)       # bf16 streamed operands per row
    tm = _pick_row_tile(R, bytes_per_row)   # VMEM-budgeted tile (item 6)
    return pl.pallas_call(
        _tail_kernel,
        out_shape=jax.ShapeDtypeStruct((B, R, Ch), ACT_DTYPE),   # bf16 writeback (item 7)
        grid=(B, R // tm),
        in_specs=[
            pl.BlockSpec((1, tm, C), lambda b, t: (b, t, 0)),
            pl.BlockSpec((1, tm, Cs), lambda b, t: (b, t, 0)),
            pl.BlockSpec((1, 1, C), lambda b, t: (b, 0, 0)),
            pl.BlockSpec((C, Cs), lambda b, t: (0, 0)),
            pl.BlockSpec((1, Cs), lambda b, t: (0, 0)),
            pl.BlockSpec((Cs, Ch), lambda b, t: (0, 0)),
            pl.BlockSpec((1, Ch), lambda b, t: (0, 0)),
        ],
        out_specs=pl.BlockSpec((1, tm, Ch), lambda b, t: (b, t, 0)),
        compiler_params=pltpu.CompilerParams(dimension_semantics=("parallel", "parallel")),
    )(y, h, s, proj_w, proj_bias, head_w, head_bias)


# ----------------------------------------------------------------------------
# Parameters: raw init + one-time preparation (feedback item 8)
# ----------------------------------------------------------------------------
def fold_bn(gamma, beta, mean, var, eps=1e-3):
    scale = gamma / jnp.sqrt(var + eps)
    bias = beta - mean * scale
    return scale, bias


def init_params(key):
    ks = jax.random.split(key, 16)

    def bn(k, c):
        g = 1.0 + 0.05 * jax.random.normal(k, (c,), jnp.float32)
        b = 0.05 * jax.random.normal(jax.random.fold_in(k, 1), (c,), jnp.float32)
        m = 0.05 * jax.random.normal(jax.random.fold_in(k, 2), (c,), jnp.float32)
        v = 1.0 + 0.05 * jnp.abs(jax.random.normal(jax.random.fold_in(k, 3), (c,), jnp.float32))
        return fold_bn(g, b, m, v)

    p = {}
    p["stem_w"] = 0.1 * jax.random.normal(ks[0], (3, 3, C_IN, STEM_CH), jnp.float32)
    p["stem_scale"], p["stem_bias"] = bn(ks[1], STEM_CH)
    p["exp_w"] = 0.1 * jax.random.normal(ks[2], (STEM_CH, MID_CH), jnp.float32)
    p["exp_scale"], p["exp_bias"] = bn(ks[3], MID_CH)
    p["dw_w"] = 0.1 * jax.random.normal(ks[4], (3, 3, MID_CH), jnp.float32)
    p["dw_scale"], p["dw_bias"] = bn(ks[5], MID_CH)
    p["se1_w"] = 0.1 * jax.random.normal(ks[6], (MID_CH, SE_CH), jnp.float32)
    p["se1_b"] = 0.05 * jax.random.normal(ks[7], (SE_CH,), jnp.float32)
    p["se2_w"] = 0.1 * jax.random.normal(ks[8], (SE_CH, MID_CH), jnp.float32)
    p["se2_b"] = 0.05 * jax.random.normal(ks[9], (MID_CH,), jnp.float32)
    p["proj_w"] = 0.1 * jax.random.normal(ks[10], (MID_CH, STEM_CH), jnp.float32)
    p["proj_scale"], p["proj_bias"] = bn(ks[11], STEM_CH)
    p["head_w"] = 0.1 * jax.random.normal(ks[12], (STEM_CH, HEAD_CH), jnp.float32)
    p["head_scale"], p["head_bias"] = bn(ks[13], HEAD_CH)
    return p


def prepare_params(p):
    """One-time prep (outside the per-step forward): fold BN scales into conv
    weights, cast matmul weights to bf16 once, reshape biases to (1, C), and
    rewrite the 3x3-stride-2 stem kernel as 2x2 space-to-depth taps."""
    q = {}
    # conv_stem: (kh, kw, cin, cout) -> 4 taps of (12, cout) in s2d coordinates.
    sw = p["stem_w"] * p["stem_scale"].reshape(1, 1, 1, -1)
    w4 = jnp.zeros((2, 2, 2, 2, C_IN, STEM_CH), jnp.float32)
    # (block-offset index, within-block index, original 3x3 kernel index)
    tapmap = ((0, 1, 0), (1, 0, 1), (1, 1, 2))
    for (pi, a, kh) in tapmap:
        for (qj, b, kw) in tapmap:
            w4 = w4.at[pi, qj, a, b].set(sw[kh, kw])
    q["stem_w4"] = w4.reshape(4, 4 * C_IN, STEM_CH)            # f32 (tiny)
    q["stem_bias"] = p["stem_bias"].reshape(1, STEM_CH)
    q["exp_w"] = (p["exp_w"] * p["exp_scale"].reshape(1, -1)).astype(ACT_DTYPE)
    q["exp_bias"] = p["exp_bias"].reshape(1, MID_CH)
    q["dw_w"] = p["dw_w"] * p["dw_scale"].reshape(1, 1, -1)    # f32, used on the VPU
    q["dw_bias"] = p["dw_bias"].reshape(1, MID_CH)
    q["se1_w"], q["se1_b"] = p["se1_w"], p["se1_b"]
    q["se2_w"], q["se2_b"] = p["se2_w"], p["se2_b"]
    q["proj_w"] = (p["proj_w"] * p["proj_scale"].reshape(1, -1)).astype(ACT_DTYPE)
    q["proj_bias"] = p["proj_bias"].reshape(1, STEM_CH)
    q["head_w"] = (p["head_w"] * p["head_scale"].reshape(1, -1)).astype(ACT_DTYPE)
    q["head_bias"] = p["head_bias"].reshape(1, HEAD_CH)
    return q


# ----------------------------------------------------------------------------
# Forward pass (== DeepFakeEncoder.forward -> encoder.forward_features)
# ----------------------------------------------------------------------------
@jax.jit
def deepfake_encoder_forward(x_nchw, q):
    B, C, H, W = x_nchw.shape
    assert C == C_IN and H % 2 == 0 and W % 2 == 0
    Ho, Wo = H // 2, W // 2

    # NCHW -> space-to-depth NHWC (B, Ho, Wo, 12) in one fused XLA copy: this
    # replaces both the old transpose AND the 9x im2col (feedback item 1); the
    # stem's stride-2 is absorbed into the layout change we must pay anyway.
    s2d = (x_nchw.reshape(B, C, Ho, 2, Wo, 2)
                 .transpose(0, 2, 4, 3, 5, 1)
                 .reshape(B, Ho, Wo, 4 * C)
                 .astype(ACT_DTYPE))

    # K1: conv_stem + BN + SiLU fused with expand 1x1 + BN + SiLU.
    h, e = stem_expand(s2d, q["stem_w4"], q["stem_bias"], q["exp_w"], q["exp_bias"])

    # K2: depthwise 3x3 + BN + SiLU; emits unscaled activation + SE pool.
    y, pooled = dw_conv(e, q["dw_w"], q["dw_bias"])

    # SE MLP batched over images in XLA (feedback item 10: M=1 matmuls waste the
    # MXU; this is B x 128 values, negligible, and keeps K2 strip-tileable).
    s = pooled.reshape(B, MID_CH)
    s = jnp.dot(s, q["se1_w"]) + q["se1_b"]
    s = s * jax.nn.sigmoid(s)
    s = jnp.dot(s, q["se2_w"]) + q["se2_b"]
    s = jax.nn.sigmoid(s).reshape(B, 1, MID_CH)

    # K3: SE scale + project 1x1 + BN + residual fused with conv_head 1x1 + BN + SiLU.
    f = se_project_head(y, h, s, q["proj_w"], q["proj_bias"], q["head_w"], q["head_bias"])

    f = f.reshape(B, Ho, Wo, HEAD_CH)
    # TODO(synk): fold this NHWC->NCHW transpose into K3's out_spec (in-kernel
    # (tm, Ch) -> (Ch, tm) transpose + channel-major output blocks) to drop one
    # more read+write pass over the (now bf16) feature map.
    return jnp.transpose(f, (0, 3, 1, 2))             # NCHW features, bf16


# ----------------------------------------------------------------------------
if __name__ == "__main__":
    key = jax.random.PRNGKey(0)
    x = jax.random.normal(key, (2, 3, 32, 32), jnp.float32)   # NCHW like torch
    params = init_params(jax.random.PRNGKey(1))
    q = prepare_params(params)                                 # one-time prep

    out = deepfake_encoder_forward(x, q)
    out = jax.block_until_ready(out)

    assert out.shape == (2, HEAD_CH, 16, 16), out.shape
    assert bool(jnp.all(jnp.isfinite(out.astype(jnp.float32))))
    print("KERNEL_OK")
</pallas_src>

<mosaic_0001>
module attributes {stable_mosaic.version = 11 : i64} {
  func.func @_stem_expand_kernel(%arg0: i32, %arg1: memref<1x16x16x12xbf16, #tpu.memory_space<vmem>>, %arg2: memref<4x12x32xf32, #tpu.memory_space<vmem>>, %arg3: memref<1x32xf32, #tpu.memory_space<vmem>>, %arg4: memref<32x128xbf16, #tpu.memory_space<vmem>>, %arg5: memref<1x128xf32, #tpu.memory_space<vmem>>, %arg6: memref<1x256x32xbf16, #tpu.memory_space<vmem>>, %arg7: memref<1x16x16x128xbf16, #tpu.memory_space<vmem>>) attributes {dimension_semantics = [#tpu.dimension_semantics<parallel>], iteration_bounds = array<i64: 2>, scalar_prefetch = 0 : i64, scratch_operands = 0 : i64, tpu.core_type = #tpu.core_type<tc>, window_params = [{transform_indices = @transform_0, window_bounds = array<i64: 1, 16, 16, 12>}, {pipeline_mode = #tpu.pipeline_mode<synchronous>, transform_indices = @transform_1, window_bounds = array<i64: 4, 12, 32>}, {pipeline_mode = #tpu.pipeline_mode<synchronous>, transform_indices = @transform_2, window_bounds = array<i64: 1, 32>}, {pipeline_mode = #tpu.pipeline_mode<synchronous>, transform_indices = @transform_3, window_bounds = array<i64: 32, 128>}, {pipeline_mode = #tpu.pipeline_mode<synchronous>, transform_indices = @transform_4, window_bounds = array<i64: 1, 128>}, {transform_indices = @transform_5, window_bounds = array<i64: 1, 256, 32>}, {transform_indices = @transform_6, window_bounds = array<i64: 1, 16, 16, 128>}]} {
    %c0 = arith.constant 0 : index
    %c0_0 = arith.constant 0 : index
    %c0_1 = arith.constant 0 : index
    %c0_2 = arith.constant 0 : index
    %0 = vector.load %arg1[%c0, %c0_0, %c0_1, %c0_2] : memref<1x16x16x12xbf16, #tpu.memory_space<vmem>>, vector<1x16x16x12xbf16>
    %1 = vector.shape_cast %0 : vector<1x16x16x12xbf16> to vector<16x16x12xbf16>
    %2 = arith.extf %1 : vector<16x16x12xbf16> to vector<16x16x12xf32>
    %cst = arith.constant 0.000000e+00 : f32
    %3 = vector.broadcast %cst : f32 to vector<1x16x12xf32>
    %cst_3 = arith.constant 0.000000e+00 : f32
    %4 = vector.broadcast %cst_3 : f32 to vector<16x1x12xf32>
    %cst_4 = arith.constant 0.000000e+00 : f32
    %5 = vector.broadcast %cst_4 : f32 to vector<256x32xf32>
    %6 = vector.extract_strided_slice %2 {offsets = [0, 0, 0], sizes = [15, 16, 12], strides = [1, 1, 1]} : vector<16x16x12xf32> to vector<15x16x12xf32>
    %7 = tpu.concatenate %3, %6 in 0 : vector<1x16x12xf32>, vector<15x16x12xf32> -> vector<16x16x12xf32>
    %8 = vector.extract_strided_slice %7 {offsets = [0, 0, 0], sizes = [16, 15, 12], strides = [1, 1, 1]} : vector<16x16x12xf32> to vector<16x15x12xf32>
    %9 = tpu.concatenate %4, %8 in 1 : vector<16x1x12xf32>, vector<16x15x12xf32> -> vector<16x16x12xf32>
    %10 = vector.shape_cast %9 : vector<16x16x12xf32> to vector<256x12xf32>
    %c0_5 = arith.constant 0 : index
    %c0_6 = arith.constant 0 : index
    %c0_7 = arith.constant 0 : index
    %11 = vector.load %arg2[%c0_5, %c0_6, %c0_7] : memref<4x12x32xf32, #tpu.memory_space<vmem>>, vector<1x12x32xf32>
    %12 = vector.shape_cast %11 : vector<1x12x32xf32> to vector<12x32xf32>
    %cst_8 = arith.constant dense<0.000000e+00> : vector<256x32xf32>
    %13 = tpu.matmul %10, %12, %cst_8 {dimension_numbers = #tpu.dot_dimension_numbers<[1], [0], [0], [1], [0, 0, 1, 1], [], []>} : vector<256x12xf32>, vector<12x32xf32>, vector<256x32xf32> -> vector<256x32xf32>
    %14 = arith.addf %5, %13 : vector<256x32xf32>
    %15 = vector.shape_cast %7 : vector<16x16x12xf32> to vector<256x12xf32>
    %c1 = arith.constant 1 : index
    %c0_9 = arith.constant 0 : index
    %c0_10 = arith.constant 0 : index
    %16 = vector.load %arg2[%c1, %c0_9, %c0_10] : memref<4x12x32xf32, #tpu.memory_space<vmem>>, vector<1x12x32xf32>
    %17 = vector.shape_cast %16 : vector<1x12x32xf32> to vector<12x32xf32>
    %cst_11 = arith.constant dense<0.000000e+00> : vector<256x32xf32>
    %18 = tpu.matmul %15, %17, %cst_11 {dimension_numbers = #tpu.dot_dimension_numbers<[1], [0], [0], [1], [0, 0, 1, 1], [], []>} : vector<256x12xf32>, vector<12x32xf32>, vector<256x32xf32> -> vector<256x32xf32>
    %19 = arith.addf %14, %18 : vector<256x32xf32>
    %20 = vector.extract_strided_slice %2 {offsets = [0, 0, 0], sizes = [16, 15, 12], strides = [1, 1, 1]} : vector<16x16x12xf32> to vector<16x15x12xf32>
    %21 = tpu.concatenate %4, %20 in 1 : vector<16x1x12xf32>, vector<16x15x12xf32> -> vector<16x16x12xf32>
    %22 = vector.shape_cast %21 : vector<16x16x12xf32> to vector<256x12xf32>
    %c2 = arith.constant 2 : index
    %c0_12 = arith.constant 0 : index
    %c0_13 = arith.constant 0 : index
    %23 = vector.load %arg2[%c2, %c0_12, %c0_13] : memref<4x12x32xf32, #tpu.memory_space<vmem>>, vector<1x12x32xf32>
    %24 = vector.shape_cast %23 : vector<1x12x32xf32> to vector<12x32xf32>
    %cst_14 = arith.constant dense<0.000000e+00> : vector<256x32xf32>
    %25 = tpu.matmul %22, %24, %cst_14 {dimension_numbers = #tpu.dot_dimension_numbers<[1], [0], [0], [1], [0, 0, 1, 1], [], []>} : vector<256x12xf32>, vector<12x32xf32>, vector<256x32xf32> -> vector<256x32xf32>
    %26 = arith.addf %19, %25 : vector<256x32xf32>
    %27 = vector.shape_cast %2 : vector<16x16x12xf32> to vector<256x12xf32>
    %c3 = arith.constant 3 : index
    %c0_15 = arith.constant 0 : index
    %c0_16 = arith.constant 0 : index
    %28 = vector.load %arg2[%c3, %c0_15, %c0_16] : memref<4x12x32xf32, #tpu.memory_space<vmem>>, vector<1x12x32xf32>
    %29 = vector.shape_cast %28 : vector<1x12x32xf32> to vector<12x32xf32>
    %cst_17 = arith.constant dense<0.000000e+00> : vector<256x32xf32>
    %30 = tpu.matmul %27, %29, %cst_17 {dimension_numbers = #tpu.dot_dimension_numbers<[1], [0], [0], [1], [0, 0, 1, 1], [], []>} : vector<256x12xf32>, vector<12x32xf32>, vector<256x32xf32> -> vector<256x32xf32>
    %31 = arith.addf %26, %30 : vector<256x32xf32>
    %c0_18 = arith.constant 0 : index
    %c0_19 = arith.constant 0 : index
    %32 = vector.load %arg3[%c0_18, %c0_19] : memref<1x32xf32, #tpu.memory_space<vmem>>, vector<1x32xf32>
    %33 = vector.broadcast %32 : vector<1x32xf32> to vector<256x32xf32>
    %34 = arith.addf %31, %33 : vector<256x32xf32>
    %35 = arith.negf %34 : vector<256x32xf32>
    %36 = math.exp %35 : vector<256x32xf32>
    %cst_20 = arith.constant 1.000000e+00 : f32
    %37 = vector.broadcast %cst_20 : f32 to vector<256x32xf32>
    %38 = arith.addf %37, %36 : vector<256x32xf32>
    %39 = arith.divf %37, %38 : vector<256x32xf32>
    %40 = arith.mulf %34, %39 : vector<256x32xf32>
    %41 = arith.truncf %40 : vector<256x32xf32> to vector<256x32xbf16>
    %c0_21 = arith.constant 0 : index
    %c0_22 = arith.constant 0 : index
    %c0_23 = arith.constant 0 : index
    %42 = vector.load %arg6[%c0_21, %c0_22, %c0_23] : memref<1x256x32xbf16, #tpu.memory_space<vmem>>, vector<1x256x32xbf16>
    %43 = vector.shape_cast %42 : vector<1x256x32xbf16> to vector<256x32xbf16>
    %44 = vector.shape_cast %41 : vector<256x32xbf16> to vector<1x256x32xbf16>
    tpu.vector_store %arg6[%c0_21, %c0_22, %c0_23], %44 {strides = array<i32>} : memref<1x256x32xbf16, #tpu.memory_space<vmem>>, vector<1x256x32xbf16>,
    %45 = arith.truncf %40 : vector<256x32xf32> to vector<256x32xbf16>
    %c0_24 = arith.constant 0 : index
    %c0_25 = arith.constant 0 : index
    %46 = vector.load %arg4[%c0_24, %c0_25] : memref<32x128xbf16, #tpu.memory_space<vmem>>, vector<32x128xbf16>
    %cst_26 = arith.constant dense<0.000000e+00> : vector<256x128xf32>
    %47 = tpu.matmul %45, %46, %cst_26 {dimension_numbers = #tpu.dot_dimension_numbers<[1], [0], [0], [1], [0, 0, 1, 1], [], []>} : vector<256x32xbf16>, vector<32x128xbf16>, vector<256x128xf32> -> vector<256x128xf32>
    %c0_27 = arith.constant 0 : index
    %c0_28 = arith.constant 0 : index
    %48 = vector.load %arg5[%c0_27, %c0_28] : memref<1x128xf32, #tpu.memory_space<vmem>>, vector<1x128xf32>
    %49 = vector.broadcast %48 : vector<1x128xf32> to vector<256x128xf32>
    %50 = arith.addf %47, %49 : vector<256x128xf32>
    %51 = arith.negf %50 : vector<256x128xf32>
    %52 = math.exp %51 : vector<256x128xf32>
    %cst_29 = arith.constant 1.000000e+00 : f32
    %53 = vector.broadcast %cst_29 : f32 to vector<256x128xf32>
    %54 = arith.addf %53, %52 : vector<256x128xf32>
    %55 = arith.divf %53, %54 : vector<256x128xf32>
    %56 = arith.mulf %50, %55 : vector<256x128xf32>
    %57 = vector.shape_cast %56 : vector<256x128xf32> to vector<16x16x128xf32>
    %58 = arith.truncf %57 : vector<16x16x128xf32> to vector<16x16x128xbf16>
    %c0_30 = arith.constant 0 : index
    %c0_31 = arith.constant 0 : index
    %c0_32 = arith.constant 0 : index
    %c0_33 = arith.constant 0 : index
    %59 = vector.load %arg7[%c0_30, %c0_31, %c0_32, %c0_33] : memref<1x16x16x128xbf16, #tpu.memory_space<vmem>>, vector<1x16x16x128xbf16>
    %60 = vector.shape_cast %59 : vector<1x16x16x128xbf16> to vector<16x16x128xbf16>
    %61 = vector.shape_cast %58 : vector<16x16x128xbf16> to vector<1x16x16x128xbf16>
    tpu.vector_store %arg7[%c0_30, %c0_31, %c0_32, %c0_33], %61 {strides = array<i32>} : memref<1x16x16x128xbf16, #tpu.memory_space<vmem>>, vector<1x16x16x128xbf16>,
    return
  }
  func.func @transform_0(%arg0: i32) -> (i32, i32, i32, i32) {
    %c0_i32 = arith.constant 0 : i32
    %c0_i32_0 = arith.constant 0 : i32
    %c0_i32_1 = arith.constant 0 : i32
    %c0_i32_2 = arith.constant 0 : i32
    return %arg0, %c0_i32, %c0_i32_0, %c0_i32_1 : i32, i32, i32, i32
  }
  func.func @transform_1(%arg0: i32) -> (i32, i32, i32) {
    %c0_i32 = arith.constant 0 : i32
    %c0_i32_0 = arith.constant 0 : i32
    %c0_i32_1 = arith.constant 0 : i32
    %c0_i32_2 = arith.constant 0 : i32
    return %c0_i32, %c0_i32_0, %c0_i32_1 : i32, i32, i32
  }
  func.func @transform_2(%arg0: i32) -> (i32, i32) {
    %c0_i32 = arith.constant 0 : i32
    %c0_i32_0 = arith.constant 0 : i32
    %c0_i32_1 = arith.constant 0 : i32
    return %c0_i32, %c0_i32_0 : i32, i32
  }
  func.func @transform_3(%arg0: i32) -> (i32, i32) {
    %c0_i32 = arith.constant 0 : i32
    %c0_i32_0 = arith.constant 0 : i32
    %c0_i32_1 = arith.constant 0 : i32
    return %c0_i32, %c0_i32_0 : i32, i32
  }
  func.func @transform_4(%arg0: i32) -> (i32, i32) {
    %c0_i32 = arith.constant 0 : i32
    %c0_i32_0 = arith.constant 0 : i32
    %c0_i32_1 = arith.constant 0 : i32
    return %c0_i32, %c0_i32_0 : i32, i32
  }
  func.func @transform_5(%arg0: i32) -> (i32, i32, i32) {
    %c0_i32 = arith.constant 0 : i32
    %c0_i32_0 = arith.constant 0 : i32
    %c0_i32_1 = arith.constant 0 : i32
    return %arg0, %c0_i32, %c0_i32_0 : i32, i32, i32
  }
  func.func @transform_6(%arg0: i32) -> (i32, i32, i32, i32) {
    %c0_i32 = arith.constant 0 : i32
    %c0_i32_0 = arith.constant 0 : i32
    %c0_i32_1 = arith.constant 0 : i32
    %c0_i32_2 = arith.constant 0 : i32
    return %arg0, %c0_i32, %c0_i32_0, %c0_i32_1 : i32, i32, i32, i32
  }
}

module attributes {stable_mosaic.version = 11 : i64} {
  func.func @_dw_kernel(%arg0: i32, %arg1: memref<1x16x16x128xbf16, #tpu.memory_space<vmem>>, %arg2: memref<3x3x128xf32, #tpu.memory_space<vmem>>, %arg3: memref<1x128xf32, #tpu.memory_space<vmem>>, %arg4: memref<1x256x128xbf16, #tpu.memory_space<vmem>>, %arg5: memref<1x1x128xf32, #tpu.memory_space<vmem>>) attributes {dimension_semantics = [#tpu.dimension_semantics<parallel>], iteration_bounds = array<i64: 2>, scalar_prefetch = 0 : i64, scratch_operands = 0 : i64, tpu.core_type = #tpu.core_type<tc>, window_params = [{transform_indices = @transform_0, window_bounds = array<i64: 1, 16, 16, 128>}, {pipeline_mode = #tpu.pipeline_mode<synchronous>, transform_indices = @transform_1, window_bounds = array<i64: 3, 3, 128>}, {pipeline_mode = #tpu.pipeline_mode<synchronous>, transform_indices = @transform_2, window_bounds = array<i64: 1, 128>}, {transform_indices = @transform_3, window_bounds = array<i64: 1, 256, 128>}, {transform_indices = @transform_4, window_bounds = array<i64: 1, 1, 128>}]} {
    %c0 = arith.constant 0 : index
    %c0_0 = arith.constant 0 : index
    %c0_1 = arith.constant 0 : index
    %c0_2 = arith.constant 0 : index
    %0 = vector.load %arg1[%c0, %c0_0, %c0_1, %c0_2] : memref<1x16x16x128xbf16, #tpu.memory_space<vmem>>, vector<1x16x16x128xbf16>
    %1 = vector.shape_cast %0 : vector<1x16x16x128xbf16> to vector<16x16x128xbf16>
    %cst = arith.constant 0.000000e+00 : bf16
    %2 = vector.broadcast %cst : bf16 to vector<1x16x128xbf16>
    %cst_3 = arith.constant 0.000000e+00 : f32
    %3 = vector.broadcast %cst_3 : f32 to vector<16x1x128xf32>
    %cst_4 = arith.constant 0.000000e+00 : f32
    %4 = vector.broadcast %cst_4 : f32 to vector<16x16x128xf32>
    %5 = vector.extract_strided_slice %1 {offsets = [0, 0, 0], sizes = [15, 16, 128], strides = [1, 1, 1]} : vector<16x16x128xbf16> to vector<15x16x128xbf16>
    %6 = tpu.concatenate %2, %5 in 0 : vector<1x16x128xbf16>, vector<15x16x128xbf16> -> vector<16x16x128xbf16>
    %7 = arith.extf %6 : vector<16x16x128xbf16> to vector<16x16x128xf32>
    %8 = vector.extract_strided_slice %7 {offsets = [0, 0, 0], sizes = [16, 15, 128], strides = [1, 1, 1]} : vector<16x16x128xf32> to vector<16x15x128xf32>
    %9 = tpu.concatenate %3, %8 in 1 : vector<16x1x128xf32>, vector<16x15x128xf32> -> vector<16x16x128xf32>
    %c0_5 = arith.constant 0 : index
    %c0_6 = arith.constant 0 : index
    %c0_7 = arith.constant 0 : index
    %10 = vector.load %arg2[%c0_5, %c0_6, %c0_7] : memref<3x3x128xf32, #tpu.memory_space<vmem>>, vector<1x1x128xf32>
    %11 = vector.shape_cast %10 : vector<1x1x128xf32> to vector<128xf32>
    %12 = vector.shape_cast %11 : vector<128xf32> to vector<1x1x128xf32>
    %13 = vector.broadcast %12 : vector<1x1x128xf32> to vector<16x16x128xf32>
    %14 = arith.mulf %9, %13 : vector<16x16x128xf32>
    %15 = arith.addf %4, %14 : vector<16x16x128xf32>
    %c0_8 = arith.constant 0 : index
    %c1 = arith.constant 1 : index
    %c0_9 = arith.constant 0 : index
    %16 = vector.load %arg2[%c0_8, %c1, %c0_9] : memref<3x3x128xf32, #tpu.memory_space<vmem>>, vector<1x1x128xf32>
    %17 = vector.shape_cast %16 : vector<1x1x128xf32> to vector<128xf32>
    %18 = vector.shape_cast %17 : vector<128xf32> to vector<1x1x128xf32>
    %19 = vector.broadcast %18 : vector<1x1x128xf32> to vector<16x16x128xf32>
    %20 = arith.mulf %7, %19 : vector<16x16x128xf32>
    %21 = arith.addf %15, %20 : vector<16x16x128xf32>
    %22 = vector.extract_strided_slice %7 {offsets = [0, 1, 0], sizes = [16, 15, 128], strides = [1, 1, 1]} : vector<16x16x128xf32> to vector<16x15x128xf32>
    %23 = tpu.concatenate %22, %3 in 1 : vector<16x15x128xf32>, vector<16x1x128xf32> -> vector<16x16x128xf32>
    %c0_10 = arith.constant 0 : index
    %c2 = arith.constant 2 : index
    %c0_11 = arith.constant 0 : index
    %24 = vector.load %arg2[%c0_10, %c2, %c0_11] : memref<3x3x128xf32, #tpu.memory_space<vmem>>, vector<1x1x128xf32>
    %25 = vector.shape_cast %24 : vector<1x1x128xf32> to vector<128xf32>
    %26 = vector.shape_cast %25 : vector<128xf32> to vector<1x1x128xf32>
    %27 = vector.broadcast %26 : vector<1x1x128xf32> to vector<16x16x128xf32>
    %28 = arith.mulf %23, %27 : vector<16x16x128xf32>
    %29 = arith.addf %21, %28 : vector<16x16x128xf32>
    %30 = arith.extf %1 : vector<16x16x128xbf16> to vector<16x16x128xf32>
    %31 = vector.extract_strided_slice %30 {offsets = [0, 0, 0], sizes = [16, 15, 128], strides = [1, 1, 1]} : vector<16x16x128xf32> to vector<16x15x128xf32>
    %32 = tpu.concatenate %3, %31 in 1 : vector<16x1x128xf32>, vector<16x15x128xf32> -> vector<16x16x128xf32>
    %c1_12 = arith.constant 1 : index
    %c0_13 = arith.constant 0 : index
    %c0_14 = arith.constant 0 : index
    %33 = vector.load %arg2[%c1_12, %c0_13, %c0_14] : memref<3x3x128xf32, #tpu.memory_space<vmem>>, vector<1x1x128xf32>
    %34 = vector.shape_cast %33 : vector<1x1x128xf32> to vector<128xf32>
    %35 = vector.shape_cast %34 : vector<128xf32> to vector<1x1x128xf32>
    %36 = vector.broadcast %35 : vector<1x1x128xf32> to vector<16x16x128xf32>
    %37 = arith.mulf %32, %36 : vector<16x16x128xf32>
    %38 = arith.addf %29, %37 : vector<16x16x128xf32>
    %c1_15 = arith.constant 1 : index
    %c1_16 = arith.constant 1 : index
    %c0_17 = arith.constant 0 : index
    %39 = vector.load %arg2[%c1_15, %c1_16, %c0_17] : memref<3x3x128xf32, #tpu.memory_space<vmem>>, vector<1x1x128xf32>
    %40 = vector.shape_cast %39 : vector<1x1x128xf32> to vector<128xf32>
    %41 = vector.shape_cast %40 : vector<128xf32> to vector<1x1x128xf32>
    %42 = vector.broadcast %41 : vector<1x1x128xf32> to vector<16x16x128xf32>
    %43 = arith.mulf %30, %42 : vector<16x16x128xf32>
    %44 = arith.addf %38, %43 : vector<16x16x128xf32>
    %45 = vector.extract_strided_slice %30 {offsets = [0, 1, 0], sizes = [16, 15, 128], strides = [1, 1, 1]} : vector<16x16x128xf32> to vector<16x15x128xf32>
    %46 = tpu.concatenate %45, %3 in 1 : vector<16x15x128xf32>, vector<16x1x128xf32> -> vector<16x16x128xf32>
    %c1_18 = arith.constant 1 : index
    %c2_19 = arith.constant 2 : index
    %c0_20 = arith.constant 0 : index
    %47 = vector.load %arg2[%c1_18, %c2_19, %c0_20] : memref<3x3x128xf32, #tpu.memory_space<vmem>>, vector<1x1x128xf32>
    %48 = vector.shape_cast %47 : vector<1x1x128xf32> to vector<128xf32>
    %49 = vector.shape_cast %48 : vector<128xf32> to vector<1x1x128xf32>
    %50 = vector.broadcast %49 : vector<1x1x128xf32> to vector<16x16x128xf32>
    %51 = arith.mulf %46, %50 : vector<16x16x128xf32>
    %52 = arith.addf %44, %51 : vector<16x16x128xf32>
    %53 = vector.extract_strided_slice %1 {offsets = [1, 0, 0], sizes = [15, 16, 128], strides = [1, 1, 1]} : vector<16x16x128xbf16> to vector<15x16x128xbf16>
    %54 = tpu.concatenate %53, %2 in 0 : vector<15x16x128xbf16>, vector<1x16x128xbf16> -> vector<16x16x128xbf16>
    %55 = arith.extf %54 : vector<16x16x128xbf16> to vector<16x16x128xf32>
    %56 = vector.extract_strided_slice %55 {offsets = [0, 0, 0], sizes = [16, 15, 128], strides = [1, 1, 1]} : vector<16x16x128xf32> to vector<16x15x128xf32>
    %57 = tpu.concatenate %3, %56 in 1 : vector<16x1x128xf32>, vector<16x15x128xf32> -> vector<16x16x128xf32>
    %c2_21 = arith.constant 2 : index
    %c0_22 = arith.constant 0 : index
    %c0_23 = arith.constant 0 : index
    %58 = vector.load %arg2[%c2_21, %c0_22, %c0_23] : memref<3x3x128xf32, #tpu.memory_space<vmem>>, vector<1x1x128xf32>
    %59 = vector.shape_cast %58 : vector<1x1x128xf32> to vector<128xf32>
    %60 = vector.shape_cast %59 : vector<128xf32> to vector<1x1x128xf32>
    %61 = vector.broadcast %60 : vector<1x1x128xf32> to vector<16x16x128xf32>
    %62 = arith.mulf %57, %61 : vector<16x16x128xf32>
    %63 = arith.addf %52, %62 : vector<16x16x128xf32>
    %c2_24 = arith.constant 2 : index
    %c1_25 = arith.constant 1 : index
    %c0_26 = arith.constant 0 : index
    %64 = vector.load %arg2[%c2_24, %c1_25, %c0_26] : memref<3x3x128xf32, #tpu.memory_space<vmem>>, vector<1x1x128xf32>
    %65 = vector.shape_cast %64 : vector<1x1x128xf32> to vector<128xf32>
    %66 = vector.shape_cast %65 : vector<128xf32> to vector<1x1x128xf32>
    %67 = vector.broadcast %66 : vector<1x1x128xf32> to vector<16x16x128xf32>
    %68 = arith.mulf %55, %67 : vector<16x16x128xf32>
    %69 = arith.addf %63, %68 : vector<16x16x128xf32>
    %70 = vector.extract_strided_slice %55 {offsets = [0, 1, 0], sizes = [16, 15, 128], strides = [1, 1, 1]} : vector<16x16x128xf32> to vector<16x15x128xf32>
    %71 = tpu.concatenate %70, %3 in 1 : vector<16x15x128xf32>, vector<16x1x128xf32> -> vector<16x16x128xf32>
    %c2_27 = arith.constant 2 : index
    %c2_28 = arith.constant 2 : index
    %c0_29 = arith.constant 0 : index
    %72 = vector.load %arg2[%c2_27, %c2_28, %c0_29] : memref<3x3x128xf32, #tpu.memory_space<vmem>>, vector<1x1x128xf32>
    %73 = vector.shape_cast %72 : vector<1x1x128xf32> to vector<128xf32>
    %74 = vector.shape_cast %73 : vector<128xf32> to vector<1x1x128xf32>
    %75 = vector.broadcast %74 : vector<1x1x128xf32> to vector<16x16x128xf32>
    %76 = arith.mulf %71, %75 : vector<16x16x128xf32>
    %77 = arith.addf %69, %76 : vector<16x16x128xf32>
    %c0_30 = arith.constant 0 : index
    %c0_31 = arith.constant 0 : index
    %78 = vector.load %arg3[%c0_30, %c0_31] : memref<1x128xf32, #tpu.memory_space<vmem>>, vector<1x128xf32>
    %79 = vector.shape_cast %78 : vector<1x128xf32> to vector<1x1x128xf32>
    %80 = vector.broadcast %79 : vector<1x1x128xf32> to vector<16x16x128xf32>
    %81 = arith.addf %77, %80 : vector<16x16x128xf32>
    %82 = arith.negf %81 : vector<16x16x128xf32>
    %83 = math.exp %82 : vector<16x16x128xf32>
    %cst_32 = arith.constant 1.000000e+00 : f32
    %84 = vector.broadcast %cst_32 : f32 to vector<16x16x128xf32>
    %85 = arith.addf %84, %83 : vector<16x16x128xf32>
    %86 = arith.divf %84, %85 : vector<16x16x128xf32>
    %87 = arith.mulf %81, %86 : vector<16x16x128xf32>
    %88 = vector.shape_cast %87 : vector<16x16x128xf32> to vector<256x128xf32>
    %89 = arith.truncf %88 : vector<256x128xf32> to vector<256x128xbf16>
    %c0_33 = arith.constant 0 : index
    %c0_34 = arith.constant 0 : index
    %c0_35 = arith.constant 0 : index
    %90 = vector.load %arg4[%c0_33, %c0_34, %c0_35] : memref<1x256x128xbf16, #tpu.memory_space<vmem>>, vector<1x256x128xbf16>
    %91 = vector.shape_cast %90 : vector<1x256x128xbf16> to vector<256x128xbf16>
    %92 = vector.shape_cast %89 : vector<256x128xbf16> to vector<1x256x128xbf16>
    tpu.vector_store %arg4[%c0_33, %c0_34, %c0_35], %92 {strides = array<i32>} : memref<1x256x128xbf16, #tpu.memory_space<vmem>>, vector<1x256x128xbf16>,
    %cst_36 = arith.constant dense<0.000000e+00> : vector<128xf32>
    %93 = vector.multi_reduction <add>, %87, %cst_36 [0, 1] : vector<16x16x128xf32> to vector<128xf32>
    %cst_37 = arith.constant 2.560000e+02 : f32
    %94 = vector.broadcast %cst_37 : f32 to vector<128xf32>
    %95 = arith.divf %93, %94 : vector<128xf32>
    %96 = vector.shape_cast %95 : vector<128xf32> to vector<1x128xf32>
    %c0_38 = arith.constant 0 : index
    %c0_39 = arith.constant 0 : index
    %c0_40 = arith.constant 0 : index
    %97 = vector.load %arg5[%c0_38, %c0_39, %c0_40] : memref<1x1x128xf32, #tpu.memory_space<vmem>>, vector<1x1x128xf32>
    %98 = vector.shape_cast %97 : vector<1x1x128xf32> to vector<1x128xf32>
    %99 = vector.shape_cast %96 : vector<1x128xf32> to vector<1x1x128xf32>
    tpu.vector_store %arg5[%c0_38, %c0_39, %c0_40], %99 {strides = array<i32>} : memref<1x1x128xf32, #tpu.memory_space<vmem>>, vector<1x1x128xf32>,
    return
  }
  func.func @transform_0(%arg0: i32) -> (i32, i32, i32, i32) {
    %c0_i32 = arith.constant 0 : i32
    %c0_i32_0 = arith.constant 0 : i32
    %c0_i32_1 = arith.constant 0 : i32
    %c0_i32_2 = arith.constant 0 : i32
    return %arg0, %c0_i32, %c0_i32_0, %c0_i32_1 : i32, i32, i32, i32
  }
  func.func @transform_1(%arg0: i32) -> (i32, i32, i32) {
    %c0_i32 = arith.constant 0 : i32
    %c0_i32_0 = arith.constant 0 : i32
    %c0_i32_1 = arith.constant 0 : i32
    %c0_i32_2 = arith.constant 0 : i32
    return %c0_i32, %c0_i32_0, %c0_i32_1 : i32, i32, i32
  }
  func.func @transform_2(%arg0: i32) -> (i32, i32) {
    %c0_i32 = arith.constant 0 : i32
    %c0_i32_0 = arith.constant 0 : i32
    %c0_i32_1 = arith.constant 0 : i32
    return %c0_i32, %c0_i32_0 : i32, i32
  }
  func.func @transform_3(%arg0: i32) -> (i32, i32, i32) {
    %c0_i32 = arith.constant 0 : i32
    %c0_i32_0 = arith.constant 0 : i32
    %c0_i32_1 = arith.constant 0 : i32
    return %arg0, %c0_i32, %c0_i32_0 : i32, i32, i32
  }
  func.func @transform_4(%arg0: i32) -> (i32, i32, i32) {
    %c0_i32 = arith.constant 0 : i32
    %c0_i32_0 = arith.constant 0 : i32
    %c0_i32_1 = arith.constant 0 : i32
    return %arg0, %c0_i32, %c0_i32_0 : i32, i32, i32
  }
}

module attributes {stable_mosaic.version = 11 : i64} {
  func.func @_tail_kernel(%arg0: i32, %arg1: i32, %arg2: memref<1x128x128xbf16, #tpu.memory_space<vmem>>, %arg3: memref<1x128x32xbf16, #tpu.memory_space<vmem>>, %arg4: memref<1x1x128xf32, #tpu.memory_space<vmem>>, %arg5: memref<128x32xbf16, #tpu.memory_space<vmem>>, %arg6: memref<1x32xf32, #tpu.memory_space<vmem>>, %arg7: memref<32x128xbf16, #tpu.memory_space<vmem>>, %arg8: memref<1x128xf32, #tpu.memory_space<vmem>>, %arg9: memref<1x128x128xbf16, #tpu.memory_space<vmem>>) attributes {dimension_semantics = [#tpu.dimension_semantics<parallel>, #tpu.dimension_semantics<parallel>], iteration_bounds = array<i64: 2, 2>, scalar_prefetch = 0 : i64, scratch_operands = 0 : i64, tpu.core_type = #tpu.core_type<tc>, window_params = [{transform_indices = @transform_0, window_bounds = array<i64: 1, 128, 128>}, {transform_indices = @transform_1, window_bounds = array<i64: 1, 128, 32>}, {transform_indices = @transform_2, window_bounds = array<i64: 1, 1, 128>}, {pipeline_mode = #tpu.pipeline_mode<synchronous>, transform_indices = @transform_3, window_bounds = array<i64: 128, 32>}, {pipeline_mode = #tpu.pipeline_mode<synchronous>, transform_indices = @transform_4, window_bounds = array<i64: 1, 32>}, {pipeline_mode = #tpu.pipeline_mode<synchronous>, transform_indices = @transform_5, window_bounds = array<i64: 32, 128>}, {pipeline_mode = #tpu.pipeline_mode<synchronous>, transform_indices = @transform_6, window_bounds = array<i64: 1, 128>}, {transform_indices = @transform_7, window_bounds = array<i64: 1, 128, 128>}]} {
    %c0 = arith.constant 0 : index
    %c0_0 = arith.constant 0 : index
    %c0_1 = arith.constant 0 : index
    %0 = vector.load %arg2[%c0, %c0_0, %c0_1] : memref<1x128x128xbf16, #tpu.memory_space<vmem>>, vector<1x128x128xbf16>
    %1 = vector.shape_cast %0 : vector<1x128x128xbf16> to vector<128x128xbf16>
    %2 = arith.extf %1 : vector<128x128xbf16> to vector<128x128xf32>
    %c0_2 = arith.constant 0 : index
    %c0_3 = arith.constant 0 : index
    %c0_4 = arith.constant 0 : index
    %3 = vector.load %arg4[%c0_2, %c0_3, %c0_4] : memref<1x1x128xf32, #tpu.memory_space<vmem>>, vector<1x1x128xf32>
    %4 = vector.shape_cast %3 : vector<1x1x128xf32> to vector<1x128xf32>
    %5 = vector.broadcast %4 : vector<1x128xf32> to vector<128x128xf32>
    %6 = arith.mulf %2, %5 : vector<128x128xf32>
    %7 = arith.truncf %6 : vector<128x128xf32> to vector<128x128xbf16>
    %c0_5 = arith.constant 0 : index
    %c0_6 = arith.constant 0 : index
    %8 = vector.load %arg5[%c0_5, %c0_6] : memref<128x32xbf16, #tpu.memory_space<vmem>>, vector<128x32xbf16>
    %cst = arith.constant dense<0.000000e+00> : vector<128x32xf32>
    %9 = tpu.matmul %7, %8, %cst {dimension_numbers = #tpu.dot_dimension_numbers<[1], [0], [0], [1], [0, 0, 1, 1], [], []>} : vector<128x128xbf16>, vector<128x32xbf16>, vector<128x32xf32> -> vector<128x32xf32>
    %c0_7 = arith.constant 0 : index
    %c0_8 = arith.constant 0 : index
    %10 = vector.load %arg6[%c0_7, %c0_8] : memref<1x32xf32, #tpu.memory_space<vmem>>, vector<1x32xf32>
    %11 = vector.broadcast %10 : vector<1x32xf32> to vector<128x32xf32>
    %12 = arith.addf %9, %11 : vector<128x32xf32>
    %c0_9 = arith.constant 0 : index
    %c0_10 = arith.constant 0 : index
    %c0_11 = arith.constant 0 : index
    %13 = vector.load %arg3[%c0_9, %c0_10, %c0_11] : memref<1x128x32xbf16, #tpu.memory_space<vmem>>, vector<1x128x32xbf16>
    %14 = vector.shape_cast %13 : vector<1x128x32xbf16> to vector<128x32xbf16>
    %15 = arith.extf %14 : vector<128x32xbf16> to vector<128x32xf32>
    %16 = arith.addf %12, %15 : vector<128x32xf32>
    %17 = arith.truncf %16 : vector<128x32xf32> to vector<128x32xbf16>
    %c0_12 = arith.constant 0 : index
    %c0_13 = arith.constant 0 : index
    %18 = vector.load %arg7[%c0_12, %c0_13] : memref<32x128xbf16, #tpu.memory_space<vmem>>, vector<32x128xbf16>
    %cst_14 = arith.constant dense<0.000000e+00> : vector<128x128xf32>
    %19 = tpu.matmul %17, %18, %cst_14 {dimension_numbers = #tpu.dot_dimension_numbers<[1], [0], [0], [1], [0, 0, 1, 1], [], []>} : vector<128x32xbf16>, vector<32x128xbf16>, vector<128x128xf32> -> vector<128x128xf32>
    %c0_15 = arith.constant 0 : index
    %c0_16 = arith.constant 0 : index
    %20 = vector.load %arg8[%c0_15, %c0_16] : memref<1x128xf32, #tpu.memory_space<vmem>>, vector<1x128xf32>
    %21 = vector.broadcast %20 : vector<1x128xf32> to vector<128x128xf32>
    %22 = arith.addf %19, %21 : vector<128x128xf32>
    %23 = arith.negf %22 : vector<128x128xf32>
    %24 = math.exp %23 : vector<128x128xf32>
    %cst_17 = arith.constant 1.000000e+00 : f32
    %25 = vector.broadcast %cst_17 : f32 to vector<128x128xf32>
    %26 = arith.addf %25, %24 : vector<128x128xf32>
    %27 = arith.divf %25, %26 : vector<128x128xf32>
    %28 = arith.mulf %22, %27 : vector<128x128xf32>
    %29 = arith.truncf %28 : vector<128x128xf32> to vector<128x128xbf16>
    %c0_18 = arith.constant 0 : index
    %c0_19 = arith.constant 0 : index
    %c0_20 = arith.constant 0 : index
    %30 = vector.load %arg9[%c0_18, %c0_19, %c0_20] : memref<1x128x128xbf16, #tpu.memory_space<vmem>>, vector<1x128x128xbf16>
    %31 = vector.shape_cast %30 : vector<1x128x128xbf16> to vector<128x128xbf16>
    %32 = vector.shape_cast %29 : vector<128x128xbf16> to vector<1x128x128xbf16>
    tpu.vector_store %arg9[%c0_18, %c0_19, %c0_20], %32 {strides = array<i32>} : memref<1x128x128xbf16, #tpu.memory_space<vmem>>, vector<1x128x128xbf16>,
    return
  }
  func.func @transform_0(%arg0: i32, %arg1: i32) -> (i32, i32, i32) {
    %c0_i32 = arith.constant 0 : i32
    %c0_i32_0 = arith.constant 0 : i32
    return %arg0, %arg1, %c0_i32 : i32, i32, i32
  }
  func.func @transform_1(%arg0: i32, %arg1: i32) -> (i32, i32, i32) {
    %c0_i32 = arith.constant 0 : i32
    %c0_i32_0 = arith.constant 0 : i32
    return %arg0, %arg1, %c0_i32 : i32, i32, i32
  }
  func.func @transform_2(%arg0: i32, %arg1: i32) -> (i32, i32, i32) {
    %c0_i32 = arith.constant 0 : i32
    %c0_i32_0 = arith.constant 0 : i32
    %c0_i32_1 = arith.constant 0 : i32
    return %arg0, %c0_i32, %c0_i32_0 : i32, i32, i32
  }
  func.func @transform_3(%arg0: i32, %arg1: i32) -> (i32, i32) {
    %c0_i32 = arith.constant 0 : i32
    %c0_i32_0 = arith.constant 0 : i32
    %c0_i32_1 = arith.constant 0 : i32
    return %c0_i32, %c0_i32_0 : i32, i32
  }
  func.func @transform_4(%arg0: i32, %arg1: i32) -> (i32, i32) {
    %c0_i32 = arith.constant 0 : i32
    %c0_i32_0 = arith.constant 0 : i32
    %c0_i32_1 = arith.constant 0 : i32
    return %c0_i32, %c0_i32_0 : i32, i32
  }
  func.func @transform_5(%arg0: i32, %arg1: i32) -> (i32, i32) {
    %c0_i32 = arith.constant 0 : i32
    %c0_i32_0 = arith.constant 0 : i32
    %c0_i32_1 = arith.constant 0 : i32
    return %c0_i32, %c0_i32_0 : i32, i32
  }
  func.func @transform_6(%arg0: i32, %arg1: i32) -> (i32, i32) {
    %c0_i32 = arith.constant 0 : i32
    %c0_i32_0 = arith.constant 0 : i32
    %c0_i32_1 = arith.constant 0 : i32
    return %c0_i32, %c0_i32_0 : i32, i32
  }
  func.func @transform_7(%arg0: i32, %arg1: i32) -> (i32, i32, i32) {
    %c0_i32 = arith.constant 0 : i32
    %c0_i32_0 = arith.constant 0 : i32
    return %arg0, %arg1, %c0_i32 : i32, i32, i32
  }
}

</mosaic_0001>

<bundles_post_ra>
// kernel: deepfake_encoder_forward.4
= control target key start
LH: loop header
LB: loop body
LE: loop exit
PB: predicated region body
PF: predicated region fallthrough
CT: control target
= control target key end

     0   :  { %s2456_s15 = smov 0   ;;  %s4225_s0 = inlined_call_operand.vmem [shape: bf16[2,16,16,128], index: 0, kind: input, shape index: {}]   ;;  %s4226_s1 = inlined_call_operand.vmem [shape: f32[3,3,128], index: 1, kind: input, shape index: {}]   ;;  %s4227_s2 = inlined_call_operand.vmem [shape: f32[1,128], index: 2, kind: input, shape index: {}]   ;;  %s4228_s3 = inlined_call_operand.vmem [shape: bf16[2,256,128], index: 3, kind: output, shape index: {0}]   ;;  %s4229_s4 = inlined_call_operand.vmem [shape: f32[2,1,128], index: 4, kind: output, shape index: {1}]  }
   0x1 LB: > { %s2015_s16 = sadd.s32 4294967295, %s2428_s15   ;;  %p2019_p0 = scmp.ge.s32.totalorder %s2428_s15, 1  ;;  %s2428_s15 = sphi %s2456_s15, %s15_s15  }
   0x2   : > { %p165_p1 = scmp.lt.s32.totalorder %s2428_s15, 3 }
   0x4   : > { %p166_p2 = pnand %p2019_p0, %p165_p1 }
   0x6   : > { %169 = sbr.rel (%p166_p2) target bundleno = 331 (0x14b), region = 32 }
   0xd   : > { %p194_p3 = scmp.lt.s32.totalorder %s2015_s16, 1  ;;  %v2430_v0 = vmov 0   ;;  %vm394_vm0 = vcmask 1040384   ;;  %v2489_v8 = vld [vmem:[%s4226_s1] ss:$0 sm:$0xff]  ;;  %vm629_vm1 = vcmask 1046528  }
   0xe   : > { %v2466_v1 = vunpack.c.l.bf16 %v2430_v0  ;;  %v331_v2 = vunpack.c.h.bf16 %v2430_v0  ;;  %v2494_v9 = vld [vmem:[%s4226_s1 + $0x1] ss:$0 sm:$0xff]  ;;  %v2502_v12 = vld [vmem:[%s4226_s1 + $0x2] ss:$0 sm:$0xff] }
   0xf   : > { %s4911_s16 = smov (!%p194_p3, %s2015_s16), 1  ;;  %4428 = vst [vmem:[#allocation6_spill] sm:$0xff] %v2502_v12 }
  0x10   : > { %4424 = vst [vmem:[#allocation2_spill] sm:$0xff] %v2466_v1  ;;  %s2121_s17 = sshll.u32 %s4911_s16, 7  ;;  %v2470_v3 = vrot.slane %v2466_v1, 7  ;;  %v396_v4 = vrot.slane %v331_v2, 7  ;;  %v2480_v5 = vrot.slane %v2466_v1, 1  ;;  %v631_v6 = vrot.slane %v331_v2, 1  ;;  %s206_s22 = scalar_lea.vmem %s4229_s4, %s4911_s16 }
  0x11   : > { %s2477_s20 = scalar_lea.vmem %s4225_s0, %s2121_s17  ;;  %v565_v17 = vmul.f32 %v2494_v9, %v2466_v1  ;;  %v2523_v26 = vmul.f32 %v2494_v9, %v331_v2 }
  0x12   : > { %4425 = vst [vmem:[#allocation3_spill] sm:$0xff] %v2470_v3  ;;  %4426 = vst [vmem:[#allocation4_spill] sm:$0xff] %v2480_v5  ;;  %v2484_v7 = vsel %vm394_vm0, 0.0, %v2470_v3  ;;  %v208_v10 = vld [vmem:[%s2477_s20] sm:$0xff]   ;;  %v397_v11 = vsel %vm394_vm0, %v2470_v3, %v396_v4  ;;  %v210_v13 = vld [vmem:[%s2477_s20 + $0x8] sm:$0xff]   ;;  %v632_v18 = vsel %vm629_vm1, %v2480_v5, %v631_v6  ;;  %v2526_v27 = vsel %vm629_vm1, %v631_v6, 0.0 }
  0x13   : > { %4427 = vst [vmem:[#allocation5_spill] sm:$0xff] %v2484_v7  ;;  %v212_v14 = vld [vmem:[%s2477_s20 + $0x10] sm:$0xff]   ;;  %v214_v15 = vld [vmem:[%s2477_s20 + $0x18] sm:$0xff]   ;;  %v496_v16 = vmul.f32 %v2489_v8, %v2484_v7  ;;  %v216_v19 = vld [vmem:[%s2477_s20 + $0x20] sm:$0xff]   ;;  %v2520_v25 = vmul.f32 %v2489_v8, %v397_v11  ;;  %v2532_v31 = vmul.f32 %v2502_v12, %v632_v18  ;;  %v2539_v36 = vunpack.c.l.bf16 %v208_v10 }
  0x14   : > { %v218_v20 = vld [vmem:[%s2477_s20 + $0x28] sm:$0xff]   ;;  %v220_v21 = vld [vmem:[%s2477_s20 + $0x30] sm:$0xff]   ;;  %v222_v22 = vld [vmem:[%s2477_s20 + $0x38] sm:$0xff]   ;;  %4430 = vst [vmem:[#allocation8_spill] sm:$0xff] %v2523_v26  ;;  %v2541_v37 = vunpack.c.h.bf16 %v208_v10  ;;  %v2545_v39 = vunpack.c.l.bf16 %v210_v13  ;;  %v2549_v41 = vunpack.c.h.bf16 %v210_v13  ;;  %v2551_v42 = vunpack.c.l.bf16 %v212_v14 }
  0x15   : > { %v224_v23 = vld [vmem:[%s2477_s20 + $0x40] sm:$0xff]   ;;  %v226_v24 = vld [vmem:[%s2477_s20 + $0x48] sm:$0xff]   ;;  %4429 = vst [vmem:[#allocation7_spill] sm:$0xff] %v2520_v25  ;;  %4431 = vst [vmem:[#allocation9_spill] sm:$0xff] %v2526_v27  ;;  %v2537_v35 = vadd.f32 %v565_v17, %v496_v16  ;;  %v2553_v43 = vunpack.c.h.bf16 %v212_v14  ;;  %v2555_v44 = vunpack.c.l.bf16 %v214_v15  ;;  %v2557_v45 = vunpack.c.h.bf16 %v214_v15 }
  0x16   : > { %v228_v28 = vld [vmem:[%s2477_s20 + $0x50] sm:$0xff]   ;;  %v230_v29 = vld [vmem:[%s2477_s20 + $0x58] sm:$0xff]   ;;  %v232_v30 = vld [vmem:[%s2477_s20 + $0x60] sm:$0xff]   ;;  %4432 = vst [vmem:[#allocation10_spill] sm:$0xff] %v2532_v31  ;;  %v2559_v46 = vunpack.c.l.bf16 %v216_v19  ;;  %v2561_v47 = vunpack.c.h.bf16 %v216_v19  ;;  %v2563_v48 = vunpack.c.l.bf16 %v218_v20  ;;  %v2565_v49 = vunpack.c.h.bf16 %v218_v20 }
  0x17   : > { %v234_v32 = vld [vmem:[%s2477_s20 + $0x68] sm:$0xff]   ;;  %v236_v33 = vld [vmem:[%s2477_s20 + $0x70] sm:$0xff]   ;;  %v2239_v34 = vld [vmem:[%s2477_s20 + $0x78] sm:$0xff]   ;;  %4433 = vst [vmem:[#allocation11_spill] sm:$0xff] %v2537_v35  ;;  %v2567_v50 = vunpack.c.l.bf16 %v220_v21  ;;  %v2569_v51 = vunpack.c.h.bf16 %v220_v21  ;;  %v2571_v52 = vunpack.c.l.bf16 %v222_v22  ;;  %v2573_v53 = vunpack.c.h.bf16 %v222_v22  ;;  %s4155_s20 = scalar_lea.vmem %s4228_s3, %s2121_s17 }
  0x18   : > { %4434 = vst [vmem:[#allocation12_spill] sm:$0xff] %v2539_v36  ;;  %4435 = vst [vmem:[#allocation13_spill] sm:$0xff] %v2541_v37  ;;  %v2543_v38 = vunpack.c.l.bf16 %v2239_v34  ;;  %v2547_v40 = vunpack.c.h.bf16 %v2239_v34  ;;  %v2575_v54 = vunpack.c.l.bf16 %v224_v23  ;;  %v2577_v55 = vunpack.c.h.bf16 %v224_v23 }
  0x19   : > { %4437 = vst [vmem:[#allocation15_spill] sm:$0xff] %v2545_v39  ;;  %4439 = vst [vmem:[#allocation17_spill] sm:$0xff] %v2549_v41  ;;  %v2579_v56 = vunpack.c.l.bf16 %v226_v24  ;;  %v2581_v57 = vunpack.c.h.bf16 %v226_v24  ;;  %v2583_v58 = vunpack.c.l.bf16 %v228_v28  ;;  %v2585_v59 = vunpack.c.h.bf16 %v228_v28 }
  0x1a   : > { %4436 = vst [vmem:[#allocation14_spill] sm:$0xff] %v2543_v38  ;;  %4438 = vst [vmem:[#allocation16_spill] sm:$0xff] %v2547_v40  ;;  %v2587_v60 = vunpack.c.l.bf16 %v230_v29  ;;  %v2589_v61 = vunpack.c.h.bf16 %v230_v29  ;;  %v2591_v62 = vunpack.c.l.bf16 %v232_v30  ;;  %v399_v63 = vrot.slane %v2541_v37, 7 }
  0x1b   : > { %4440 = vst [vmem:[#allocation18_spill] sm:$0xff] %v2551_v42  ;;  %4441 = vst [vmem:[#allocation19_spill] sm:$0xff] %v2553_v43  ;;  %v2594_v0 = vunpack.c.h.bf16 %v232_v30  ;;  %v2596_v2 = vunpack.c.l.bf16 %v234_v32  ;;  %v402_v4 = vrot.slane %v2549_v41, 7  ;;  %v405_v6 = vrot.slane %v2553_v43, 7 }
  0x1c   : > { %4442 = vst [vmem:[#allocation20_spill] sm:$0xff] %v2555_v44  ;;  %4443 = vst [vmem:[#allocation21_spill] sm:$0xff] %v2557_v45  ;;  %v2600_v10 = vunpack.c.h.bf16 %v234_v32  ;;  %v398_v11 = vrot.slane %v2539_v36, 7  ;;  %v408_v13 = vrot.slane %v2557_v45, 7  ;;  %v411_v14 = vrot.slane %v2561_v47, 7 }
  0x1d   : > { %4444 = vst [vmem:[#allocation22_spill] sm:$0xff] %v2559_v46  ;;  %4445 = vst [vmem:[#allocation23_spill] sm:$0xff] %v2561_v47  ;;  %v2605_v15 = vunpack.c.l.bf16 %v236_v33  ;;  %v401_v16 = vrot.slane %v2545_v39, 7  ;;  %v404_v17 = vrot.slane %v2551_v42, 7  ;;  %v414_v18 = vrot.slane %v2565_v49, 7 }
  0x1e   : > { %4446 = vst [vmem:[#allocation24_spill] sm:$0xff] %v2563_v48  ;;  %4447 = vst [vmem:[#allocation25_spill] sm:$0xff] %v2565_v49  ;;  %v2610_v19 = vunpack.c.h.bf16 %v236_v33  ;;  %v2613_v20 = vsel %vm394_vm0, %v398_v11, %v399_v63  ;;  %v407_v21 = vrot.slane %v2555_v44, 7  ;;  %v410_v22 = vrot.slane %v2559_v46, 7 }
  0x1f   : > { %4448 = vst [vmem:[#allocation26_spill] sm:$0xff] %v2567_v50  ;;  %4449 = vst [vmem:[#allocation27_spill] sm:$0xff] %v2569_v51  ;;  %v2618_v23 = vsel %vm394_vm0, %v401_v16, %v402_v4  ;;  %v2621_v24 = vsel %vm394_vm0, %v404_v17, %v405_v6  ;;  %v413_v28 = vrot.slane %v2563_v48, 7  ;;  %v417_v29 = vrot.slane %v2569_v51, 7 }
  0x20   : > { %4450 = vst [vmem:[#allocation28_spill] sm:$0xff] %v2571_v52  ;;  %4451 = vst [vmem:[#allocation29_spill] sm:$0xff] %v2573_v53  ;;  %v2626_v30 = vsel %vm394_vm0, %v407_v21, %v408_v13  ;;  %v2629_v32 = vsel %vm394_vm0, %v410_v22, %v411_v14  ;;  %v416_v33 = vrot.slane %v2567_v50, 7  ;;  %v420_v34 = vrot.slane %v2573_v53, 7 }
  0x21   : > { %4452 = vst [vmem:[#allocation30_spill] sm:$0xff] %v2575_v54  ;;  %4453 = vst [vmem:[#allocation31_spill] sm:$0xff] %v2577_v55  ;;  %v2634_v63 = vsel %vm394_vm0, %v413_v28, %v414_v18  ;;  %v419_v4 = vrot.slane %v2571_v52, 7  ;;  %v423_v6 = vrot.slane %v2577_v55, 7  ;;  %v426_v5 = vrot.slane %v2581_v57, 7 }
  0x22   : > { %4454 = vst [vmem:[#allocation32_spill] sm:$0xff] %v2579_v56  ;;  %4455 = vst [vmem:[#allocation33_spill] sm:$0xff] %v2581_v57  ;;  %v422_v1 = vrot.slane %v2575_v54, 7  ;;  %v429_v13 = vrot.slane %v2585_v59, 7  ;;  %v432_v14 = vrot.slane %v2589_v61, 7  ;;  %v435_v3 = vrot.slane %v2594_v0, 7 }
  0x23   : > { %4456 = vst [vmem:[#allocation34_spill] sm:$0xff] %v2583_v58  ;;  %4457 = vst [vmem:[#allocation35_spill] sm:$0xff] %v2585_v59  ;;  %v2644_v7 = vsel %vm394_vm0, %v416_v33, %v417_v29  ;;  %v425_v18 = vrot.slane %v2579_v56, 7  ;;  %v438_v38 = vrot.slane %v2600_v10, 7  ;;  %v441_v40 = vrot.slane %v2610_v19, 7 }
  0x24   : > { %4458 = vst [vmem:[#allocation36_spill] sm:$0xff] %v2587_v60  ;;  %4459 = vst [vmem:[#allocation37_spill] sm:$0xff] %v2589_v61  ;;  %v2650_v31 = vsel %vm394_vm0, %v419_v4, %v420_v34  ;;  %v428_v35 = vrot.slane %v2583_v58, 7  ;;  %v431_v12 = vrot.slane %v2587_v60, 7  ;;  %v434_v27 = vrot.slane %v2591_v62, 7 }
  0x25   : > { %4460 = vst [vmem:[#allocation38_spill] sm:$0xff] %v2591_v62  ;;  %4461 = vst [vmem:[#allocation39_spill] sm:$0xff] %v2594_v0  ;;  %v2656_v26 = vsel %vm394_vm0, %v422_v1, %v423_v6  ;;  %v2659_v29 = vsel %vm394_vm0, %v425_v18, %v426_v5  ;;  %v437_v25 = vrot.slane %v2596_v2, 7  ;;  %v2673_v62 = vsel %vm394_vm0, 0.0, %v398_v11 }
  0x26   : > { %4462 = vst [vmem:[#allocation40_spill] sm:$0xff] %v2596_v2  ;;  %4463 = vst [vmem:[#allocation41_spill] sm:$0xff] %v2600_v10  ;;  %v440_v10 = vrot.slane %v2605_v15, 7  ;;  %v2667_v34 = vsel %vm394_vm0, %v431_v12, %v432_v14  ;;  %v2670_v0 = vsel %vm394_vm0, %v434_v27, %v435_v3  ;;  %v2688_v14 = vsel %vm394_vm0, 0.0, %v407_v21 }
  0x27   : > { %4464 = vst [vmem:[#allocation42_spill] sm:$0xff] %v2605_v15  ;;  %4465 = vst [vmem:[#allocation43_spill] sm:$0xff] %v2610_v19  ;;  %v2664_v19 = vsel %vm394_vm0, %v428_v35, %v429_v13  ;;  %v2676_v6 = vsel %vm394_vm0, %v437_v25, %v438_v38  ;;  %v2682_v15 = vsel %vm394_vm0, 0.0, %v401_v16  ;;  %v2685_v13 = vsel %vm394_vm0, 0.0, %v404_v17 }
  0x28   : > { %4466 = vst [vmem:[#allocation44_spill] sm:$0xff] %v2613_v20  ;;  %4467 = vst [vmem:[#allocation45_spill] sm:$0xff] %v2618_v23  ;;  %v2679_v5 = vsel %vm394_vm0, %v440_v10, %v441_v40  ;;  %v2691_v3 = vsel %vm394_vm0, 0.0, %v410_v22  ;;  %v2694_v11 = vsel %vm394_vm0, 0.0, %v413_v28  ;;  %v2697_v38 = vsel %vm394_vm0, 0.0, %v416_v33 }
  0x29   : > { %4468 = vst [vmem:[#allocation46_spill] sm:$0xff] %v2621_v24  ;;  %4469 = vst [vmem:[#allocation47_spill] sm:$0xff] %v2626_v30  ;;  %v2700_v40 = vsel %vm394_vm0, 0.0, %v419_v4  ;;  %v2703_v16 = vsel %vm394_vm0, 0.0, %v422_v1  ;;  %v2706_v17 = vsel %vm394_vm0, 0.0, %v425_v18  ;;  %v2709_v21 = vsel %vm394_vm0, 0.0, %v428_v35 }
  0x2a   : > { %4470 = vst [vmem:[#allocation48_spill] sm:$0xff] %v2629_v32  ;;  %4471 = vst [vmem:[#allocation49_spill] sm:$0xff] %v2634_v63  ;;  %v2712_v22 = vsel %vm394_vm0, 0.0, %v431_v12  ;;  %v2715_v28 = vsel %vm394_vm0, 0.0, %v434_v27  ;;  %v2718_v33 = vsel %vm394_vm0, 0.0, %v437_v25  ;;  %v2721_v4 = vsel %vm394_vm0, 0.0, %v440_v10 }
  0x2b   : > { %4472 = vst [vmem:[#allocation50_spill] sm:$0xff] %v2644_v7  ;;  %4473 = vst [vmem:[#allocation51_spill] sm:$0xff] %v2650_v31  ;;  %v498_v1 = vmul.f32 %v2489_v8, %v2673_v62  ;;  %v499_v18 = vmul.f32 %v2489_v8, %v2613_v20  ;;  %v500_v35 = vmul.f32 %v2489_v8, %v2682_v15 }
  0x2c   : > { %4474 = vst [vmem:[#allocation52_spill] sm:$0xff] %v2656_v26  ;;  %4475 = vst [vmem:[#allocation53_spill] sm:$0xff] %v2659_v29  ;;  %v501_v12 = vmul.f32 %v2489_v8, %v2618_v23  ;;  %v502_v27 = vmul.f32 %v2489_v8, %v2685_v13  ;;  %v503_v25 = vmul.f32 %v2489_v8, %v2621_v24 }
  0x2d   : > { %4476 = vst [vmem:[#allocation54_spill] sm:$0xff] %v2664_v19  ;;  %4477 = vst [vmem:[#allocation55_spill] sm:$0xff] %v2667_v34  ;;  %v504_v10 = vmul.f32 %v2489_v8, %v2688_v14  ;;  %v506_v20 = vmul.f32 %v2489_v8, %v2691_v3  ;;  %v508_v23 = vmul.f32 %v2489_v8, %v2694_v11 }
  0x2e   : > { %4478 = vst [vmem:[#allocation56_spill] sm:$0xff] %v2670_v0  ;;  %4479 = vst [vmem:[#allocation57_spill] sm:$0xff] %v2673_v62  ;;  %v505_v62 = vmul.f32 %v2489_v8, %v2626_v30  ;;  %v510_v24 = vmul.f32 %v2489_v8, %v2697_v38  ;;  %v512_v30 = vmul.f32 %v2489_v8, %v2700_v40 }
  0x2f   : > { %4480 = vst [vmem:[#allocation58_spill] sm:$0xff] %v2676_v6  ;;  %4481 = vst [vmem:[#allocation59_spill] sm:$0xff] %v2679_v5 }
  0x30   : > { %4482 = vst [vmem:[#allocation60_spill] sm:$0xff] %v2682_v15  ;;  %4483 = vst [vmem:[#allocation61_spill] sm:$0xff] %v2685_v13  ;;  %v507_v15 = vmul.f32 %v2489_v8, %v2629_v32  ;;  %v509_v13 = vmul.f32 %v2489_v8, %v2634_v63  ;;  %v514_v32 = vmul.f32 %v2489_v8, %v2703_v16 }
  0x31   : > { %4484 = vst [vmem:[#allocation62_spill] sm:$0xff] %v2688_v14  ;;  %4485 = vst [vmem:[#allocation63_spill] sm:$0xff] %v2691_v3  ;;  %v511_v14 = vmul.f32 %v2489_v8, %v2644_v7  ;;  %v513_v3 = vmul.f32 %v2489_v8, %v2650_v31  ;;  %v516_v63 = vmul.f32 %v2489_v8, %v2706_v17 }
  0x32   : > { %4486 = vst [vmem:[#allocation64_spill] sm:$0xff] %v2694_v11  ;;  %4487 = vst [vmem:[#allocation65_spill] sm:$0xff] %v2697_v38  ;;  %v515_v11 = vmul.f32 %v2489_v8, %v2656_v26  ;;  %v517_v38 = vmul.f32 %v2489_v8, %v2659_v29  ;;  %v518_v7 = vmul.f32 %v2489_v8, %v2709_v21 }
  0x33   : > { %4488 = vst [vmem:[#allocation66_spill] sm:$0xff] %v2700_v40  ;;  %4489 = vst [vmem:[#allocation67_spill] sm:$0xff] %v2703_v16  ;;  %v2767_v40 = vmul.f32 %v2489_v8, %v2664_v19  ;;  %v2771_v31 = vmul.f32 %v2489_v8, %v2712_v22  ;;  %v2775_v26 = vmul.f32 %v2489_v8, %v2667_v34 }
  0x34   : > { %4490 = vst [vmem:[#allocation68_spill] sm:$0xff] %v2706_v17  ;;  %4491 = vst [vmem:[#allocation69_spill] sm:$0xff] %v2709_v21  ;;  %v2779_v17 = vmul.f32 %v2489_v8, %v2715_v28  ;;  %v2783_v29 = vmul.f32 %v2489_v8, %v2670_v0  ;;  %v2787_v19 = vmul.f32 %v2489_v8, %v2718_v33 }
  0x35   : > { %4492 = vst [vmem:[#allocation70_spill] sm:$0xff] %v2712_v22  ;;  %4493 = vst [vmem:[#allocation71_spill] sm:$0xff] %v2715_v28  ;;  %v2791_v22 = vmul.f32 %v2489_v8, %v2676_v6  ;;  %v2795_v34 = vmul.f32 %v2489_v8, %v2721_v4  ;;  %v2799_v28 = vmul.f32 %v2489_v8, %v2679_v5 }
  0x36   : > { %4494 = vst [vmem:[#allocation72_spill] sm:$0xff] %v2718_v33  ;;  %4495 = vst [vmem:[#allocation73_spill] sm:$0xff] %v2721_v4  ;;  %v567_v0 = vmul.f32 %v2494_v9, %v2539_v36  ;;  %v568_v21 = vmul.f32 %v2494_v9, %v2541_v37  ;;  %v569_v33 = vmul.f32 %v2494_v9, %v2545_v39 }
  0x37   : > { %4496 = vst [vmem:[#allocation74_spill] sm:$0xff] %v2767_v40  ;;  %4497 = vst [vmem:[#allocation75_spill] sm:$0xff] %v2771_v31  ;;  %v570_v6 = vmul.f32 %v2494_v9, %v2549_v41  ;;  %v571_v4 = vmul.f32 %v2494_v9, %v2551_v42  ;;  %v572_v16 = vmul.f32 %v2494_v9, %v2553_v43 }
  0x38   : > { %4498 = vst [vmem:[#allocation76_spill] sm:$0xff] %v2775_v26  ;;  %4499 = vst [vmem:[#allocation77_spill] sm:$0xff] %v2779_v17  ;;  %v573_v8 = vmul.f32 %v2494_v9, %v2555_v44  ;;  %v574_v5 = vmul.f32 %v2494_v9, %v2557_v45  ;;  %v576_v39 = vmul.f32 %v2494_v9, %v2561_v47  ;;  %v4509_v17 = vld [vmem:[#allocation43_spill] sm:$0xff] }
  0x39   : > { %4500 = vst [vmem:[#allocation78_spill] sm:$0xff] %v2783_v29  ;;  %4501 = vst [vmem:[#allocation79_spill] sm:$0xff] %v2787_v19  ;;  %v577_v41 = vmul.f32 %v2494_v9, %v2563_v48  ;;  %v578_v42 = vmul.f32 %v2494_v9, %v2565_v49  ;;  %v579_v43 = vmul.f32 %v2494_v9, %v2567_v50  ;;  %v4507_v19 = vld [vmem:[#allocation41_spill] sm:$0xff]  ;;  %v4508_v29 = vld [vmem:[#allocation42_spill] sm:$0xff] }
  0x3a   : > { %4502 = vst [vmem:[#allocation80_spill] sm:$0xff] %v2791_v22  ;;  %4503 = vst [vmem:[#allocation81_spill] sm:$0xff] %v2795_v34  ;;  %v580_v44 = vmul.f32 %v2494_v9, %v2569_v51  ;;  %v581_v45 = vmul.f32 %v2494_v9, %v2571_v52  ;;  %v583_v47 = vmul.f32 %v2494_v9, %v2575_v54  ;;  %v4505_v34 = vld [vmem:[#allocation38_spill] sm:$0xff]  ;;  %v4506_v22 = vld [vmem:[#allocation39_spill] sm:$0xff] }
  0x3b   : > { %4504 = vst [vmem:[#allocation82_spill] sm:$0xff] %v2799_v28  ;;  %v575_v28 = vmul.f32 %v2494_v9, %v2559_v46  ;;  %v582_v46 = vmul.f32 %v2494_v9, %v2573_v53  ;;  %v584_v48 = vmul.f32 %v2494_v9, %v2577_v55  ;;  %v585_v49 = vmul.f32 %v2494_v9, %v2579_v56  ;;  %v4510_v26 = vld [vmem:[#allocation7_spill] sm:$0xff] }
  0x3c   : > { %v586_v50 = vmul.f32 %v2494_v9, %v2581_v57  ;;  %v587_v51 = vmul.f32 %v2494_v9, %v2583_v58  ;;  %v588_v52 = vmul.f32 %v2494_v9, %v2585_v59  ;;  %v589_v53 = vmul.f32 %v2494_v9, %v2587_v60 }
  0x3d   : > { %v590_v54 = vmul.f32 %v2494_v9, %v2589_v61  ;;  %v591_v55 = vmul.f32 %v2494_v9, %v4505_v34  ;;  %v592_v56 = vmul.f32 %v2494_v9, %v4506_v22  ;;  %v593_v57 = vmul.f32 %v2494_v9, %v2596_v2  ;;  %v4511_v61 = vld [vmem:[#allocation8_spill] sm:$0xff] }
  0x3e   : > { %v594_v58 = vmul.f32 %v2494_v9, %v4507_v19  ;;  %v595_v59 = vmul.f32 %v2494_v9, %v4508_v29  ;;  %v596_v60 = vmul.f32 %v2494_v9, %v4509_v17  ;;  %v2863_v31 = vadd.f32 %v4511_v61, %v4510_v26 }
  0x3f   : > { %v2865_v34 = vadd.f32 %v567_v0, %v498_v1  ;;  %v2867_v40 = vadd.f32 %v568_v21, %v499_v18  ;;  %v2869_v22 = vadd.f32 %v569_v33, %v500_v35  ;;  %v2871_v2 = vadd.f32 %v570_v6, %v501_v12  ;;  %v4536_v18 = vld [vmem:[#allocation20_spill] sm:$0xff]  ;;  %v4537_v35 = vld [vmem:[#allocation21_spill] sm:$0xff] }
  0x40   : > { %v2873_v37 = vadd.f32 %v571_v4, %v502_v27  ;;  %v2875_v19 = vadd.f32 %v572_v16, %v503_v25  ;;  %v2877_v29 = vadd.f32 %v573_v8, %v504_v10  ;;  %v2879_v36 = vadd.f32 %v574_v5, %v505_v62  ;;  %v4539_v25 = vld [vmem:[#allocation23_spill] sm:$0xff]  ;;  %v4540_v10 = vld [vmem:[#allocation24_spill] sm:$0xff] }
  0x41   : > { %v2881_v9 = vadd.f32 %v575_v28, %v506_v20  ;;  %v2883_v26 = vadd.f32 %v576_v39, %v507_v15  ;;  %v2885_v61 = vadd.f32 %v577_v41, %v508_v23  ;;  %v2887_v0 = vadd.f32 %v578_v42, %v509_v13  ;;  %v4512_v42 = vld [vmem:[#allocation12_spill] sm:$0xff] }
  0x42   : > { %v2889_v21 = vadd.f32 %v579_v43, %v510_v24  ;;  %v2891_v6 = vadd.f32 %v580_v44, %v511_v14  ;;  %v2893_v33 = vadd.f32 %v581_v45, %v512_v30  ;;  %v2895_v16 = vadd.f32 %v582_v46, %v513_v3  ;;  %v4513_v43 = vld [vmem:[#allocation13_spill] sm:$0xff]  ;;  %v4514_v44 = vld [vmem:[#allocation74_spill] sm:$0xff]  ;;  %v4515_v45 = vld [vmem:[#allocation75_spill] sm:$0xff] }
  0x43   : > { %v2897_v4 = vadd.f32 %v583_v47, %v514_v32  ;;  %v2899_v62 = vadd.f32 %v584_v48, %v515_v11  ;;  %v2901_v20 = vadd.f32 %v585_v49, %v516_v63  ;;  %v2903_v39 = vadd.f32 %v586_v50, %v517_v38  ;;  %v4517_v47 = vld [vmem:[#allocation76_spill] sm:$0xff]  ;;  %v4519_v48 = vld [vmem:[#allocation77_spill] sm:$0xff]  ;;  %v4521_v50 = vld [vmem:[#allocation78_spill] sm:$0xff] }
  0x44   : > { %v2905_v41 = vadd.f32 %v587_v51, %v518_v7  ;;  %v633_v15 = vrot.slane %v4512_v42, 1  ;;  %v634_v23 = vrot.slane %v4513_v43, 1  ;;  %v2910_v24 = vadd.f32 %v588_v52, %v4514_v44  ;;  %v4523_v7 = vld [vmem:[#allocation79_spill] sm:$0xff]  ;;  %v4525_v63 = vld [vmem:[#allocation80_spill] sm:$0xff]  ;;  %v4527_v52 = vld [vmem:[#allocation81_spill] sm:$0xff] }
  0x45   : > { %v2913_v46 = vadd.f32 %v589_v53, %v4515_v45  ;;  %v2916_v30 = vadd.f32 %v590_v54, %v4517_v47  ;;  %v2919_v49 = vadd.f32 %v591_v55, %v4519_v48  ;;  %v2922_v32 = vadd.f32 %v592_v56, %v4521_v50  ;;  %v4529_v53 = vld [vmem:[#allocation82_spill] sm:$0xff]  ;;  %v4531_v54 = vld [vmem:[#allocation15_spill] sm:$0xff]  ;;  %v4532_v11 = vld [vmem:[#allocation17_spill] sm:$0xff] }
  0x46   : > { %v2925_v51 = vadd.f32 %v593_v57, %v4523_v7  ;;  %v2928_v5 = vadd.f32 %v594_v58, %v4525_v63  ;;  %v2931_v13 = vadd.f32 %v595_v59, %v4527_v52  ;;  %v2934_v14 = vadd.f32 %v596_v60, %v4529_v53  ;;  %v4533_v38 = vld [vmem:[#allocation18_spill] sm:$0xff]  ;;  %v4535_v57 = vld [vmem:[#allocation19_spill] sm:$0xff]  ;;  %v4541_v44 = vld [vmem:[#allocation25_spill] sm:$0xff] }
  0x47   : > { %4516 = vst [vmem:[#allocation7_spill] sm:$0xff] %v2913_v46  ;;  %4518 = vst [vmem:[#allocation8_spill] sm:$0xff] %v2916_v30  ;;  %v636_v3 = vrot.slane %v4531_v54, 1  ;;  %v637_v55 = vrot.slane %v4532_v11, 1  ;;  %v639_v28 = vrot.slane %v4533_v38, 1  ;;  %v2940_v56 = vsel %vm629_vm1, %v633_v15, %v634_v23  ;;  %v4538_v59 = vld [vmem:[#allocation22_spill] sm:$0xff] }
  0x48   : > { %4520 = vst [vmem:[#allocation74_spill] sm:$0xff] %v2919_v49  ;;  %4522 = vst [vmem:[#allocation75_spill] sm:$0xff] %v2922_v32  ;;  %v640_v1 = vrot.slane %v4535_v57, 1  ;;  %v642_v58 = vrot.slane %v4536_v18, 1  ;;  %v643_v12 = vrot.slane %v4537_v35, 1  ;;  %v645_v27 = vrot.slane %v4538_v59, 1 }
  0x49   : > { %4524 = vst [vmem:[#allocation76_spill] sm:$0xff] %v2925_v51  ;;  %4526 = vst [vmem:[#allocation77_spill] sm:$0xff] %v2928_v5  ;;  %v646_v60 = vrot.slane %v4539_v25, 1  ;;  %v648_v8 = vrot.slane %v4540_v10, 1  ;;  %v649_v45 = vrot.slane %v4541_v44, 1  ;;  %v4542_v47 = vld [vmem:[#allocation26_spill] sm:$0xff] }
  0x4a   : > { %4528 = vst [vmem:[#allocation78_spill] sm:$0xff] %v2931_v13  ;;  %4530 = vst [vmem:[#allocation79_spill] sm:$0xff] %v2934_v14  ;;  %v651_v48 = vrot.slane %v4542_v47, 1  ;;  %v4543_v50 = vld [vmem:[#allocation27_spill] sm:$0xff]  ;;  %v4544_v15 = vld [vmem:[#allocation28_spill] sm:$0xff] }
  0x4b   : > { %4534 = vst [vmem:[#allocation80_spill] sm:$0xff] %v2940_v56  ;;  %v652_v7 = vrot.slane %v4543_v50, 1  ;;  %v654_v63 = vrot.slane %v4544_v15, 1  ;;  %v4545_v52 = vld [vmem:[#allocation29_spill] sm:$0xff]  ;;  %v4546_v57 = vld [vmem:[#allocation30_spill] sm:$0xff]  ;;  %v4547_v38 = vld [vmem:[#allocation31_spill] sm:$0xff] }
  0x4c   : > { %v655_v53 = vrot.slane %v4545_v52, 1  ;;  %v657_v18 = vrot.slane %v4546_v57, 1  ;;  %v658_v35 = vrot.slane %v4547_v38, 1  ;;  %v4548_v11 = vld [vmem:[#allocation32_spill] sm:$0xff]  ;;  %v4549_v54 = vld [vmem:[#allocation33_spill] sm:$0xff]  ;;  %v4550_v43 = vld [vmem:[#allocation34_spill] sm:$0xff] }
  0x4d   : > { %v660_v59 = vrot.slane %v4548_v11, 1  ;;  %v661_v25 = vrot.slane %v4549_v54, 1  ;;  %v663_v10 = vrot.slane %v4550_v43, 1  ;;  %v4551_v42 = vld [vmem:[#allocation35_spill] sm:$0xff]  ;;  %v4552_v14 = vld [vmem:[#allocation36_spill] sm:$0xff]  ;;  %v4553_v13 = vld [vmem:[#allocation37_spill] sm:$0xff]  ;;  %v2966_v11 = vsel %vm629_vm1, %v636_v3, %v637_v55 }
  0x4e   : > { %v664_v44 = vrot.slane %v4551_v42, 1  ;;  %v666_v47 = vrot.slane %v4552_v14, 1  ;;  %v667_v50 = vrot.slane %v4553_v13, 1  ;;  %v4554_v5 = vld [vmem:[#allocation38_spill] sm:$0xff]  ;;  %v4555_v51 = vld [vmem:[#allocation39_spill] sm:$0xff]  ;;  %v4556_v32 = vld [vmem:[#allocation40_spill] sm:$0xff]  ;;  %v2969_v54 = vsel %vm629_vm1, %v639_v28, %v640_v1 }
  0x4f   : > { %v669_v15 = vrot.slane %v4554_v5, 1  ;;  %v670_v52 = vrot.slane %v4555_v51, 1  ;;  %v672_v57 = vrot.slane %v4556_v32, 1  ;;  %v4557_v49 = vld [vmem:[#allocation41_spill] sm:$0xff]  ;;  %4558 = vst [vmem:[#allocation81_spill] sm:$0xff] %v2966_v11  ;;  %4559 = vst [vmem:[#allocation82_spill] sm:$0xff] %v2969_v54  ;;  %v2974_v13 = vsel %vm629_vm1, %v642_v58, %v643_v12 }
  0x50   : > { %v673_v38 = vrot.slane %v4557_v49, 1  ;;  %v4560_v43 = vld [vmem:[#allocation42_spill] sm:$0xff]  ;;  %v676_v14 = vrot.slane %v4509_v17, 1  ;;  %4561 = vst [vmem:[#allocation83_spill] sm:$0xff] %v2974_v13  ;;  %v2977_v5 = vsel %vm629_vm1, %v645_v27, %v646_v60  ;;  %v2980_v32 = vsel %vm629_vm1, %v648_v8, %v649_v45  ;;  %v4590_v30 = vld [vmem:[#allocation11_spill] sm:$0xff] }
  0x51   : > { %v675_v42 = vrot.slane %v4560_v43, 1  ;;  %4562 = vst [vmem:[#allocation84_spill] sm:$0xff] %v2977_v5  ;;  %4563 = vst [vmem:[#allocation85_spill] sm:$0xff] %v2980_v32  ;;  %v2983_v49 = vsel %vm629_vm1, %v651_v48, %v652_v7  ;;  %v2986_v3 = vsel %vm629_vm1, %v654_v63, %v655_v53  ;;  %v2989_v28 = vsel %vm629_vm1, %v657_v18, %v658_v35  ;;  %v4589_v43 = vld [vmem:[#allocation6_spill] sm:$0xff] }
  0x52   : > { %4564 = vst [vmem:[#allocation86_spill] sm:$0xff] %v2983_v49  ;;  %4565 = vst [vmem:[#allocation87_spill] sm:$0xff] %v2986_v3  ;;  %v2992_v17 = vsel %vm629_vm1, %v660_v59, %v661_v25  ;;  %v2995_v58 = vsel %vm629_vm1, %v663_v10, %v664_v44  ;;  %v2998_v27 = vsel %vm629_vm1, %v666_v47, %v667_v50  ;;  %v3007_v63 = vsel %vm629_vm1, %v634_v23, 0.0 }
  0x53   : > { %4566 = vst [vmem:[#allocation88_spill] sm:$0xff] %v2989_v28  ;;  %4567 = vst [vmem:[#allocation89_spill] sm:$0xff] %v2992_v17  ;;  %v3001_v8 = vsel %vm629_vm1, %v669_v15, %v670_v52  ;;  %v3004_v48 = vsel %vm629_vm1, %v672_v57, %v673_v38  ;;  %v3010_v18 = vsel %vm629_vm1, %v675_v42, %v676_v14  ;;  %v3013_v59 = vsel %vm629_vm1, %v637_v55, 0.0 }
  0x54   : > { %4568 = vst [vmem:[#allocation90_spill] sm:$0xff] %v2995_v58  ;;  %4569 = vst [vmem:[#allocation91_spill] sm:$0xff] %v2998_v27  ;;  %v3016_v10 = vsel %vm629_vm1, %v640_v1, 0.0  ;;  %v3019_v47 = vsel %vm629_vm1, %v643_v12, 0.0  ;;  %v3022_v15 = vsel %vm629_vm1, %v646_v60, 0.0  ;;  %v3025_v57 = vsel %vm629_vm1, %v649_v45, 0.0 }
  0x55   : > { %4570 = vst [vmem:[#allocation92_spill] sm:$0xff] %v3001_v8  ;;  %4571 = vst [vmem:[#allocation93_spill] sm:$0xff] %v3004_v48  ;;  %v3028_v23 = vsel %vm629_vm1, %v652_v7, 0.0  ;;  %v3031_v42 = vsel %vm629_vm1, %v655_v53, 0.0  ;;  %v3034_v55 = vsel %vm629_vm1, %v658_v35, 0.0  ;;  %v3037_v1 = vsel %vm629_vm1, %v661_v25, 0.0 }
  0x56   : > { %4572 = vst [vmem:[#allocation94_spill] sm:$0xff] %v3007_v63  ;;  %4573 = vst [vmem:[#allocation95_spill] sm:$0xff] %v3010_v18  ;;  %v3040_v12 = vsel %vm629_vm1, %v664_v44, 0.0  ;;  %v3043_v60 = vsel %vm629_vm1, %v667_v50, 0.0  ;;  %v3046_v45 = vsel %vm629_vm1, %v670_v52, 0.0  ;;  %v3049_v7 = vsel %vm629_vm1, %v673_v38, 0.0 }
  0x57   : > { %4574 = vst [vmem:[#allocation96_spill] sm:$0xff] %v3013_v59  ;;  %4575 = vst [vmem:[#allocation97_spill] sm:$0xff] %v3016_v10  ;;  %v3052_v53 = vsel %vm629_vm1, %v676_v14, 0.0  ;;  %v4588_v35 = vld [vmem:[#allocation9_spill] sm:$0xff]  ;;  %v733_v25 = vmul.f32 %v4589_v43, %v2940_v56  ;;  %v734_v44 = vmul.f32 %v4589_v43, %v3007_v63  ;;  %v735_v50 = vmul.f32 %v4589_v43, %v2966_v11 }
  0x58   : > { %4576 = vst [vmem:[#allocation98_spill] sm:$0xff] %v3019_v47  ;;  %4577 = vst [vmem:[#allocation99_spill] sm:$0xff] %v3022_v15  ;;  %v732_v51 = vmul.f32 %v4589_v43, %v4588_v35  ;;  %v736_v52 = vmul.f32 %v4589_v43, %v3013_v59  ;;  %v737_v38 = vmul.f32 %v4589_v43, %v2969_v54 }
  0x59   : > { %4578 = vst [vmem:[#allocation100_spill] sm:$0xff] %v3025_v57  ;;  %4579 = vst [vmem:[#allocation101_spill] sm:$0xff] %v3028_v23  ;;  %v738_v14 = vmul.f32 %v4589_v43, %v3016_v10  ;;  %v739_v35 = vmul.f32 %v4589_v43, %v2974_v13  ;;  %v740_v56 = vmul.f32 %v4589_v43, %v3019_v47 }
  0x5a   : > { %4580 = vst [vmem:[#allocation102_spill] sm:$0xff] %v3031_v42  ;;  %4581 = vst [vmem:[#allocation103_spill] sm:$0xff] %v3034_v55  ;;  %v741_v63 = vmul.f32 %v4589_v43, %v2977_v5  ;;  %v742_v11 = vmul.f32 %v4589_v43, %v3022_v15  ;;  %v743_v59 = vmul.f32 %v4589_v43, %v2980_v32 }
  0x5b   : > { %4582 = vst [vmem:[#allocation104_spill] sm:$0xff] %v3037_v1  ;;  %4583 = vst [vmem:[#allocation105_spill] sm:$0xff] %v3040_v12  ;;  %v744_v54 = vmul.f32 %v4589_v43, %v3025_v57  ;;  %v745_v10 = vmul.f32 %v4589_v43, %v2983_v49  ;;  %v746_v13 = vmul.f32 %v4589_v43, %v3028_v23 }
  0x5c   : > { %4584 = vst [vmem:[#allocation106_spill] sm:$0xff] %v3043_v60  ;;  %4585 = vst [vmem:[#allocation107_spill] sm:$0xff] %v3046_v45  ;;  %v747_v47 = vmul.f32 %v4589_v43, %v2986_v3  ;;  %v748_v5 = vmul.f32 %v4589_v43, %v3031_v42  ;;  %v749_v15 = vmul.f32 %v4589_v43, %v2989_v28 }
  0x5d   : > { %4586 = vst [vmem:[#allocation108_spill] sm:$0xff] %v3049_v7  ;;  %4587 = vst [vmem:[#allocation109_spill] sm:$0xff] %v3052_v53  ;;  %v750_v32 = vmul.f32 %v4589_v43, %v3034_v55  ;;  %v751_v57 = vmul.f32 %v4589_v43, %v2992_v17  ;;  %v752_v49 = vmul.f32 %v4589_v43, %v3037_v1 }
  0x5e   : > { %v753_v23 = vmul.f32 %v4589_v43, %v2995_v58  ;;  %v754_v3 = vmul.f32 %v4589_v43, %v3040_v12  ;;  %v755_v42 = vmul.f32 %v4589_v43, %v2998_v27  ;;  %v756_v28 = vmul.f32 %v4589_v43, %v3043_v60  ;;  %v4591_v60 = vld [vmem:[#allocation10_spill] sm:$0xff] }
  0x5f   : > { %v757_v55 = vmul.f32 %v4589_v43, %v3001_v8  ;;  %v758_v17 = vmul.f32 %v4589_v43, %v3046_v45  ;;  %v759_v1 = vmul.f32 %v4589_v43, %v3004_v48  ;;  %v760_v58 = vmul.f32 %v4589_v43, %v3049_v7 }
  0x60   : > { %v761_v12 = vmul.f32 %v4589_v43, %v3010_v18  ;;  %v762_v27 = vmul.f32 %v4589_v43, %v3052_v53  ;;  %v3118_v46 = vadd.f32 %v4591_v60, %v4590_v30  ;;  %v3121_v8 = vadd.f32 %v732_v51, %v2863_v31  ;;  %v4619_v60 = vld [vmem:[#allocation61_spill] sm:$0xff]  ;;  %v4631_v53 = vld [vmem:[#allocation67_spill] sm:$0xff] }
  0x61   : > { %v3124_v45 = vadd.f32 %v733_v25, %v2865_v34  ;;  %v3127_v48 = vadd.f32 %v734_v44, %v2867_v40  ;;  %v3130_v7 = vadd.f32 %v735_v50, %v2869_v22  ;;  %v3133_v18 = vadd.f32 %v736_v52, %v2871_v2  ;;  %v4620_v44 = vld [vmem:[#allocation46_spill] sm:$0xff] }
  0x62   : > { %v3136_v43 = vadd.f32 %v737_v38, %v2873_v37  ;;  %v3139_v30 = vadd.f32 %v738_v14, %v2875_v19  ;;  %v3142_v31 = vadd.f32 %v739_v35, %v2877_v29  ;;  %v3145_v34 = vadd.f32 %v740_v56, %v2879_v36  ;;  %v4609_v56 = vld [vmem:[#allocation79_spill] sm:$0xff]  ;;  %v4621_v52 = vld [vmem:[#allocation62_spill] sm:$0xff] }
  0x63   : > { %v3148_v40 = vadd.f32 %v741_v63, %v2881_v9  ;;  %v3151_v22 = vadd.f32 %v742_v11, %v2883_v26  ;;  %v3154_v2 = vadd.f32 %v743_v59, %v2885_v61  ;;  %v3157_v37 = vadd.f32 %v744_v54, %v2887_v0  ;;  %v4612_v59 = vld [vmem:[#allocation14_spill] sm:$0xff]  ;;  %v4622_v14 = vld [vmem:[#allocation47_spill] sm:$0xff] }
  0x64   : > { %v3160_v19 = vadd.f32 %v745_v10, %v2889_v21  ;;  %v3163_v29 = vadd.f32 %v746_v13, %v2891_v6  ;;  %v3166_v36 = vadd.f32 %v747_v47, %v2893_v33  ;;  %v3169_v9 = vadd.f32 %v748_v5, %v2895_v16  ;;  %v4595_v16 = vld [vmem:[#allocation7_spill] sm:$0xff] }
  0x65   : > { %v3172_v26 = vadd.f32 %v749_v15, %v2897_v4  ;;  %v3175_v61 = vadd.f32 %v750_v32, %v2899_v62  ;;  %v3178_v0 = vadd.f32 %v751_v57, %v2901_v20  ;;  %v3181_v21 = vadd.f32 %v752_v49, %v2903_v39  ;;  %v4597_v4 = vld [vmem:[#allocation8_spill] sm:$0xff]  ;;  %v4599_v62 = vld [vmem:[#allocation74_spill] sm:$0xff]  ;;  %v4601_v20 = vld [vmem:[#allocation75_spill] sm:$0xff] }
  0x66   : > { %v3184_v6 = vadd.f32 %v753_v23, %v2905_v41  ;;  %v3187_v33 = vadd.f32 %v754_v3, %v2910_v24  ;;  %v3190_v51 = vadd.f32 %v755_v42, %v4595_v16  ;;  %v3193_v5 = vadd.f32 %v756_v28, %v4597_v4  ;;  %v4603_v39 = vld [vmem:[#allocation76_spill] sm:$0xff]  ;;  %v4605_v41 = vld [vmem:[#allocation77_spill] sm:$0xff]  ;;  %v4607_v24 = vld [vmem:[#allocation78_spill] sm:$0xff] }
  0x67   : > { %4592 = vst [vmem:[#allocation9_spill] sm:$0xff] %v3181_v21  ;;  %v3196_v32 = vadd.f32 %v757_v55, %v4599_v62  ;;  %v3199_v13 = vadd.f32 %v758_v17, %v4601_v20  ;;  %v3202_v49 = vadd.f32 %v759_v1, %v4603_v39  ;;  %v3205_v54 = vadd.f32 %v760_v58, %v4605_v41  ;;  %v4611_v28 = vld [vmem:[#allocation16_spill] sm:$0xff]  ;;  %v2043_v17 = vld [vmem:[%s4226_s1 + $0x4] ss:$0 sm:$0xff]  ;;  %v4615_v15 = vld [vmem:[#allocation57_spill] sm:$0xff] }
  0x68   : > { %4593 = vst [vmem:[#allocation6_spill] sm:$0xff] %v3184_v6  ;;  %4594 = vst [vmem:[#allocation11_spill] sm:$0xff] %v3187_v33  ;;  %v3208_v11 = vadd.f32 %v761_v12, %v4607_v24  ;;  %v3211_v3 = vadd.f32 %v762_v27, %v4609_v56  ;;  %v905_v63 = vrot.slane %v4611_v28, 7  ;;  %v904_v10 = vrot.slane %v4612_v59, 7  ;;  %v4616_v23 = vld [vmem:[#allocation44_spill] sm:$0xff]  ;;  %v4618_v1 = vld [vmem:[#allocation45_spill] sm:$0xff] }
  0x69   : > { %4596 = vst [vmem:[#allocation10_spill] sm:$0xff] %v3190_v51  ;;  %4598 = vst [vmem:[#allocation7_spill] sm:$0xff] %v3193_v5  ;;  %v961_v57 = vmul.f32 %v2043_v17, %v4615_v15  ;;  %v962_v42 = vmul.f32 %v2043_v17, %v4616_v23  ;;  %v4617_v27 = vld [vmem:[#allocation60_spill] sm:$0xff]  ;;  %v964_v12 = vmul.f32 %v2043_v17, %v4618_v1  ;;  %v4623_v16 = vld [vmem:[#allocation63_spill] sm:$0xff] }
  0x6a   : > { %4600 = vst [vmem:[#allocation8_spill] sm:$0xff] %v3196_v32  ;;  %4602 = vst [vmem:[#allocation74_spill] sm:$0xff] %v3199_v13  ;;  %v3216_v47 = vsel %vm394_vm0, %v904_v10, %v905_v63  ;;  %v3222_v58 = vsel %vm394_vm0, 0.0, %v904_v10  ;;  %v963_v55 = vmul.f32 %v2043_v17, %v4617_v27  ;;  %v965_v25 = vmul.f32 %v2043_v17, %v4619_v60  ;;  %v4624_v62 = vld [vmem:[#allocation48_spill] sm:$0xff]  ;;  %v4626_v24 = vld [vmem:[#allocation49_spill] sm:$0xff] }
  0x6b   : > { %4604 = vst [vmem:[#allocation75_spill] sm:$0xff] %v3202_v49  ;;  %4606 = vst [vmem:[#allocation76_spill] sm:$0xff] %v3205_v54  ;;  %v966_v50 = vmul.f32 %v2043_v17, %v4620_v44  ;;  %v967_v38 = vmul.f32 %v2043_v17, %v4621_v52  ;;  %v968_v35 = vmul.f32 %v2043_v17, %v4622_v14  ;;  %v4625_v39 = vld [vmem:[#allocation64_spill] sm:$0xff]  ;;  %v4627_v63 = vld [vmem:[#allocation65_spill] sm:$0xff] }
  0x6c   : > { %4608 = vst [vmem:[#allocation77_spill] sm:$0xff] %v3208_v11  ;;  %4610 = vst [vmem:[#allocation78_spill] sm:$0xff] %v3211_v3  ;;  %v969_v4 = vmul.f32 %v2043_v17, %v4623_v16  ;;  %v970_v20 = vmul.f32 %v2043_v17, %v4624_v62  ;;  %v971_v41 = vmul.f32 %v2043_v17, %v4625_v39  ;;  %v4628_v15 = vld [vmem:[#allocation50_spill] sm:$0xff]  ;;  %v4630_v27 = vld [vmem:[#allocation51_spill] sm:$0xff] }
  0x6d   : > { %4613 = vst [vmem:[#allocation79_spill] sm:$0xff] %v3216_v47  ;;  %4614 = vst [vmem:[#allocation110_spill] sm:$0xff] %v3222_v58  ;;  %v972_v56 = vmul.f32 %v2043_v17, %v4626_v24  ;;  %v973_v10 = vmul.f32 %v2043_v17, %v4627_v63  ;;  %v974_v23 = vmul.f32 %v2043_v17, %v4628_v15  ;;  %v4629_v1 = vld [vmem:[#allocation66_spill] sm:$0xff]  ;;  %v4632_v28 = vld [vmem:[#allocation52_spill] sm:$0xff] }
  0x6e   : > { %v975_v60 = vmul.f32 %v2043_v17, %v4629_v1  ;;  %v976_v44 = vmul.f32 %v2043_v17, %v4630_v27  ;;  %v977_v52 = vmul.f32 %v2043_v17, %v4631_v53  ;;  %v978_v14 = vmul.f32 %v2043_v17, %v4632_v28  ;;  %v4633_v59 = vld [vmem:[#allocation68_spill] sm:$0xff]  ;;  %v4634_v3 = vld [vmem:[#allocation53_spill] sm:$0xff]  ;;  %v4636_v54 = vld [vmem:[#allocation54_spill] sm:$0xff] }
  0x6f   : > { %v979_v16 = vmul.f32 %v2043_v17, %v4633_v59  ;;  %v980_v62 = vmul.f32 %v2043_v17, %v4634_v3  ;;  %v4635_v11 = vld [vmem:[#allocation69_spill] sm:$0xff]  ;;  %v982_v24 = vmul.f32 %v2043_v17, %v4636_v54  ;;  %v4637_v49 = vld [vmem:[#allocation70_spill] sm:$0xff]  ;;  %v4638_v13 = vld [vmem:[#allocation55_spill] sm:$0xff]  ;;  %v992_v54 = vmul.f32 %v2043_v17, %v3216_v47 }
  0x70   : > { %v981_v39 = vmul.f32 %v2043_v17, %v4635_v11  ;;  %v983_v63 = vmul.f32 %v2043_v17, %v4637_v49  ;;  %v984_v15 = vmul.f32 %v2043_v17, %v4638_v13  ;;  %v4639_v32 = vld [vmem:[#allocation71_spill] sm:$0xff]  ;;  %v4640_v5 = vld [vmem:[#allocation56_spill] sm:$0xff]  ;;  %v4642_v33 = vld [vmem:[#allocation58_spill] sm:$0xff]  ;;  %v991_v11 = vmul.f32 %v2043_v17, %v3222_v58 }
  0x71   : > { %v985_v1 = vmul.f32 %v2043_v17, %v4639_v32  ;;  %v986_v27 = vmul.f32 %v2043_v17, %v4640_v5  ;;  %v4641_v51 = vld [vmem:[#allocation72_spill] sm:$0xff]  ;;  %v988_v28 = vmul.f32 %v2043_v17, %v4642_v33  ;;  %v4643_v6 = vld [vmem:[#allocation73_spill] sm:$0xff]  ;;  %v4644_v21 = vld [vmem:[#allocation59_spill] sm:$0xff]  ;;  %v3257_v49 = vadd.f32 %v961_v57, %v3118_v46 }
  0x72   : > { %v987_v53 = vmul.f32 %v2043_v17, %v4641_v51  ;;  %v989_v59 = vmul.f32 %v2043_v17, %v4643_v6  ;;  %v990_v3 = vmul.f32 %v2043_v17, %v4644_v21  ;;  %v3260_v13 = vadd.f32 %v962_v42, %v3121_v8  ;;  %v4684_v47 = vld [vmem:[#allocation31_spill] sm:$0xff]  ;;  %v4685_v58 = vld [vmem:[#allocation32_spill] sm:$0xff]  ;;  %v4686_v33 = vld [vmem:[#allocation33_spill] sm:$0xff] }
  0x73   : > { %v3263_v5 = vadd.f32 %v963_v55, %v3124_v45  ;;  %v3266_v51 = vadd.f32 %v964_v12, %v3127_v48  ;;  %v3269_v6 = vadd.f32 %v965_v25, %v3130_v7  ;;  %v3272_v21 = vadd.f32 %v966_v50, %v3133_v18  ;;  %v4687_v32 = vld [vmem:[#allocation34_spill] sm:$0xff] }
  0x74   : > { %v3275_v17 = vadd.f32 %v967_v38, %v3136_v43  ;;  %v3278_v46 = vadd.f32 %v968_v35, %v3139_v30  ;;  %v3281_v8 = vadd.f32 %v969_v4, %v3142_v31  ;;  %v3284_v45 = vadd.f32 %v970_v20, %v3145_v34 }
  0x75   : > { %v3287_v48 = vadd.f32 %v971_v41, %v3148_v40  ;;  %v3290_v7 = vadd.f32 %v972_v56, %v3151_v22  ;;  %v3293_v18 = vadd.f32 %v973_v10, %v3154_v2  ;;  %v3296_v43 = vadd.f32 %v974_v23, %v3157_v37  ;;  %v4669_v41 = vld [vmem:[#allocation15_spill] sm:$0xff] }
  0x76   : > { %v3299_v30 = vadd.f32 %v975_v60, %v3160_v19  ;;  %v3302_v31 = vadd.f32 %v976_v44, %v3163_v29  ;;  %v3305_v34 = vadd.f32 %v977_v52, %v3166_v36  ;;  %v3308_v40 = vadd.f32 %v978_v14, %v3169_v9  ;;  %v4645_v19 = vld [vmem:[#allocation9_spill] sm:$0xff]  ;;  %v4647_v29 = vld [vmem:[#allocation6_spill] sm:$0xff]  ;;  %v4649_v36 = vld [vmem:[#allocation11_spill] sm:$0xff] }
  0x77   : > { %v3311_v22 = vadd.f32 %v979_v16, %v3172_v26  ;;  %v3314_v2 = vadd.f32 %v980_v62, %v3175_v61  ;;  %v3317_v37 = vadd.f32 %v981_v39, %v3178_v0  ;;  %v3320_v57 = vadd.f32 %v982_v24, %v4645_v19  ;;  %v2045_v9 = vld [vmem:[%s4226_s1 + $0x5] ss:$0 sm:$0xff]  ;;  %v4653_v61 = vld [vmem:[#allocation7_spill] sm:$0xff]  ;;  %v4655_v0 = vld [vmem:[#allocation8_spill] sm:$0xff] }
  0x78   : > { %v3323_v42 = vadd.f32 %v983_v63, %v4647_v29  ;;  %v3326_v55 = vadd.f32 %v984_v15, %v4649_v36  ;;  %v4651_v26 = vld [vmem:[#allocation10_spill] sm:$0xff]  ;;  %v3335_v60 = vadd.f32 %v986_v27, %v4653_v61  ;;  %v3338_v25 = vadd.f32 %v987_v53, %v4655_v0  ;;  %v4659_v52 = vld [vmem:[#allocation75_spill] sm:$0xff]  ;;  %v4661_v14 = vld [vmem:[#allocation76_spill] sm:$0xff] }
  0x79   : > { %4646 = vst [vmem:[#allocation57_spill] sm:$0xff] %v3320_v57  ;;  %v3332_v12 = vadd.f32 %v985_v1, %v4651_v26  ;;  %v4657_v44 = vld [vmem:[#allocation74_spill] sm:$0xff]  ;;  %v3344_v38 = vadd.f32 %v989_v59, %v4659_v52  ;;  %v3347_v35 = vadd.f32 %v990_v3, %v4661_v14  ;;  %v4663_v16 = vld [vmem:[#allocation77_spill] sm:$0xff]  ;;  %v4667_v27 = vld [vmem:[#allocation12_spill] sm:$0xff]  ;;  %v1032_v24 = vmul.f32 %v2045_v9, %v4669_v41 }
  0x7a   : > { %4648 = vst [vmem:[#allocation44_spill] sm:$0xff] %v3323_v42  ;;  %4650 = vst [vmem:[#allocation9_spill] sm:$0xff] %v3326_v55  ;;  %v3341_v50 = vadd.f32 %v988_v28, %v4657_v44  ;;  %v3350_v4 = vadd.f32 %v991_v11, %v4663_v16  ;;  %v4665_v1 = vld [vmem:[#allocation78_spill] sm:$0xff]  ;;  %v1030_v20 = vmul.f32 %v2045_v9, %v4667_v27  ;;  %v4668_v39 = vld [vmem:[#allocation13_spill] sm:$0xff] }
  0x7b   : > { %4652 = vst [vmem:[#allocation6_spill] sm:$0xff] %v3332_v12  ;;  %4654 = vst [vmem:[#allocation11_spill] sm:$0xff] %v3335_v60  ;;  %v3353_v62 = vadd.f32 %v992_v54, %v4665_v1  ;;  %v1031_v53 = vmul.f32 %v2045_v9, %v4668_v39  ;;  %v4670_v28 = vld [vmem:[#allocation17_spill] sm:$0xff]  ;;  %v4671_v63 = vld [vmem:[#allocation18_spill] sm:$0xff] }
  0x7c   : > { %4656 = vst [vmem:[#allocation10_spill] sm:$0xff] %v3338_v25  ;;  %4658 = vst [vmem:[#allocation7_spill] sm:$0xff] %v3341_v50  ;;  %v1033_v56 = vmul.f32 %v2045_v9, %v4670_v28  ;;  %v1034_v59 = vmul.f32 %v2045_v9, %v4671_v63  ;;  %v4672_v10 = vld [vmem:[#allocation19_spill] sm:$0xff]  ;;  %v4673_v3 = vld [vmem:[#allocation20_spill] sm:$0xff] }
  0x7d   : > { %4660 = vst [vmem:[#allocation8_spill] sm:$0xff] %v3344_v38  ;;  %4662 = vst [vmem:[#allocation74_spill] sm:$0xff] %v3347_v35  ;;  %v1035_v15 = vmul.f32 %v2045_v9, %v4672_v10  ;;  %v1036_v23 = vmul.f32 %v2045_v9, %v4673_v3  ;;  %v4674_v19 = vld [vmem:[#allocation21_spill] sm:$0xff]  ;;  %v4675_v29 = vld [vmem:[#allocation22_spill] sm:$0xff] }
  0x7e   : > { %4664 = vst [vmem:[#allocation75_spill] sm:$0xff] %v3350_v4  ;;  %4666 = vst [vmem:[#allocation76_spill] sm:$0xff] %v3353_v62  ;;  %v1037_v11 = vmul.f32 %v2045_v9, %v4674_v19  ;;  %v1038_v36 = vmul.f32 %v2045_v9, %v4675_v29  ;;  %v4676_v54 = vld [vmem:[#allocation23_spill] sm:$0xff]  ;;  %v4677_v61 = vld [vmem:[#allocation24_spill] sm:$0xff]  ;;  %v1047_v19 = vmul.f32 %v2045_v9, %v4684_v47 }
  0x7f   : > { %v1039_v26 = vmul.f32 %v2045_v9, %v4676_v54  ;;  %v1040_v0 = vmul.f32 %v2045_v9, %v4677_v61  ;;  %v4678_v44 = vld [vmem:[#allocation25_spill] sm:$0xff]  ;;  %v4679_v14 = vld [vmem:[#allocation26_spill] sm:$0xff]  ;;  %v4680_v1 = vld [vmem:[#allocation27_spill] sm:$0xff]  ;;  %v1048_v29 = vmul.f32 %v2045_v9, %v4685_v58  ;;  %v1049_v54 = vmul.f32 %v2045_v9, %v4686_v33 }
  0x80   : > { %v1041_v52 = vmul.f32 %v2045_v9, %v4678_v44  ;;  %v1042_v16 = vmul.f32 %v2045_v9, %v4679_v14  ;;  %v1043_v27 = vmul.f32 %v2045_v9, %v4680_v1  ;;  %v4681_v39 = vld [vmem:[#allocation28_spill] sm:$0xff]  ;;  %v4682_v28 = vld [vmem:[#allocation29_spill] sm:$0xff]  ;;  %v4683_v41 = vld [vmem:[#allocation30_spill] sm:$0xff]  ;;  %v1050_v61 = vmul.f32 %v2045_v9, %v4687_v32 }
  0x81   : > { %v1044_v63 = vmul.f32 %v2045_v9, %v4681_v39  ;;  %v1045_v10 = vmul.f32 %v2045_v9, %v4682_v28  ;;  %v1046_v3 = vmul.f32 %v2045_v9, %v4683_v41  ;;  %v4688_v62 = vld [vmem:[#allocation35_spill] sm:$0xff]  ;;  %v4689_v4 = vld [vmem:[#allocation36_spill] sm:$0xff]  ;;  %v4690_v35 = vld [vmem:[#allocation37_spill] sm:$0xff] }
  0x82   : > { %v1051_v44 = vmul.f32 %v2045_v9, %v4688_v62  ;;  %v1052_v14 = vmul.f32 %v2045_v9, %v4689_v4  ;;  %v1053_v1 = vmul.f32 %v2045_v9, %v4690_v35  ;;  %v4691_v38 = vld [vmem:[#allocation38_spill] sm:$0xff]  ;;  %v4692_v50 = vld [vmem:[#allocation39_spill] sm:$0xff]  ;;  %v4693_v25 = vld [vmem:[#allocation40_spill] sm:$0xff]  ;;  %v3388_v4 = vadd.f32 %v1030_v20, %v3257_v49 }
  0x83   : > { %v1054_v39 = vmul.f32 %v2045_v9, %v4691_v38  ;;  %v1055_v28 = vmul.f32 %v2045_v9, %v4692_v50  ;;  %v1056_v41 = vmul.f32 %v2045_v9, %v4693_v25  ;;  %v4694_v60 = vld [vmem:[#allocation41_spill] sm:$0xff]  ;;  %v4695_v12 = vld [vmem:[#allocation42_spill] sm:$0xff]  ;;  %v4696_v55 = vld [vmem:[#allocation43_spill] sm:$0xff]  ;;  %v3391_v35 = vadd.f32 %v1031_v53, %v3260_v13 }
  0x84   : > { %v1057_v47 = vmul.f32 %v2045_v9, %v4694_v60  ;;  %v1058_v58 = vmul.f32 %v2045_v9, %v4695_v12  ;;  %v1059_v33 = vmul.f32 %v2045_v9, %v4696_v55  ;;  %v4697_v42 = vld [vmem:[#allocation14_spill] sm:$0xff]  ;;  %v4698_v57 = vld [vmem:[#allocation16_spill] sm:$0xff]  ;;  %v3394_v50 = vadd.f32 %v1032_v24, %v3263_v5  ;;  %v4740_v60 = vld [vmem:[#allocation103_spill] sm:$0xff] }
  0x85   : > { %v1060_v32 = vmul.f32 %v4697_v42, %v2045_v9  ;;  %v1061_v62 = vmul.f32 %v4698_v57, %v2045_v9  ;;  %v3397_v25 = vadd.f32 %v1033_v56, %v3266_v51  ;;  %v3400_v12 = vadd.f32 %v1034_v59, %v3269_v6  ;;  %v4741_v38 = vld [vmem:[#allocation89_spill] sm:$0xff] }
  0x86   : > { %v3403_v55 = vadd.f32 %v1035_v15, %v3272_v21  ;;  %v3406_v9 = vadd.f32 %v1036_v23, %v3275_v17  ;;  %v3409_v49 = vadd.f32 %v1037_v11, %v3278_v46  ;;  %v3412_v13 = vadd.f32 %v1038_v36, %v3281_v8  ;;  %v4713_v15 = vld [vmem:[#allocation8_spill] sm:$0xff]  ;;  %v4715_v23 = vld [vmem:[#allocation74_spill] sm:$0xff]  ;;  %v4717_v11 = vld [vmem:[#allocation75_spill] sm:$0xff] }
  0x87   : > { %v3415_v5 = vadd.f32 %v1039_v26, %v3284_v45  ;;  %v3418_v51 = vadd.f32 %v1040_v0, %v3287_v48  ;;  %v3421_v6 = vadd.f32 %v1041_v52, %v3290_v7  ;;  %v3424_v21 = vadd.f32 %v1042_v16, %v3293_v18  ;;  %v4719_v36 = vld [vmem:[#allocation76_spill] sm:$0xff]  ;;  %v4727_v16 = vld [vmem:[#allocation82_spill] sm:$0xff] }
  0x88   : > { %v3427_v17 = vadd.f32 %v1043_v27, %v3296_v43  ;;  %v3430_v46 = vadd.f32 %v1044_v63, %v3299_v30  ;;  %v3433_v8 = vadd.f32 %v1045_v10, %v3302_v31  ;;  %v3436_v45 = vadd.f32 %v1046_v3, %v3305_v34  ;;  %v4699_v30 = vld [vmem:[#allocation57_spill] sm:$0xff]  ;;  %v4701_v31 = vld [vmem:[#allocation44_spill] sm:$0xff] }
  0x89   : > { %v3439_v48 = vadd.f32 %v1047_v19, %v3308_v40  ;;  %v3442_v7 = vadd.f32 %v1048_v29, %v3311_v22  ;;  %v3445_v18 = vadd.f32 %v1049_v54, %v3314_v2  ;;  %v3448_v43 = vadd.f32 %v1050_v61, %v3317_v37  ;;  %v4703_v34 = vld [vmem:[#allocation9_spill] sm:$0xff]  ;;  %v4705_v40 = vld [vmem:[#allocation6_spill] sm:$0xff]  ;;  %v4707_v22 = vld [vmem:[#allocation11_spill] sm:$0xff] }
  0x8a   : > { %v3451_v20 = vadd.f32 %v1051_v44, %v4699_v30  ;;  %v3454_v53 = vadd.f32 %v1052_v14, %v4701_v31  ;;  %v3457_v24 = vadd.f32 %v1053_v1, %v4703_v34  ;;  %v3460_v56 = vadd.f32 %v1054_v39, %v4705_v40  ;;  %v4709_v2 = vld [vmem:[#allocation10_spill] sm:$0xff]  ;;  %v4711_v37 = vld [vmem:[#allocation7_spill] sm:$0xff]  ;;  %v4726_v52 = vld [vmem:[#allocation96_spill] sm:$0xff] }
  0x8b   : > { %v3463_v63 = vadd.f32 %v1055_v28, %v4707_v22  ;;  %v3466_v59 = vadd.f32 %v1056_v41, %v4709_v2  ;;  %v3469_v10 = vadd.f32 %v1057_v47, %v4711_v37  ;;  %v3472_v3 = vadd.f32 %v1058_v58, %v4713_v15  ;;  %v2047_v47 = vld [vmem:[%s4226_s1 + $0x6] ss:$0 sm:$0xff]  ;;  %v4723_v58 = vld [vmem:[#allocation80_spill] sm:$0xff]  ;;  %v4728_v27 = vld [vmem:[#allocation97_spill] sm:$0xff] }
  0x8c   : > { %4700 = vst [vmem:[#allocation77_spill] sm:$0xff] %v3451_v20  ;;  %4702 = vst [vmem:[#allocation78_spill] sm:$0xff] %v3454_v53  ;;  %v3475_v19 = vadd.f32 %v1059_v33, %v4715_v23  ;;  %v3478_v29 = vadd.f32 %v1060_v32, %v4717_v11  ;;  %v3481_v54 = vadd.f32 %v1061_v62, %v4719_v36  ;;  %v1139_v28 = vrot.slane %v4697_v42, 1  ;;  %v4724_v61 = vld [vmem:[#allocation94_spill] sm:$0xff]  ;;  %v4725_v62 = vld [vmem:[#allocation81_spill] sm:$0xff] }
  0x8d   : > { %4704 = vst [vmem:[#allocation12_spill] sm:$0xff] %v3457_v24  ;;  %4706 = vst [vmem:[#allocation13_spill] sm:$0xff] %v3460_v56  ;;  %v1140_v41 = vrot.slane %v4698_v57, 1  ;;  %v1195_v32 = vmul.f32 %v2047_v47, %v4723_v58  ;;  %v1196_v0 = vmul.f32 %v2047_v47, %v4724_v61  ;;  %v1197_v44 = vmul.f32 %v2047_v47, %v4725_v62  ;;  %v4729_v30 = vld [vmem:[#allocation83_spill] sm:$0xff]  ;;  %v4730_v34 = vld [vmem:[#allocation98_spill] sm:$0xff] }
  0x8e   : > { %4708 = vst [vmem:[#allocation57_spill] sm:$0xff] %v3463_v63  ;;  %4710 = vst [vmem:[#allocation44_spill] sm:$0xff] %v3466_v59  ;;  %v1198_v14 = vmul.f32 %v2047_v47, %v4726_v52  ;;  %v1199_v1 = vmul.f32 %v2047_v47, %v4727_v16  ;;  %v1200_v39 = vmul.f32 %v2047_v47, %v4728_v27  ;;  %v4731_v22 = vld [vmem:[#allocation84_spill] sm:$0xff]  ;;  %v4732_v37 = vld [vmem:[#allocation99_spill] sm:$0xff] }
  0x8f   : > { %4712 = vst [vmem:[#allocation9_spill] sm:$0xff] %v3469_v10  ;;  %4714 = vst [vmem:[#allocation6_spill] sm:$0xff] %v3472_v3  ;;  %v3486_v26 = vsel %vm629_vm1, %v1139_v28, %v1140_v41  ;;  %v3492_v33 = vsel %vm629_vm1, %v1140_v41, 0.0  ;;  %v1201_v31 = vmul.f32 %v2047_v47, %v4729_v30  ;;  %v1202_v40 = vmul.f32 %v2047_v47, %v4730_v34  ;;  %v4733_v23 = vld [vmem:[#allocation85_spill] sm:$0xff]  ;;  %v4734_v36 = vld [vmem:[#allocation100_spill] sm:$0xff] }
  0x90   : > { %4716 = vst [vmem:[#allocation11_spill] sm:$0xff] %v3475_v19  ;;  %4718 = vst [vmem:[#allocation10_spill] sm:$0xff] %v3478_v29  ;;  %v1203_v2 = vmul.f32 %v2047_v47, %v4731_v22  ;;  %v1204_v15 = vmul.f32 %v2047_v47, %v4732_v37  ;;  %v1205_v11 = vmul.f32 %v2047_v47, %v4733_v23  ;;  %v4735_v41 = vld [vmem:[#allocation86_spill] sm:$0xff]  ;;  %v4736_v61 = vld [vmem:[#allocation101_spill] sm:$0xff] }
  0x91   : > { %4720 = vst [vmem:[#allocation7_spill] sm:$0xff] %v3481_v54  ;;  %4721 = vst [vmem:[#allocation8_spill] sm:$0xff] %v3486_v26  ;;  %v1206_v28 = vmul.f32 %v2047_v47, %v4734_v36  ;;  %v1207_v58 = vmul.f32 %v2047_v47, %v4735_v41  ;;  %v1208_v52 = vmul.f32 %v2047_v47, %v4736_v61  ;;  %v4737_v62 = vld [vmem:[#allocation87_spill] sm:$0xff]  ;;  %v4738_v57 = vld [vmem:[#allocation102_spill] sm:$0xff] }
  0x92   : > { %4722 = vst [vmem:[#allocation74_spill] sm:$0xff] %v3492_v33  ;;  %v1209_v16 = vmul.f32 %v2047_v47, %v4737_v62  ;;  %v1210_v27 = vmul.f32 %v2047_v47, %v4738_v57  ;;  %v4739_v42 = vld [vmem:[#allocation88_spill] sm:$0xff]  ;;  %v1212_v34 = vmul.f32 %v2047_v47, %v4740_v60  ;;  %v1213_v22 = vmul.f32 %v2047_v47, %v4741_v38  ;;  %v4743_v29 = vld [vmem:[#allocation90_spill] sm:$0xff]  ;;  %v4744_v19 = vld [vmem:[#allocation105_spill] sm:$0xff] }
  0x93   : > { %v1211_v30 = vmul.f32 %v2047_v47, %v4739_v42  ;;  %v4742_v54 = vld [vmem:[#allocation104_spill] sm:$0xff]  ;;  %v1215_v23 = vmul.f32 %v2047_v47, %v4743_v29  ;;  %v1216_v36 = vmul.f32 %v2047_v47, %v4744_v19  ;;  %v4745_v3 = vld [vmem:[#allocation91_spill] sm:$0xff]  ;;  %v4746_v10 = vld [vmem:[#allocation106_spill] sm:$0xff]  ;;  %v1225_v29 = vmul.f32 %v2047_v47, %v3486_v26 }
  0x94   : > { %v1214_v37 = vmul.f32 %v2047_v47, %v4742_v54  ;;  %v1217_v41 = vmul.f32 %v2047_v47, %v4745_v3  ;;  %v1218_v61 = vmul.f32 %v2047_v47, %v4746_v10  ;;  %v4747_v59 = vld [vmem:[#allocation92_spill] sm:$0xff]  ;;  %v4748_v63 = vld [vmem:[#allocation107_spill] sm:$0xff]  ;;  %v4749_v56 = vld [vmem:[#allocation93_spill] sm:$0xff]  ;;  %v1226_v19 = vmul.f32 %v2047_v47, %v3492_v33 }
  0x95   : > { %v1219_v62 = vmul.f32 %v2047_v47, %v4747_v59  ;;  %v1220_v57 = vmul.f32 %v2047_v47, %v4748_v63  ;;  %v1221_v42 = vmul.f32 %v2047_v47, %v4749_v56  ;;  %v4750_v24 = vld [vmem:[#allocation108_spill] sm:$0xff]  ;;  %v4751_v53 = vld [vmem:[#allocation95_spill] sm:$0xff]  ;;  %v4752_v20 = vld [vmem:[#allocation109_spill] sm:$0xff]  ;;  %v3527_v3 = vadd.f32 %v1195_v32, %v3388_v4 }
  0x96   : > { %v1222_v60 = vmul.f32 %v2047_v47, %v4750_v24  ;;  %v1223_v38 = vmul.f32 %v2047_v47, %v4751_v53  ;;  %v1224_v54 = vmul.f32 %v2047_v47, %v4752_v20  ;;  %v3530_v10 = vadd.f32 %v1196_v0, %v3391_v35  ;;  %v4792_v33 = vld [vmem:[#allocation53_spill] sm:$0xff]  ;;  %v4794_v24 = vld [vmem:[#allocation54_spill] sm:$0xff] }
  0x97   : > { %v3533_v63 = vadd.f32 %v1197_v44, %v3394_v50  ;;  %v3536_v56 = vadd.f32 %v1198_v14, %v3397_v25  ;;  %v3539_v53 = vadd.f32 %v1199_v1, %v3400_v12  ;;  %v3542_v20 = vadd.f32 %v1200_v39, %v3403_v55  ;;  %v4765_v1 = vld [vmem:[#allocation9_spill] sm:$0xff]  ;;  %v4767_v39 = vld [vmem:[#allocation6_spill] sm:$0xff] }
  0x98   : > { %v3545_v47 = vadd.f32 %v1201_v31, %v3406_v9  ;;  %v3548_v4 = vadd.f32 %v1202_v40, %v3409_v49  ;;  %v3551_v35 = vadd.f32 %v1203_v2, %v3412_v13  ;;  %v3554_v50 = vadd.f32 %v1204_v15, %v3415_v5  ;;  %v4769_v31 = vld [vmem:[#allocation11_spill] sm:$0xff]  ;;  %v4771_v40 = vld [vmem:[#allocation10_spill] sm:$0xff]  ;;  %v4776_v15 = vld [vmem:[#allocation45_spill] sm:$0xff] }
  0x99   : > { %v3557_v25 = vadd.f32 %v1205_v11, %v3418_v51  ;;  %v3560_v12 = vadd.f32 %v1206_v28, %v3421_v6  ;;  %v3563_v55 = vadd.f32 %v1207_v58, %v3424_v21  ;;  %v3566_v9 = vadd.f32 %v1208_v52, %v3427_v17  ;;  %v4779_v28 = vld [vmem:[#allocation62_spill] sm:$0xff]  ;;  %v4793_v26 = vld [vmem:[#allocation69_spill] sm:$0xff] }
  0x9a   : > { %v3569_v49 = vadd.f32 %v1209_v16, %v3430_v46  ;;  %v3572_v13 = vadd.f32 %v1210_v27, %v3433_v8  ;;  %v3575_v5 = vadd.f32 %v1211_v30, %v3436_v45  ;;  %v3578_v51 = vadd.f32 %v1212_v34, %v3439_v48  ;;  %v4753_v46 = vld [vmem:[#allocation77_spill] sm:$0xff]  ;;  %v4755_v8 = vld [vmem:[#allocation78_spill] sm:$0xff]  ;;  %v4757_v45 = vld [vmem:[#allocation12_spill] sm:$0xff] }
  0x9b   : > { %v3581_v6 = vadd.f32 %v1213_v22, %v3442_v7  ;;  %v3584_v21 = vadd.f32 %v1214_v37, %v3445_v18  ;;  %v3587_v17 = vadd.f32 %v1215_v23, %v3448_v43  ;;  %v3590_v32 = vadd.f32 %v1216_v36, %v4753_v46  ;;  %v2049_v48 = vld [vmem:[%s4226_s1 + $0x8] ss:$0 sm:$0xff]  ;;  %v4759_v7 = vld [vmem:[#allocation13_spill] sm:$0xff]  ;;  %v4763_v43 = vld [vmem:[#allocation44_spill] sm:$0xff] }
  0x9c   : > { %v3593_v0 = vadd.f32 %v1217_v41, %v4755_v8  ;;  %v3596_v44 = vadd.f32 %v1218_v61, %v4757_v45  ;;  %v3602_v52 = vadd.f32 %v1219_v62, %v4759_v7  ;;  %v4761_v18 = vld [vmem:[#allocation57_spill] sm:$0xff]  ;;  %v3608_v16 = vadd.f32 %v1221_v42, %v4763_v43  ;;  %v4773_v62 = vld [vmem:[#allocation7_spill] sm:$0xff]  ;;  %v4782_v46 = vld [vmem:[#allocation48_spill] sm:$0xff] }
  0x9d   : > { %4754 = vst [vmem:[#allocation75_spill] sm:$0xff] %v3590_v32  ;;  %v3605_v14 = vadd.f32 %v1220_v57, %v4761_v18  ;;  %v3611_v27 = vadd.f32 %v1222_v60, %v4765_v1  ;;  %v3614_v30 = vadd.f32 %v1223_v38, %v4767_v39  ;;  %v3617_v34 = vadd.f32 %v1224_v54, %v4769_v31  ;;  %v4775_v57 = vld [vmem:[#allocation60_spill] sm:$0xff]  ;;  %v4777_v23 = vld [vmem:[#allocation61_spill] sm:$0xff]  ;;  %v4778_v60 = vld [vmem:[#allocation46_spill] sm:$0xff] }
  0x9e   : > { %4756 = vst [vmem:[#allocation76_spill] sm:$0xff] %v3593_v0  ;;  %4758 = vst [vmem:[#allocation80_spill] sm:$0xff] %v3596_v44  ;;  %v3620_v22 = vadd.f32 %v1225_v29, %v4771_v40  ;;  %v3623_v2 = vadd.f32 %v1226_v19, %v4773_v62  ;;  %v1267_v37 = vmul.f32 %v2049_v48, %v4775_v57  ;;  %v4780_v41 = vld [vmem:[#allocation47_spill] sm:$0xff]  ;;  %v4783_v8 = vld [vmem:[#allocation64_spill] sm:$0xff] }
  0x9f   : > { %4760 = vst [vmem:[#allocation94_spill] sm:$0xff] %v3602_v52  ;;  %4762 = vst [vmem:[#allocation77_spill] sm:$0xff] %v3605_v14  ;;  %v1268_v42 = vmul.f32 %v2049_v48, %v4776_v15  ;;  %v1269_v11 = vmul.f32 %v2049_v48, %v4777_v23  ;;  %v1270_v36 = vmul.f32 %v2049_v48, %v4778_v60  ;;  %v4781_v54 = vld [vmem:[#allocation63_spill] sm:$0xff]  ;;  %v4784_v19 = vld [vmem:[#allocation49_spill] sm:$0xff] }
  0xa0   : > { %4764 = vst [vmem:[#allocation78_spill] sm:$0xff] %v3608_v16  ;;  %4766 = vst [vmem:[#allocation12_spill] sm:$0xff] %v3611_v27  ;;  %v1271_v38 = vmul.f32 %v2049_v48, %v4779_v28  ;;  %v1272_v58 = vmul.f32 %v2049_v48, %v4780_v41  ;;  %v1273_v61 = vmul.f32 %v2049_v48, %v4781_v54  ;;  %v4785_v18 = vld [vmem:[#allocation65_spill] sm:$0xff]  ;;  %v4786_v1 = vld [vmem:[#allocation50_spill] sm:$0xff] }
  0xa1   : > { %4768 = vst [vmem:[#allocation13_spill] sm:$0xff] %v3614_v30  ;;  %4770 = vst [vmem:[#allocation57_spill] sm:$0xff] %v3617_v34  ;;  %v1274_v29 = vmul.f32 %v2049_v48, %v4782_v46  ;;  %v1275_v45 = vmul.f32 %v2049_v48, %v4783_v8  ;;  %v1276_v7 = vmul.f32 %v2049_v48, %v4784_v19  ;;  %v4787_v31 = vld [vmem:[#allocation66_spill] sm:$0xff]  ;;  %v4788_v62 = vld [vmem:[#allocation51_spill] sm:$0xff] }
  0xa2   : > { %4772 = vst [vmem:[#allocation44_spill] sm:$0xff] %v3620_v22  ;;  %4774 = vst [vmem:[#allocation9_spill] sm:$0xff] %v3623_v2  ;;  %v1277_v43 = vmul.f32 %v2049_v48, %v4785_v18  ;;  %v1278_v39 = vmul.f32 %v2049_v48, %v4786_v1  ;;  %v1279_v40 = vmul.f32 %v2049_v48, %v4787_v31  ;;  %v4789_v15 = vld [vmem:[#allocation67_spill] sm:$0xff]  ;;  %v4790_v60 = vld [vmem:[#allocation52_spill] sm:$0xff] }
  0xa3   : > { %v1280_v57 = vmul.f32 %v2049_v48, %v4788_v62  ;;  %v1281_v23 = vmul.f32 %v2049_v48, %v4789_v15  ;;  %v1282_v28 = vmul.f32 %v2049_v48, %v4790_v60  ;;  %v4791_v41 = vld [vmem:[#allocation68_spill] sm:$0xff]  ;;  %v1284_v46 = vmul.f32 %v2049_v48, %v4792_v33  ;;  %v4795_v59 = vld [vmem:[#allocation70_spill] sm:$0xff]  ;;  %v4796_v2 = vld [vmem:[#allocation55_spill] sm:$0xff] }
  0xa4   : > { %v1283_v54 = vmul.f32 %v2049_v48, %v4791_v41  ;;  %v1285_v8 = vmul.f32 %v2049_v48, %v4793_v26  ;;  %v1286_v19 = vmul.f32 %v2049_v48, %v4794_v24  ;;  %v1287_v18 = vmul.f32 %v2049_v48, %v4795_v59  ;;  %v4797_v22 = vld [vmem:[#allocation71_spill] sm:$0xff]  ;;  %v4798_v34 = vld [vmem:[#allocation56_spill] sm:$0xff]  ;;  %v4800_v27 = vld [vmem:[#allocation58_spill] sm:$0xff] }
  0xa5   : > { %v1288_v1 = vmul.f32 %v2049_v48, %v4796_v2  ;;  %v1289_v31 = vmul.f32 %v2049_v48, %v4797_v22  ;;  %v1290_v62 = vmul.f32 %v2049_v48, %v4798_v34  ;;  %v4799_v30 = vld [vmem:[#allocation72_spill] sm:$0xff]  ;;  %v1292_v60 = vmul.f32 %v2049_v48, %v4800_v27  ;;  %v4801_v16 = vld [vmem:[#allocation73_spill] sm:$0xff]  ;;  %v4802_v14 = vld [vmem:[#allocation59_spill] sm:$0xff] }
  0xa6   : > { %v1291_v15 = vmul.f32 %v2049_v48, %v4799_v30  ;;  %v1293_v41 = vmul.f32 %v2049_v48, %v4801_v16  ;;  %v1294_v33 = vmul.f32 %v2049_v48, %v4802_v14  ;;  %v4803_v52 = vld [vmem:[#allocation110_spill] sm:$0xff]  ;;  %v4804_v44 = vld [vmem:[#allocation79_spill] sm:$0xff]  ;;  %v4805_v0 = vld [vmem:[#allocation5_spill] sm:$0xff]  ;;  %v3658_v22 = vadd.f32 %v1267_v37, %v3527_v3 }
  0xa7   : > { %v1295_v26 = vmul.f32 %v2049_v48, %v4803_v52  ;;  %v1296_v24 = vmul.f32 %v2049_v48, %v4804_v44  ;;  %v1297_v59 = vmul.f32 %v2049_v48, %v4805_v0  ;;  %v4806_v32 = vld [vmem:[#allocation3_spill] sm:$0xff]  ;;  %v3661_v34 = vadd.f32 %v1268_v42, %v3530_v10 }
  0xa8   : > { %v1298_v2 = vmul.f32 %v2049_v48, %v4806_v32  ;;  %v3664_v27 = vadd.f32 %v1269_v11, %v3533_v63  ;;  %v3667_v16 = vadd.f32 %v1270_v36, %v3536_v56  ;;  %v3670_v52 = vadd.f32 %v1271_v38, %v3539_v53  ;;  %v4818_v11 = vld [vmem:[#allocation12_spill] sm:$0xff]  ;;  %v4820_v38 = vld [vmem:[#allocation13_spill] sm:$0xff] }
  0xa9   : > { %v3673_v44 = vadd.f32 %v1272_v58, %v3542_v20  ;;  %v3676_v32 = vadd.f32 %v1273_v61, %v3545_v47  ;;  %v3679_v3 = vadd.f32 %v1274_v29, %v3548_v4  ;;  %v3682_v10 = vadd.f32 %v1275_v45, %v3551_v35  ;;  %v4822_v61 = vld [vmem:[#allocation57_spill] sm:$0xff]  ;;  %v4824_v45 = vld [vmem:[#allocation44_spill] sm:$0xff] }
  0xaa   : > { %v3685_v63 = vadd.f32 %v1276_v7, %v3554_v50  ;;  %v3688_v56 = vadd.f32 %v1277_v43, %v3557_v25  ;;  %v3691_v53 = vadd.f32 %v1278_v39, %v3560_v12  ;;  %v3694_v20 = vadd.f32 %v1279_v40, %v3563_v55  ;;  %v4826_v43 = vld [vmem:[#allocation9_spill] sm:$0xff]  ;;  %v4828_v40 = vld [vmem:[#allocation15_spill] sm:$0xff] }
  0xab   : > { %v3697_v47 = vadd.f32 %v1280_v57, %v3566_v9  ;;  %v3700_v4 = vadd.f32 %v1281_v23, %v3569_v49  ;;  %v3703_v35 = vadd.f32 %v1282_v28, %v3572_v13  ;;  %v3706_v50 = vadd.f32 %v1283_v54, %v3575_v5  ;;  %v4807_v49 = vld [vmem:[#allocation75_spill] sm:$0xff]  ;;  %v4808_v13 = vld [vmem:[#allocation76_spill] sm:$0xff]  ;;  %v4829_v23 = vld [vmem:[#allocation17_spill] sm:$0xff] }
  0xac   : > { %v3709_v25 = vadd.f32 %v1284_v46, %v3578_v51  ;;  %v3712_v12 = vadd.f32 %v1285_v8, %v3581_v6  ;;  %v3715_v55 = vadd.f32 %v1286_v19, %v3584_v21  ;;  %v3718_v9 = vadd.f32 %v1287_v18, %v3587_v17  ;;  %v4810_v5 = vld [vmem:[#allocation80_spill] sm:$0xff]  ;;  %v2051_v51 = vld [vmem:[%s4226_s1 + $0x9] ss:$0 sm:$0xff]  ;;  %v4812_v6 = vld [vmem:[#allocation94_spill] sm:$0xff] }
  0xad   : > { %v3721_v0 = vadd.f32 %v1288_v1, %v4807_v49  ;;  %v3724_v48 = vadd.f32 %v1289_v31, %v4808_v13  ;;  %v3727_v14 = vadd.f32 %v1290_v62, %v4810_v5  ;;  %v3733_v30 = vadd.f32 %v1291_v15, %v4812_v6  ;;  %v4814_v21 = vld [vmem:[#allocation77_spill] sm:$0xff]  ;;  %v4816_v17 = vld [vmem:[#allocation78_spill] sm:$0xff]  ;;  %v4831_v8 = vld [vmem:[#allocation19_spill] sm:$0xff] }
  0xae   : > { %v3736_v37 = vadd.f32 %v1292_v60, %v4814_v21  ;;  %v3739_v42 = vadd.f32 %v1293_v41, %v4816_v17  ;;  %v3742_v36 = vadd.f32 %v1294_v33, %v4818_v11  ;;  %v3745_v58 = vadd.f32 %v1295_v26, %v4820_v38  ;;  %v4830_v54 = vld [vmem:[#allocation18_spill] sm:$0xff]  ;;  %v4832_v18 = vld [vmem:[#allocation20_spill] sm:$0xff]  ;;  %v4833_v31 = vld [vmem:[#allocation21_spill] sm:$0xff] }
  0xaf   : > { %4809 = vst [vmem:[#allocation6_spill] sm:$0xff] %v3724_v48  ;;  %4811 = vst [vmem:[#allocation11_spill] sm:$0xff] %v3727_v14  ;;  %v3748_v29 = vadd.f32 %v1296_v24, %v4822_v61  ;;  %v3751_v7 = vadd.f32 %v1297_v59, %v4824_v45  ;;  %v3754_v39 = vadd.f32 %v1298_v2, %v4826_v43  ;;  %v4834_v15 = vld [vmem:[#allocation22_spill] sm:$0xff]  ;;  %v4835_v41 = vld [vmem:[#allocation23_spill] sm:$0xff] }
  0xb0   : > { %4813 = vst [vmem:[#allocation10_spill] sm:$0xff] %v3733_v30  ;;  %4815 = vst [vmem:[#allocation7_spill] sm:$0xff] %v3736_v37  ;;  %v1336_v57 = vmul.f32 %v2051_v51, %v4828_v40  ;;  %v1337_v28 = vmul.f32 %v2051_v51, %v4829_v23  ;;  %v1338_v46 = vmul.f32 %v2051_v51, %v4830_v54  ;;  %v4836_v26 = vld [vmem:[#allocation24_spill] sm:$0xff]  ;;  %v4837_v59 = vld [vmem:[#allocation25_spill] sm:$0xff] }
  0xb1   : > { %4817 = vst [vmem:[#allocation60_spill] sm:$0xff] %v3739_v42  ;;  %4819 = vst [vmem:[#allocation45_spill] sm:$0xff] %v3742_v36  ;;  %v1339_v19 = vmul.f32 %v2051_v51, %v4831_v8  ;;  %v1340_v1 = vmul.f32 %v2051_v51, %v4832_v18  ;;  %v1341_v62 = vmul.f32 %v2051_v51, %v4833_v31  ;;  %v4838_v49 = vld [vmem:[#allocation26_spill] sm:$0xff]  ;;  %v4839_v5 = vld [vmem:[#allocation27_spill] sm:$0xff] }
  0xb2   : > { %4821 = vst [vmem:[#allocation61_spill] sm:$0xff] %v3745_v58  ;;  %4823 = vst [vmem:[#allocation46_spill] sm:$0xff] %v3748_v29  ;;  %v1342_v60 = vmul.f32 %v2051_v51, %v4834_v15  ;;  %v1343_v33 = vmul.f32 %v2051_v51, %v4835_v41  ;;  %v1344_v24 = vmul.f32 %v2051_v51, %v4836_v26  ;;  %v4840_v21 = vld [vmem:[#allocation28_spill] sm:$0xff]  ;;  %v4841_v11 = vld [vmem:[#allocation29_spill] sm:$0xff] }
  0xb3   : > { %4825 = vst [vmem:[#allocation62_spill] sm:$0xff] %v3751_v7  ;;  %4827 = vst [vmem:[#allocation47_spill] sm:$0xff] %v3754_v39  ;;  %v1345_v2 = vmul.f32 %v2051_v51, %v4837_v59  ;;  %v1346_v13 = vmul.f32 %v2051_v51, %v4838_v49  ;;  %v1347_v6 = vmul.f32 %v2051_v51, %v4839_v5  ;;  %v4842_v61 = vld [vmem:[#allocation30_spill] sm:$0xff]  ;;  %v4843_v43 = vld [vmem:[#allocation31_spill] sm:$0xff] }
  0xb4   : > { %v1348_v17 = vmul.f32 %v2051_v51, %v4840_v21  ;;  %v1349_v38 = vmul.f32 %v2051_v51, %v4841_v11  ;;  %v1350_v45 = vmul.f32 %v2051_v51, %v4842_v61  ;;  %v1351_v40 = vmul.f32 %v2051_v51, %v4843_v43  ;;  %v4844_v23 = vld [vmem:[#allocation32_spill] sm:$0xff]  ;;  %v4845_v8 = vld [vmem:[#allocation33_spill] sm:$0xff]  ;;  %v4846_v31 = vld [vmem:[#allocation34_spill] sm:$0xff] }
  0xb5   : > { %v1352_v54 = vmul.f32 %v2051_v51, %v4844_v23  ;;  %v1353_v18 = vmul.f32 %v2051_v51, %v4845_v8  ;;  %v1354_v15 = vmul.f32 %v2051_v51, %v4846_v31  ;;  %v4847_v41 = vld [vmem:[#allocation35_spill] sm:$0xff]  ;;  %v4848_v59 = vld [vmem:[#allocation36_spill] sm:$0xff]  ;;  %v4849_v39 = vld [vmem:[#allocation37_spill] sm:$0xff] }
  0xb6   : > { %v1355_v26 = vmul.f32 %v2051_v51, %v4847_v41  ;;  %v1356_v49 = vmul.f32 %v2051_v51, %v4848_v59  ;;  %v1357_v5 = vmul.f32 %v2051_v51, %v4849_v39  ;;  %v4850_v7 = vld [vmem:[#allocation38_spill] sm:$0xff]  ;;  %v4851_v29 = vld [vmem:[#allocation39_spill] sm:$0xff]  ;;  %v4852_v58 = vld [vmem:[#allocation40_spill] sm:$0xff]  ;;  %v1367_v39 = vadd.f32 %v1336_v57, %v3658_v22 }
  0xb7   : > { %v1358_v21 = vmul.f32 %v2051_v51, %v4850_v7  ;;  %v1359_v11 = vmul.f32 %v2051_v51, %v4851_v29  ;;  %v1360_v61 = vmul.f32 %v2051_v51, %v4852_v58  ;;  %v4853_v36 = vld [vmem:[#allocation41_spill] sm:$0xff]  ;;  %v4854_v42 = vld [vmem:[#allocation42_spill] sm:$0xff]  ;;  %v4855_v37 = vld [vmem:[#allocation43_spill] sm:$0xff]  ;;  %v1368_v7 = vadd.f32 %v1337_v28, %v3661_v34 }
  0xb8   : > { %v1361_v43 = vmul.f32 %v2051_v51, %v4853_v36  ;;  %v1362_v23 = vmul.f32 %v2051_v51, %v4854_v42  ;;  %v1363_v8 = vmul.f32 %v2051_v51, %v4855_v37  ;;  %v4856_v30 = vld [vmem:[#allocation14_spill] sm:$0xff]  ;;  %v4857_v14 = vld [vmem:[#allocation16_spill] sm:$0xff]  ;;  %v1369_v29 = vadd.f32 %v1338_v46, %v3664_v27 }
  0xb9   : > { %v1364_v31 = vmul.f32 %v4856_v30, %v2051_v51  ;;  %v1365_v41 = vmul.f32 %v4857_v14, %v2051_v51  ;;  %v4858_v48 = vld [vmem:[#allocation2_spill] sm:$0xff]  ;;  %v1370_v58 = vadd.f32 %v1339_v19, %v3667_v16  ;;  %v1371_v36 = vadd.f32 %v1340_v1, %v3670_v52  ;;  %v4865_v46 = vld [vmem:[#allocation61_spill] sm:$0xff] }
  0xba   : > { %v1366_v59 = vmul.f32 %v2051_v51, %v4858_v48  ;;  %v1372_v42 = vadd.f32 %v1341_v62, %v3673_v44  ;;  %v1373_v37 = vadd.f32 %v1342_v60, %v3676_v32  ;;  %v3795_v30 = vadd.f32 %v1343_v33, %v3679_v3  ;;  %v4866_v1 = vld [vmem:[#allocation46_spill] sm:$0xff] }
  0xbb   : > { %v3798_v14 = vadd.f32 %v1344_v24, %v3682_v10  ;;  %v3801_v22 = vadd.f32 %v1345_v2, %v3685_v63  ;;  %v3804_v34 = vadd.f32 %v1346_v13, %v3688_v56  ;;  %v3807_v27 = vadd.f32 %v1347_v6, %v3691_v53  ;;  %v4868_v60 = vld [vmem:[#allocation62_spill] sm:$0xff]  ;;  %v4870_v24 = vld [vmem:[#allocation47_spill] sm:$0xff]  ;;  %v4872_v13 = vld [vmem:[#allocation4_spill] sm:$0xff] }
  0xbc   : > { %v3810_v16 = vadd.f32 %v1348_v17, %v3694_v20  ;;  %v3813_v52 = vadd.f32 %v1349_v38, %v3697_v47  ;;  %v3816_v44 = vadd.f32 %v1350_v45, %v3700_v4  ;;  %v3819_v32 = vadd.f32 %v1351_v40, %v3703_v35  ;;  %v4859_v47 = vld [vmem:[#allocation6_spill] sm:$0xff]  ;;  %v4860_v35 = vld [vmem:[#allocation11_spill] sm:$0xff]  ;;  %v4873_v17 = vld [vmem:[#allocation81_spill] sm:$0xff] }
  0xbd   : > { %v3822_v3 = vadd.f32 %v1352_v54, %v3706_v50  ;;  %v3825_v10 = vadd.f32 %v1353_v18, %v3709_v25  ;;  %v3828_v63 = vadd.f32 %v1354_v15, %v3712_v12  ;;  %v3831_v56 = vadd.f32 %v1355_v26, %v3715_v55  ;;  %v4861_v25 = vld [vmem:[#allocation10_spill] sm:$0xff]  ;;  %v2053_v12 = vld [vmem:[%s4226_s1 + $0xa] ss:$0 sm:$0xff]  ;;  %v4874_v45 = vld [vmem:[#allocation96_spill] sm:$0xff] }
  0xbe   : > { %v3834_v53 = vadd.f32 %v1356_v49, %v3718_v9  ;;  %v3837_v20 = vadd.f32 %v1357_v5, %v3721_v0  ;;  %v3840_v4 = vadd.f32 %v1358_v21, %v4859_v47  ;;  %v3843_v50 = vadd.f32 %v1359_v11, %v4860_v35  ;;  %v4862_v55 = vld [vmem:[#allocation7_spill] sm:$0xff]  ;;  %v4863_v9 = vld [vmem:[#allocation60_spill] sm:$0xff]  ;;  %v4864_v0 = vld [vmem:[#allocation45_spill] sm:$0xff] }
  0xbf   : > { %v3846_v48 = vadd.f32 %v1360_v61, %v4861_v25  ;;  %v3852_v51 = vadd.f32 %v1361_v43, %v4862_v55  ;;  %v3855_v57 = vadd.f32 %v1362_v23, %v4863_v9  ;;  %v3858_v28 = vadd.f32 %v1363_v8, %v4864_v0  ;;  %v4875_v54 = vld [vmem:[#allocation82_spill] sm:$0xff]  ;;  %v4876_v15 = vld [vmem:[#allocation97_spill] sm:$0xff]  ;;  %v4877_v49 = vld [vmem:[#allocation83_spill] sm:$0xff] }
  0xc0   : > { %v3861_v19 = vadd.f32 %v1364_v31, %v4865_v46  ;;  %v3864_v62 = vadd.f32 %v1365_v41, %v4866_v1  ;;  %v3867_v33 = vadd.f32 %v1366_v59, %v4868_v60  ;;  %v3870_v2 = vadd.f32 %v1366_v59, %v4870_v24  ;;  %v4878_v21 = vld [vmem:[#allocation98_spill] sm:$0xff]  ;;  %v4879_v61 = vld [vmem:[#allocation84_spill] sm:$0xff]  ;;  %v4880_v23 = vld [vmem:[#allocation99_spill] sm:$0xff] }
  0xc1   : > { %v1402_v6 = vsel %vm629_vm1, %v4872_v13, 0.0  ;;  %v1408_v38 = vmul.f32 %v2053_v12, %v4873_v17  ;;  %v1409_v40 = vmul.f32 %v2053_v12, %v4874_v45  ;;  %v1410_v18 = vmul.f32 %v2053_v12, %v4875_v54  ;;  %v4881_v31 = vld [vmem:[#allocation85_spill] sm:$0xff]  ;;  %v4882_v59 = vld [vmem:[#allocation100_spill] sm:$0xff]  ;;  %v4883_v35 = vld [vmem:[#allocation86_spill] sm:$0xff] }
  0xc2   : > { %4867 = vst [vmem:[#allocation63_spill] sm:$0xff] %v3864_v62  ;;  %4869 = vst [vmem:[#allocation48_spill] sm:$0xff] %v3867_v33  ;;  %v1411_v26 = vmul.f32 %v2053_v12, %v4876_v15  ;;  %v1412_v5 = vmul.f32 %v2053_v12, %v4877_v49  ;;  %v1413_v11 = vmul.f32 %v2053_v12, %v4878_v21  ;;  %v4884_v55 = vld [vmem:[#allocation101_spill] sm:$0xff]  ;;  %v4885_v0 = vld [vmem:[#allocation87_spill] sm:$0xff] }
  0xc3   : > { %4871 = vst [vmem:[#allocation64_spill] sm:$0xff] %v3870_v2  ;;  %v1414_v43 = vmul.f32 %v2053_v12, %v4879_v61  ;;  %v1415_v8 = vmul.f32 %v2053_v12, %v4880_v23  ;;  %v1416_v41 = vmul.f32 %v2053_v12, %v4881_v31  ;;  %v1417_v47 = vmul.f32 %v2053_v12, %v4882_v59  ;;  %v4886_v1 = vld [vmem:[#allocation102_spill] sm:$0xff]  ;;  %v4887_v24 = vld [vmem:[#allocation88_spill] sm:$0xff]  ;;  %v4888_v45 = vld [vmem:[#allocation103_spill] sm:$0xff] }
  0xc4   : > { %v1418_v25 = vmul.f32 %v2053_v12, %v4883_v35  ;;  %v1419_v9 = vmul.f32 %v2053_v12, %v4884_v55  ;;  %v1420_v46 = vmul.f32 %v2053_v12, %v4885_v0  ;;  %v1421_v60 = vmul.f32 %v2053_v12, %v4886_v1  ;;  %v4889_v15 = vld [vmem:[#allocation89_spill] sm:$0xff]  ;;  %v4890_v31 = vld [vmem:[#allocation104_spill] sm:$0xff]  ;;  %v4891_v59 = vld [vmem:[#allocation90_spill] sm:$0xff] }
  0xc5   : > { %v1422_v17 = vmul.f32 %v2053_v12, %v4887_v24  ;;  %v1423_v54 = vmul.f32 %v2053_v12, %v4888_v45  ;;  %v1424_v49 = vmul.f32 %v2053_v12, %v4889_v15  ;;  %v1440_v21 = vadd.f32 %v1408_v38, %v1367_v39  ;;  %v4892_v35 = vld [vmem:[#allocation105_spill] sm:$0xff]  ;;  %v3899_v0 = vld [vmem:[%s4227_s2] ss:$0 sm:$0xff]  ;;  %v4893_v1 = vld [vmem:[#allocation91_spill] sm:$0xff] }
  0xc6   : > { %v1441_v61 = vadd.f32 %v1409_v40, %v1368_v7  ;;  %v1442_v23 = vadd.f32 %v1410_v18, %v1369_v29  ;;  %v1425_v2 = vmul.f32 %v2053_v12, %v4890_v31  ;;  %v1426_v33 = vmul.f32 %v2053_v12, %v4891_v59  ;;  %v4894_v45 = vld [vmem:[#allocation106_spill] sm:$0xff]  ;;  %v4895_v7 = vld [vmem:[#allocation92_spill] sm:$0xff]  ;;  %v4896_v40 = vld [vmem:[#allocation107_spill] sm:$0xff] }
  0xc7   : > { %v3894_v62 = vmul.f32 %v2053_v12, %v4892_v35  ;;  %v1443_v55 = vadd.f32 %v1411_v26, %v1370_v58  ;;  %v3902_v24 = vmul.f32 %v2053_v12, %v4893_v1  ;;  %v3905_v39 = vmul.f32 %v2053_v12, %v4894_v45  ;;  %v4897_v15 = vld [vmem:[#allocation93_spill] sm:$0xff]  ;;  %v4898_v26 = vld [vmem:[#allocation108_spill] sm:$0xff] }
  0xc8   : > { %v3908_v29 = vmul.f32 %v2053_v12, %v4895_v7  ;;  %v1444_v38 = vadd.f32 %v1412_v5, %v1371_v36  ;;  %v3911_v18 = vmul.f32 %v2053_v12, %v4896_v40  ;;  %v3914_v58 = vmul.f32 %v2053_v12, %v4897_v15  ;;  %v4899_v36 = vld [vmem:[#allocation95_spill] sm:$0xff]  ;;  %v4900_v40 = vld [vmem:[#allocation109_spill] sm:$0xff] }
  0xc9   : > { %v3917_v31 = vmul.f32 %v2053_v12, %v4898_v26  ;;  %v1445_v59 = vadd.f32 %v1413_v11, %v1372_v42  ;;  %v1446_v35 = vadd.f32 %v1414_v43, %v1373_v37  ;;  %v3920_v1 = vadd.f32 %v3899_v0, %v1440_v21  ;;  %v4901_v37 = vld [vmem:[#allocation8_spill] sm:$0xff]  ;;  %v4902_v43 = vld [vmem:[#allocation74_spill] sm:$0xff] }
  0xca   : > { %v3923_v45 = vadd.f32 %v3899_v0, %v1441_v61  ;;  %v3926_v7 = vadd.f32 %v3899_v0, %v1442_v23  ;;  %v3929_v5 = vmul.f32 %v2053_v12, %v4899_v36  ;;  %v3932_v15 = vmul.f32 %v2053_v12, %v4900_v40 }
  0xcb   : > { %v1447_v26 = vadd.f32 %v1415_v8, %v3795_v30  ;;  %v3936_v42 = vadd.f32 %v3899_v0, %v1443_v55  ;;  %v3939_v11 = vmul.f32 %v2053_v12, %v4901_v37  ;;  %v3942_v21 = vmul.f32 %v2053_v12, %v4902_v43 }
  0xcc   : > { %v1448_v61 = vadd.f32 %v1416_v41, %v3798_v14  ;;  %v3946_v23 = vadd.f32 %v3899_v0, %v1444_v38  ;;  %v3949_v36 = vmul.f32 %v2053_v12, %v4872_v13  ;;  %v1449_v40 = vadd.f32 %v1417_v47, %v3801_v22 }
  0xcd   : > { %v1450_v30 = vadd.f32 %v1418_v25, %v3804_v34  ;;  %v3954_v8 = vadd.f32 %v3899_v0, %v1445_v59  ;;  %v3957_v55 = vadd.f32 %v3899_v0, %v1446_v35  ;;  %v2055_v37 = vmul.f32 -1.442695, %v3920_v1 }
  0xce   : > { %v2056_v14 = vmul.f32 -1.442695, %v3923_v45  ;;  %v2057_v41 = vmul.f32 -1.442695, %v3926_v7  ;;  %v3962_v38 = vmul.f32 %v2053_v12, %v1402_v6  ;;  %v1451_v13 = vadd.f32 %v1419_v9, %v3807_v27 }
  0xcf   : > { %v3966_v22 = vadd.f32 %v3899_v0, %v1447_v26  ;;  %v2058_v34 = vmul.f32 -1.442695, %v3936_v42  ;;  %v1452_v47 = vadd.f32 %v1420_v46, %v3810_v16  ;;  %v3971_v25 = vadd.f32 %v3899_v0, %v1448_v61 }
  0xd0   : > { %2294 = vpow2.f32 %v2055_v37  ;;  %v2059_v59 = vmul.f32 -1.442695, %v3946_v23  ;;  %v1453_v35 = vadd.f32 %v1421_v60, %v3813_v52  ;;  %v3976_v12 = vadd.f32 %v3899_v0, %v1449_v40 }
  0xd1   : > { %2296 = vpow2.f32 %v2056_v14  ;;  %v2060_v27 = vmul.f32 -1.442695, %v3954_v8  ;;  %v1454_v6 = vadd.f32 %v1422_v17, %v3816_v44  ;;  %v3981_v9 = vadd.f32 %v3899_v0, %v1450_v30 }
  0xd2   : > { %2298 = vpow2.f32 %v2057_v41  ;;  %v2061_v16 = vmul.f32 -1.442695, %v3957_v55  ;;  %v1455_v46 = vadd.f32 %v1423_v54, %v3819_v32  ;;  %v3986_v26 = vadd.f32 %v3899_v0, %v1451_v13 }
  0xd3   : > { %2300 = vpow2.f32 %v2058_v34  ;;  %v2062_v52 = vmul.f32 -1.442695, %v3966_v22  ;;  %v1456_v60 = vadd.f32 %v1424_v49, %v3822_v3  ;;  %v3991_v43 = vadd.f32 %v3899_v0, %v1452_v47 }
  0xd4   : > { %2302 = vpow2.f32 %v2059_v59  ;;  %v2063_v44 = vmul.f32 -1.442695, %v3971_v25  ;;  %v1457_v17 = vadd.f32 %v1425_v2, %v3825_v10  ;;  %v3996_v61 = vadd.f32 %v3899_v0, %v1453_v35 }
  0xd5   : > { %2304 = vpow2.f32 %v2060_v27  ;;  %v2064_v32 = vmul.f32 -1.442695, %v3976_v12  ;;  %v1458_v54 = vadd.f32 %v1426_v33, %v3828_v63  ;;  %v4001_v40 = vadd.f32 %v3899_v0, %v1454_v6 }
  0xd6   : > { %2306 = vpow2.f32 %v2061_v16  ;;  %v2065_v3 = vmul.f32 -1.442695, %v3981_v9  ;;  %v1459_v49 = vadd.f32 %v3894_v62, %v3831_v56  ;;  %v4007_v30 = vadd.f32 %v3899_v0, %v1455_v46 }
  0xd7   : > { %2308 = vpow2.f32 %v2062_v52  ;;  %v2066_v10 = vmul.f32 -1.442695, %v3986_v26  ;;  %v1460_v2 = vadd.f32 %v3902_v24, %v3834_v53  ;;  %v4013_v63 = vadd.f32 %v3899_v0, %v1456_v60 }
  0xd8   : > { %2310 = vpow2.f32 %v2063_v44  ;;  %v2067_v33 = vmul.f32 -1.442695, %v3991_v43  ;;  %v1461_v37 = vadd.f32 %v3905_v39, %v3837_v20  ;;  %v4019_v56 = vadd.f32 %v3899_v0, %v1457_v17 }
  0xd9   : > { %2312 = vpow2.f32 %v2064_v32  ;;  %v2068_v62 = vmul.f32 -1.442695, %v3996_v61  ;;  %v1462_v53 = vadd.f32 %v3908_v29, %v3840_v4  ;;  %v4027_v24 = vadd.f32 %v3899_v0, %v1458_v54 }
  0xda   : > { %v4022_v14 = vpop.eup %2294  ;;  %2314 = vpow2.f32 %v2065_v3  ;;  %v2069_v41 = vmul.f32 -1.442695, %v4001_v40  ;;  %v1463_v20 = vadd.f32 %v3911_v18, %v3843_v50  ;;  %v4035_v39 = vadd.f32 %v3899_v0, %v1459_v49  ;;  %v4904_v49 = vld [vmem:[#allocation48_spill] sm:$0xff] }
  0xdb   : > { %v4030_v13 = vpop.eup %2296  ;;  %2316 = vpow2.f32 %v2066_v10  ;;  %v2070_v34 = vmul.f32 -1.442695, %v4007_v30  ;;  %v1464_v4 = vadd.f32 %v3914_v58, %v3846_v48  ;;  %v4043_v29 = vadd.f32 %v3899_v0, %v1460_v2 }
  0xdc   : > { %v4038_v47 = vpop.eup %2298  ;;  %2318 = vpow2.f32 %v2067_v33  ;;  %v2071_v59 = vmul.f32 -1.442695, %v4013_v63  ;;  %v1465_v50 = vadd.f32 %v3917_v31, %v3852_v51  ;;  %v4051_v18 = vadd.f32 %v3899_v0, %v1461_v37  ;;  %v4905_v33 = vld [vmem:[#allocation64_spill] sm:$0xff] }
  0xdd   : > { %v4046_v35 = vpop.eup %2300  ;;  %2320 = vpow2.f32 %v2068_v62  ;;  %v2072_v27 = vmul.f32 -1.442695, %v4019_v56  ;;  %v1466_v48 = vadd.f32 %v3929_v5, %v3855_v57  ;;  %v4059_v58 = vadd.f32 %v3899_v0, %v1462_v53 }
  0xde   : > { %v4054_v6 = vpop.eup %2302  ;;  %2322 = vpow2.f32 %v2069_v41  ;;  %v2073_v16 = vmul.f32 -1.442695, %v4027_v24  ;;  %v1467_v51 = vadd.f32 %v3932_v15, %v3858_v28  ;;  %v4067_v31 = vadd.f32 %v3899_v0, %v1463_v20  ;;  %v4903_v28 = vld [vmem:[#allocation63_spill] sm:$0xff] }
  0xdf   : > { %v4062_v46 = vpop.eup %2304  ;;  %2324 = vpow2.f32 %v2070_v34  ;;  %v2074_v52 = vmul.f32 -1.442695, %v4035_v39  ;;  %v1468_v57 = vadd.f32 %v3939_v11, %v3861_v19  ;;  %v4075_v5 = vadd.f32 %v3899_v0, %v1464_v4 }
  0xe0   : > { %v4070_v60 = vpop.eup %2306  ;;  %2326 = vpow2.f32 %v2071_v59  ;;  %v2075_v44 = vmul.f32 -1.442695, %v4043_v29  ;;  %v1469_v15 = vadd.f32 %v3942_v21, %v4903_v28  ;;  %v4083_v32 = vadd.f32 %v3899_v0, %v1465_v50 }
  0xe1   : > { %v4078_v17 = vpop.eup %2308  ;;  %2328 = vpow2.f32 %v2072_v27  ;;  %v2076_v54 = vmul.f32 -1.442695, %v4051_v18  ;;  %v1470_v19 = vadd.f32 %v3949_v36, %v4904_v49  ;;  %v4089_v11 = vadd.f32 %v3899_v0, %v1466_v48 }
  0xe2   : > { %v2311_v3 = vpop.eup %2310  ;;  %2330 = vpow2.f32 %v2073_v16  ;;  %v2077_v10 = vmul.f32 -1.442695, %v4059_v58  ;;  %v1471_v21 = vadd.f32 %v3962_v38, %v4905_v33  ;;  %v4095_v37 = vadd.f32 %v3899_v0, %v1467_v51 }
  0xe3   : > { %v2313_v2 = vpop.eup %2312  ;;  %2332 = vpow2.f32 %v2074_v52  ;;  %v2078_v62 = vmul.f32 -1.442695, %v4067_v31  ;;  %v4099_v41 = vadd.f32 %v3899_v0, %v1468_v57  ;;  %v2079_v36 = vmul.f32 -1.442695, %v4075_v5 }
  0xe4   : > { %v2315_v53 = vpop.eup %2314  ;;  %2334 = vpow2.f32 %v2075_v44  ;;  %v4103_v34 = vadd.f32 %v3899_v0, %v1469_v15  ;;  %v2080_v38 = vmul.f32 -1.442695, %v4083_v32  ;;  %v4107_v59 = vadd.f32 %v3899_v0, %v1470_v19 }
  0xe5   : > { %v2317_v20 = vpop.eup %2316  ;;  %2336 = vpow2.f32 %v2076_v54  ;;  %v2081_v50 = vmul.f32 -1.442695, %v4089_v11  ;;  %v4111_v48 = vadd.f32 %v3899_v0, %v1471_v21  ;;  %v2082_v16 = vmul.f32 -1.442695, %v4095_v37 }
  0xe6   : > { %v2319_v4 = vpop.eup %2318  ;;  %4906 = vst [vmem:[#allocation49_spill] sm:$0xff] %v4107_v59  ;;  %2338 = vpow2.f32 %v2077_v10  ;;  %v2083_v52 = vmul.f32 -1.442695, %v4099_v41  ;;  %v2084_v44 = vmul.f32 -1.442695, %v4103_v34  ;;  %v1607_v19 = vadd.f32 1.0, %v4022_v14 }
  0xe7   : > { %v2321_v27 = vpop.eup %2320  ;;  %4907 = vst [vmem:[#allocation65_spill] sm:$0xff] %v4111_v48  ;;  %2340 = vpow2.f32 %v2078_v62  ;;  %v2085_v15 = vmul.f32 -1.442695, %v4107_v59  ;;  %v2086_v0 = vmul.f32 -1.442695, %v4111_v48  ;;  %v1608_v33 = vadd.f32 1.0, %v4030_v13 }
  0xe8   : > { %v2323_v51 = vpop.eup %2322  ;;  %2342 = vpow2.f32 %v2079_v36  ;;  %v1609_v62 = vadd.f32 1.0, %v4038_v47  ;;  %v1612_v14 = vadd.f32 1.0, %v4062_v46 }
  0xe9   : > { %v2325_v57 = vpop.eup %2324  ;;  %2344 = vpow2.f32 %v2080_v38  ;;  %v1610_v38 = vadd.f32 1.0, %v4046_v35 }
  0xea   : > { %v2327_v28 = vpop.eup %2326  ;;  %2346 = vpow2.f32 %v2081_v50  ;;  %v1622_v59 = vadd.f32 1.0, %v2325_v57 }
  0xeb   : > { %v2329_v54 = vpop.eup %2328  ;;  %2348 = vpow2.f32 %v2082_v16  ;;  %v1611_v16 = vadd.f32 1.0, %v4054_v6 }
  0xec   : > { %v2331_v49 = vpop.eup %2330  ;;  %2350 = vpow2.f32 %v2083_v52 }
  0xed   : > { %v2333_v10 = vpop.eup %2332  ;;  %2352 = vpow2.f32 %v2084_v44  ;;  %v1613_v44 = vadd.f32 1.0, %v4070_v60  ;;  %v1618_v60 = vadd.f32 1.0, %v2317_v20  ;;  %v1623_v20 = vadd.f32 1.0, %v2327_v28 }
  0xee   : > { %v2335_v21 = vpop.eup %2334  ;;  %2354 = vpow2.f32 %v2085_v15  ;;  %v1614_v15 = vadd.f32 1.0, %v4078_v17  ;;  %v1619_v17 = vadd.f32 1.0, %v2319_v4 }
  0xef   : > { %v4121_v36 = vpop.eup %2336  ;;  %2356 = vpow2.f32 %v2086_v0  ;;  %v1615_v0 = vadd.f32 1.0, %v2311_v3  ;;  %v1620_v3 = vadd.f32 1.0, %v2321_v27  ;;  %v1624_v27 = vadd.f32 1.0, %v2329_v54 }
  0xf0   : > { %v4124_v50 = vpop.eup %2338  ;;  %2358 = vrcp.f32 %v1607_v19  ;;  %v1616_v19 = vadd.f32 1.0, %v2313_v2  ;;  %v1621_v2 = vadd.f32 1.0, %v2323_v51  ;;  %v1625_v51 = vadd.f32 1.0, %v2331_v49 }
  0xf1   : > { %v4127_v52 = vpop.eup %2340  ;;  %2360 = vrcp.f32 %v1608_v33  ;;  %v1617_v33 = vadd.f32 1.0, %v2315_v53 }
  0xf2   : > { %v4130_v13 = vpop.eup %2342  ;;  %2362 = vrcp.f32 %v1609_v62 }
  0xf3   : > { %v4133_v47 = vpop.eup %2344  ;;  %2364 = vrcp.f32 %v1610_v38 }
  0xf4   : > { %v4136_v35 = vpop.eup %2346  ;;  %2366 = vrcp.f32 %v1611_v16 }
  0xf5   : > { %v4138_v6 = vpop.eup %2348  ;;  %2368 = vrcp.f32 %v1612_v14 }
  0xf6   : > { %v4140_v46 = vpop.eup %2350  ;;  %2370 = vrcp.f32 %v1613_v44 }
  0xf7   : > { %v4142_v48 = vpop.eup %2352  ;;  %2372 = vrcp.f32 %v1614_v15 }
  0xf8   : > { %v4144_v62 = vpop.eup %2354  ;;  %2374 = vrcp.f32 %v1615_v0 }
  0xf9   : > { %v4146_v38 = vpop.eup %2356  ;;  %2376 = vrcp.f32 %v1616_v19 }
  0xfa   : > { %v2359_v16 = vpop.eup %2358  ;;  %2378 = vrcp.f32 %v1617_v33  ;;  %v1626_v33 = vadd.f32 1.0, %v2333_v10 }
  0xfb   : > { %v2361_v14 = vpop.eup %2360  ;;  %2380 = vrcp.f32 %v1618_v60  ;;  %v1703_v53 = vmul.f32 %v2359_v16, %v3920_v1  ;;  %v1627_v60 = vadd.f32 1.0, %v2335_v21 }
  0xfc   : > { %v2363_v44 = vpop.eup %2362  ;;  %2382 = vrcp.f32 %v1619_v17  ;;  %v1704_v15 = vmul.f32 %v2361_v14, %v3923_v45 }
  0xfd   : > { %v2365_v4 = vpop.eup %2364  ;;  %2384 = vrcp.f32 %v1620_v3  ;;  %v1705_v57 = vmul.f32 %v2363_v44, %v3926_v7  ;;  %v1631_v44 = vadd.f32 1.0, %v4130_v13 }
  0xfe   : > { %v2367_v0 = vpop.eup %2366  ;;  %2386 = vrcp.f32 %v1621_v2  ;;  %v1706_v1 = vmul.f32 %v2365_v4, %v3936_v42  ;;  %v2162_v28 = vpack.c.bf16 %v1704_v15, %v1703_v53  ;;  %v1895_v19 = vadd.f32 %v1704_v15, %v1703_v53 }
  0xff   : > { %v2369_v45 = vpop.eup %2368  ;;  %2388 = vrcp.f32 %v1622_v59  ;;  %v1707_v17 = vmul.f32 %v2367_v0, %v3946_v23  ;;  %v1628_v2 = vadd.f32 1.0, %v4121_v36  ;;  %v1629_v42 = vadd.f32 1.0, %v4124_v50 }
 0x100   : > { %v2371_v16 = vpop.eup %2370  ;;  %2390 = vrcp.f32 %v1623_v20  ;;  %v1708_v54 = vmul.f32 %v2369_v45, %v3954_v8  ;;  %2163 = vst [vmem:[%s4155_s20] sm:$0xff] %v2162_v28   ;;  %v2167_v49 = vpack.c.bf16 %v1706_v1, %v1705_v57  ;;  %v1896_v7 = vadd.f32 %v1895_v19, %v1705_v57 }
 0x101   : > { %v2373_v3 = vpop.eup %2372  ;;  %2392 = vrcp.f32 %v1624_v27  ;;  %v1709_v10 = vmul.f32 %v2371_v16, %v3957_v55  ;;  %v1630_v53 = vadd.f32 1.0, %v4127_v52  ;;  %v1632_v4 = vadd.f32 1.0, %v4133_v47 }
 0x102   : > { %v2375_v59 = vpop.eup %2374  ;;  %2394 = vrcp.f32 %v1625_v51  ;;  %v1710_v23 = vmul.f32 %v2373_v3, %v3966_v22  ;;  %2240 = vst [vmem:[%s4155_s20 + $0x8] sm:$0xff] %v2167_v49   ;;  %v2172_v21 = vpack.c.bf16 %v1708_v54, %v1707_v17  ;;  %v1897_v14 = vadd.f32 %v1896_v7, %v1706_v1 }
 0x103   : > { %v2377_v8 = vpop.eup %2376  ;;  %2396 = vrcp.f32 %v1626_v33  ;;  %v1711_v36 = vmul.f32 %v2375_v59, %v3971_v25  ;;  %v1633_v27 = vadd.f32 1.0, %v4136_v35  ;;  %v1634_v0 = vadd.f32 1.0, %v4138_v6 }
 0x104   : > { %v2379_v50 = vpop.eup %2378  ;;  %2398 = vrcp.f32 %v1627_v60  ;;  %v1712_v55 = vmul.f32 %v2377_v8, %v3976_v12  ;;  %2241 = vst [vmem:[%s4155_s20 + $0x10] sm:$0xff] %v2172_v21   ;;  %v2177_v20 = vpack.c.bf16 %v1710_v23, %v1709_v10  ;;  %v1898_v15 = vadd.f32 %v1897_v14, %v1707_v17 }
 0x105   : > { %v2381_v22 = vpop.eup %2380  ;;  %2400 = vrcp.f32 %v1628_v2  ;;  %v1713_v52 = vmul.f32 %v2379_v50, %v3981_v9  ;;  %v1635_v1 = vadd.f32 1.0, %v4140_v46  ;;  %v1636_v45 = vadd.f32 1.0, %v4142_v48 }
 0x106   : > { %v2383_v13 = vpop.eup %2382  ;;  %2402 = vrcp.f32 %v1629_v42  ;;  %v1714_v25 = vmul.f32 %v2381_v22, %v3986_v26  ;;  %2242 = vst [vmem:[%s4155_s20 + $0x18] sm:$0xff] %v2177_v20   ;;  %v2182_v51 = vpack.c.bf16 %v1712_v55, %v1711_v36  ;;  %v1899_v57 = vadd.f32 %v1898_v15, %v1708_v54 }
 0x107   : > { %v2385_v12 = vpop.eup %2384  ;;  %2404 = vrcp.f32 %v1630_v53  ;;  %v1715_v47 = vmul.f32 %v2383_v13, %v3991_v43  ;;  %v1637_v33 = vadd.f32 1.0, %v4144_v62  ;;  %v1638_v16 = vadd.f32 1.0, %v4146_v38 }
 0x108   : > { %v2387_v35 = vpop.eup %2386  ;;  %2406 = vrcp.f32 %v1631_v44  ;;  %v1716_v9 = vmul.f32 %v2385_v12, %v3996_v61  ;;  %2243 = vst [vmem:[%s4155_s20 + $0x20] sm:$0xff] %v2182_v51   ;;  %v2187_v28 = vpack.c.bf16 %v1714_v25, %v1713_v52  ;;  %v1900_v19 = vadd.f32 %v1899_v57, %v1709_v10  ;;  %v4908_v12 = vld [vmem:[#allocation49_spill] sm:$0xff] }
 0x109   : > { %v2389_v26 = vpop.eup %2388  ;;  %2408 = vrcp.f32 %v1632_v4  ;;  %v1717_v6 = vmul.f32 %v2387_v35, %v4001_v40 }
 0x10a   : > { %v2391_v46 = vpop.eup %2390  ;;  %2410 = vrcp.f32 %v1633_v27  ;;  %v4186_v43 = vmul.f32 %v2389_v26, %v4007_v30  ;;  %2244 = vst [vmem:[%s4155_s20 + $0x28] sm:$0xff] %v2187_v28   ;;  %v2192_v60 = vpack.c.bf16 %v1716_v9, %v1715_v47  ;;  %v1901_v61 = vadd.f32 %v1900_v19, %v1710_v23 }
 0x10b   : > { %v2393_v17 = vpop.eup %2392  ;;  %2412 = vrcp.f32 %v1634_v0  ;;  %v1719_v48 = vmul.f32 %v2391_v46, %v4013_v63 }
 0x10c   : > { %v2395_v62 = vpop.eup %2394  ;;  %2414 = vrcp.f32 %v1635_v1  ;;  %v1720_v54 = vmul.f32 %v2393_v17, %v4019_v56  ;;  %2245 = vst [vmem:[%s4155_s20 + $0x30] sm:$0xff] %v2192_v60   ;;  %v2197_v40 = vpack.c.bf16 %v4186_v43, %v1717_v6  ;;  %v1902_v30 = vadd.f32 %v1901_v61, %v1711_v36 }
 0x10d   : > { %v2397_v49 = vpop.eup %2396  ;;  %2416 = vrcp.f32 %v1636_v45  ;;  %v1721_v7 = vmul.f32 %v2395_v62, %v4027_v24 }
 0x10e   : > { %v2399_v3 = vpop.eup %2398  ;;  %2418 = vrcp.f32 %v1637_v33  ;;  %v1722_v38 = vmul.f32 %v2397_v49, %v4035_v39  ;;  %2246 = vst [vmem:[%s4155_s20 + $0x38] sm:$0xff] %v2197_v40   ;;  %v2202_v63 = vpack.c.bf16 %v1720_v54, %v1719_v48  ;;  %v1903_v2 = vadd.f32 %v1902_v30, %v1712_v55 }
 0x10f   : > { %v2401_v42 = vpop.eup %2400  ;;  %2420 = vrcp.f32 %v1638_v16  ;;  %v1723_v10 = vmul.f32 %v2399_v3, %v4043_v29 }
 0x110   : > { %v2403_v56 = vpop.eup %2402  ;;  %v1724_v59 = vmul.f32 %v2401_v42, %v4051_v18  ;;  %2247 = vst [vmem:[%s4155_s20 + $0x40] sm:$0xff] %v2202_v63   ;;  %v2207_v23 = vpack.c.bf16 %v1722_v38, %v1721_v7  ;;  %v1904_v21 = vadd.f32 %v1903_v2, %v1713_v52 }
 0x111   : > { %v2405_v24 = vpop.eup %2404  ;;  %v1725_v8 = vmul.f32 %v2403_v56, %v4059_v58 }
 0x112   : > { %v2407_v14 = vpop.eup %2406  ;;  %v1726_v39 = vmul.f32 %v2405_v24, %v4067_v31  ;;  %2248 = vst [vmem:[%s4155_s20 + $0x48] sm:$0xff] %v2207_v23   ;;  %v2212_v53 = vpack.c.bf16 %v1724_v59, %v1723_v10  ;;  %v1905_v44 = vadd.f32 %v1904_v21, %v1714_v25 }
 0x113   : > { %v2409_v36 = vpop.eup %2408  ;;  %v1727_v29 = vmul.f32 %v2407_v14, %v4075_v5 }
 0x114   : > { %v2411_v50 = vpop.eup %2410  ;;  %v1728_v18 = vmul.f32 %v2409_v36, %v4083_v32  ;;  %2249 = vst [vmem:[%s4155_s20 + $0x50] sm:$0xff] %v2212_v53   ;;  %v2217_v55 = vpack.c.bf16 %v1726_v39, %v1725_v8  ;;  %v1906_v20 = vadd.f32 %v1905_v44, %v1715_v47 }
 0x115   : > { %v2413_v15 = vpop.eup %2412  ;;  %v1729_v58 = vmul.f32 %v2411_v50, %v4089_v11  ;;  %v4909_v11 = vld [vmem:[#allocation65_spill] sm:$0xff] }
 0x116   : > { %v2415_v22 = vpop.eup %2414  ;;  %v1730_v31 = vmul.f32 %v2413_v15, %v4095_v37  ;;  %2250 = vst [vmem:[%s4155_s20 + $0x58] sm:$0xff] %v2217_v55   ;;  %v2222_v4 = vpack.c.bf16 %v1728_v18, %v1727_v29  ;;  %v1907_v27 = vadd.f32 %v1906_v20, %v1716_v9 }
 0x117   : > { %v2417_v52 = vpop.eup %2416  ;;  %v1731_v13 = vmul.f32 %v2415_v22, %v4099_v41 }
 0x118   : > { %v2419_v5 = vpop.eup %2418  ;;  %v1732_v32 = vmul.f32 %v2417_v52, %v4103_v34  ;;  %2251 = vst [vmem:[%s4155_s20 + $0x60] sm:$0xff] %v2222_v4   ;;  %v2227_v25 = vpack.c.bf16 %v1730_v31, %v1729_v58  ;;  %v1908_v51 = vadd.f32 %v1907_v27, %v1717_v6 }
 0x119   : > { %v2421_v57 = vpop.eup %2420  ;;  %v1733_v0 = vmul.f32 %v2419_v5, %v4908_v12 }
 0x11a   : > { %v1734_v1 = vmul.f32 %v2421_v57, %v4909_v11  ;;  %2252 = vst [vmem:[%s4155_s20 + $0x68] sm:$0xff] %v2227_v25   ;;  %v2232_v37 = vpack.c.bf16 %v1732_v32, %v1731_v13  ;;  %v1909_v47 = vadd.f32 %v1908_v51, %v4186_v43 }
 0x11c   : > { %2253 = vst [vmem:[%s4155_s20 + $0x70] sm:$0xff] %v2232_v37   ;;  %v2237_v35 = vpack.c.bf16 %v1734_v1, %v1733_v0  ;;  %v1910_v9 = vadd.f32 %v1909_v47, %v1719_v48 }
 0x11e   : > { %2254 = vst [vmem:[%s4155_s20 + $0x78] sm:$0xff] %v2237_v35   ;;  %v1911_v28 = vadd.f32 %v1910_v9, %v1720_v54 }
 0x120   : > { %v1912_v41 = vadd.f32 %v1911_v28, %v1721_v7 }
 0x122   : > { %v1913_v19 = vadd.f32 %v1912_v41, %v1722_v38 }
 0x124   : > { %v1914_v34 = vadd.f32 %v1913_v19, %v1723_v10 }
 0x126   : > { %v1915_v26 = vadd.f32 %v1914_v34, %v1724_v59 }
 0x128   : > { %v1916_v45 = vadd.f32 %v1915_v26, %v1725_v8 }
 0x12a   : > { %v1917_v33 = vadd.f32 %v1916_v45, %v1726_v39 }
 0x12c   : > { %v1918_v6 = vadd.f32 %v1917_v33, %v1727_v29 }
 0x12e   : > { %v1919_v46 = vadd.f32 %v1918_v6, %v1728_v18 }
 0x130   : > { %v1920_v60 = vadd.f32 %v1919_v46, %v1729_v58 }
 0x132   : > { %v1921_v61 = vadd.f32 %v1920_v60, %v1730_v31 }
 0x134   : > { %v1922_v17 = vadd.f32 %v1921_v61, %v1731_v13 }
 0x136   : > { %v1923_v16 = vadd.f32 %v1922_v17, %v1732_v32 }
 0x138   : > { %v1924_v62 = vadd.f32 %v1923_v16, %v1733_v0 }
 0x13a   : > { %v1925_v43 = vadd.f32 %v1924_v62, %v1734_v1 }
 0x13c   : > { %v1926_v40 = vrot.slane %v1925_v43, 4 }
 0x13e   : > { %v1927_v30 = vadd.f32 %v1926_v40, %v1925_v43 }
 0x140   : > { %v1928_v48 = vrot.slane %v1927_v30, 2 }
 0x142   : > { %v1929_v49 = vadd.f32 %v1928_v48, %v1927_v30 }
 0x144   : > { %v1930_v54 = vrot.slane %v1929_v49, 1 }
 0x146   : > { %v1931_v7 = vadd.f32 %v1930_v54, %v1929_v49 }
 0x148   : > { %v1933_v3 = vmul.f32 0.00390625, %v1931_v7 }
 0x14a   : > { %1934 = vst [vmem:[%s206_s22] sm:$0x1] %v1933_v3 }
 0x14b PF: > { %s15_s15 = sadd.s32 1, %s2428_s15  }
 0x14c   : > { %p12_p4 = scmp.ge.s32.totalorder %s15_s15, 4  }
 0x14e   :  { %14 = sbr.rel (!%p12_p4) target bundleno = 1 (0x1), region = 76 }

// kernel: deepfake_encoder_forward.3
= control target key start
LH: loop header
LB: loop body
LE: loop exit
PB: predicated region body
PF: predicated region fallthrough
CT: control target
= control target key end

     0   :  { %s4088_s21 = smov 0   ;;  %s5028_s0 = inlined_call_operand.vmem [shape: bf16[2,16,16,12], index: 0, kind: input, shape index: {}]   ;;  %s5029_s1 = inlined_call_operand.vmem [shape: f32[4,12,32], index: 1, kind: input, shape index: {}]   ;;  %s5030_s2 = inlined_call_operand.vmem [shape: f32[1,32], index: 2, kind: input, shape index: {}]   ;;  %s5031_s3 = inlined_call_operand.vmem [shape: bf16[32,128], index: 3, kind: input, shape index: {}]   ;;  %s5032_s4 = inlined_call_operand.vmem [shape: f32[1,128], index: 4, kind: input, shape index: {}]   ;;  %s5033_s5 = inlined_call_operand.vmem [shape: bf16[2,256,32], index: 5, kind: output, shape index: {0}]   ;;  %s5034_s6 = inlined_call_operand.vmem [shape: bf16[2,16,16,128], index: 6, kind: output, shape index: {1}]  }
   0x1 LB: > { %s2717_s22 = sadd.s32 4294967295, %s4049_s21   ;;  %p2721_p0 = scmp.ge.s32.totalorder %s4049_s21, 1  ;;  %s4049_s21 = sphi %s4088_s21, %s17_s21  }
   0x2   : > { %p215_p1 = scmp.lt.s32.totalorder %s4049_s21, 3 }
   0x4   : > { %p216_p2 = pnand %p2721_p0, %p215_p1 }
   0x5   : > { %v441_v0 = vld [vmem:[%s5029_s1] sm:$0xff] (!%p216_p2)  ;;  %v442_v1 = vld [vmem:[%s5029_s1 + $0x8] sm:$0xf] (!%p216_p2)  ;;  %vm509_vm0 = vcmask (!%p216_p2), 1043456   ;;  %vm4051_vm1 = vmmov (!%p216_p2), 1   ;;  %vm361_vm3 = vcmask (!%p216_p2), 1040384  }
   0x6   : > { %219 = sbr.rel (%p216_p2) target bundleno = 680 (0x2a8), region = 40  ;;  %vm4102_vm2 = vmpackc.low (!%p216_p2), %vm509_vm0, %vm4051_vm1  ;;  %v3659_v3 = vpack.c.bf16 (!%p216_p2), %v442_v1, %v441_v0  ;;  %v2794_v4 = vld [vmem:[%s5029_s1 + $0x20] sm:$0xff] (!%p216_p2)  ;;  %v2795_v5 = vld [vmem:[%s5029_s1 + $0x28] sm:$0xf] (!%p216_p2)  ;;  %p250_p3 = scmp.lt.s32.totalorder (!%p216_p2), %s2717_s22, 1  ;;  %v4052_v6 = vmov (!%p216_p2), 0.0  }
   0x7   : > { %v362_v7 = vrot.slane (!%p216_p2), %v4052_v6, 7  ;;  %vm446_vm4 = vcmask (!%p216_p2), 97280   ;;  %v3665_v8 = vpack.c.bf16 (!%p216_p2), %v2795_v5, %v2794_v4  ;;  %v2728_v9 = vld [vmem:[%s5029_s1 + $0x10] sm:$0xff] (!%p216_p2)  ;;  %v2729_v10 = vld [vmem:[%s5029_s1 + $0x18] sm:$0xf] (!%p216_p2)  ;;  %3413 = vmatprep.mubr.f32.mxu1 (!%p216_p2), %v4052_v6  ;;  %vm1979_vm5 = vcmask (!%p216_p2), 257024  }
   0x8   : > { %v2829_v11 = vld [vmem:[%s5029_s1 + $0x30] sm:$0xff] (!%p216_p2)  ;;  %3661 = vmatprep.subr.msk.bf16.mxu0 (!%p216_p2), %vm4102_vm2, %v3659_v3  ;;  %v3653_v12 = vpack.c.bf16 (!%p216_p2), %v2729_v10, %v2728_v9  ;;  %v2830_v13 = vld [vmem:[%s5029_s1 + $0x38] sm:$0xf] (!%p216_p2)  ;;  %vm2035_vm6 = vcmask (!%p216_p2), 261120  }
   0x9   : > { %3664 = vmatpush3.bf16.msk.msra.mxu0 (!%p216_p2), %vm4102_vm2, %v3659_v3  ;;  %v425_v14 = vsel (!%p216_p2), %vm361_vm3, 0.0, %v362_v7  ;;  %v4134_v15 = vpack.c.bf16 (!%p216_p2), %v2830_v13, %v2829_v11 }
   0xa   : > { %3465 = vmatprep.mubr.msk.f32.mxu0 (!%p216_p2), %vm446_vm4, %v425_v14  ;;  %3667 = vmatprep.subr.msk.bf16.mxu0 (!%p216_p2), %vm4102_vm2, %v3665_v8 }
   0xb   : > { %3655 = vmatprep.subr.msk.bf16.mxu1 (!%p216_p2), %vm4102_vm2, %v3653_v12 }
   0xc   : > { %3466 = vmatmul.mubr.msk.f32.vlgmr.msra.gmra.mrb[0].mxu0 (!%p216_p2), %vm446_vm4, %v362_v7  ;;  %3658 = vmatpush3.bf16.msk.msra.mxu1 (!%p216_p2), %vm4102_vm2, %v3653_v12 }
   0xd   : > { %s5038_s22 = smov (!%p250_p3, %s2717_s22), 1  ;;  %3670 = vmatpush3.bf16.msk.msra.mxu0 %vm4102_vm2, %v3665_v8  ;;  %3677 = vmatprep.subr.msk.bf16.mxu1 %vm4102_vm2, %v3659_v3 }
   0xe   : > { %s4132_s15 = sshll.u32 %s5038_s22, 7  ;;  %3673 = vmatprep.subr.msk.bf16.mxu0 %vm4102_vm2, %v4134_v15 }
   0xf   : > { %s4140_s18 = scalar_lea.vmem %s5028_s0, %s4132_s15  ;;  %3414 = vmatmul.mubr.f32.vlgmr.msra.gmra.mrb[0].mxu1 %v4052_v6  ;;  %s4640_s28 = scalar_lea.vmem %s5033_s5, %s4132_s15 }
  0x10   : > { %v3082_v16 = vld [vmem:[%s4140_s18] sm:$0xff]   ;;  %v3225_v17 = vld [vmem:[%s4140_s18 + $0x8] sm:$0xff]   ;;  %v3226_v18 = vld [vmem:[%s4140_s18 + $0x10] sm:$0xff]   ;;  %3678 = vmatpush3.bf16.msk.msra.mxu1 %vm4102_vm2, %v3659_v3  ;;  %s4913_s9 = scalar_lea.vmem %s5034_s6, %s4132_s15 }
  0x11   : > { %v4152_v19 = vunpack.c.l.bf16 %v3082_v16  ;;  %v4154_v20 = vunpack.c.h.bf16 %v3082_v16  ;;  %v4156_v21 = vunpack.c.l.bf16 %v3225_v17  ;;  %v4158_v22 = vunpack.c.h.bf16 %v3225_v17  ;;  %v3227_v23 = vld [vmem:[%s4140_s18 + $0x18] sm:$0xff]   ;;  %v3228_v35 = vld [vmem:[%s4140_s18 + $0x20] sm:$0xff]   ;;  %v3229_v42 = vld [vmem:[%s4140_s18 + $0x28] sm:$0xff]  }
  0x12   : > { %v4163_v24 = vunpack.c.l.bf16 %v3226_v18  ;;  %v4172_v29 = vunpack.c.h.bf16 %v3226_v18  ;;  %v4174_v30 = vunpack.c.l.bf16 %v3227_v23  ;;  %v4203_v38 = vunpack.c.h.bf16 %v3227_v23  ;;  %v3230_v49 = vld [vmem:[%s4140_s18 + $0x30] sm:$0xff]   ;;  %v3231_v0 = vld [vmem:[%s4140_s18 + $0x38] sm:$0xff]   ;;  %v3232_v4 = vld [vmem:[%s4140_s18 + $0x40] sm:$0xff]  }
  0x13   : > { %v364_v25 = vrot.slane %v4152_v19, 7  ;;  %v365_v26 = vrot.slane %v4154_v20, 7  ;;  %v367_v27 = vrot.slane %v4156_v21, 7  ;;  %v368_v28 = vrot.slane %v4158_v22, 7  ;;  %3416 = vmatprep.mubr.msk.f32.mxu1 %vm446_vm4, %v4152_v19  ;;  %v3233_v7 = vld [vmem:[%s4140_s18 + $0x48] sm:$0xff]   ;;  %v3234_v10 = vld [vmem:[%s4140_s18 + $0x50] sm:$0xff]  }
  0x14   : > { %v370_v34 = vrot.slane %v4163_v24, 7  ;;  %3417 = vmatmul.mubr.msk.f32.gmra.mrb[2].mxu1 %vm446_vm4, %v4154_v20  ;;  %v371_v37 = vrot.slane %v4172_v29, 7  ;;  %v373_v40 = vrot.slane %v4174_v30, 7  ;;  %v4211_v41 = vunpack.c.l.bf16 %v3228_v35  ;;  %v3235_v12 = vld [vmem:[%s4140_s18 + $0x58] sm:$0xff]   ;;  %v3237_v18 = vld [vmem:[%s4140_s18 + $0x68] sm:$0xff]  }
  0x15   : > { %v4181_v31 = vsel %vm361_vm3, 0.0, %v364_v25  ;;  %v4184_v32 = vsel %vm361_vm3, %v364_v25, %v365_v26  ;;  %v4187_v33 = vsel %vm361_vm3, 0.0, %v367_v27  ;;  %v4200_v36 = vsel %vm361_vm3, %v367_v27, %v368_v28  ;;  %3419 = vmatprep.mubr.msk.f32.mxu1 %vm446_vm4, %v4156_v21  ;;  %v3238_v27 = vld [vmem:[%s4140_s18 + $0x70] sm:$0xff]  }
  0x16   : > { %3468 = vmatprep.mubr.msk.f32.mxu0 %vm446_vm4, %v4181_v31  ;;  %v4208_v39 = vsel %vm361_vm3, 0.0, %v370_v34  ;;  %v4221_v43 = vsel %vm361_vm3, %v370_v34, %v371_v37  ;;  %v374_v44 = vrot.slane %v4203_v38, 7  ;;  %v4224_v45 = vunpack.c.h.bf16 %v3228_v35 }
  0x17   : > { %3469 = vmatmul.mubr.msk.f32.gmra.mrb[2].mxu0 %vm446_vm4, %v4184_v32  ;;  %v429_v46 = vsel %vm361_vm3, 0.0, %v373_v40  ;;  %v376_v47 = vrot.slane %v4211_v41, 7  ;;  %v4230_v48 = vunpack.c.l.bf16 %v3229_v42  ;;  %v4240_v52 = vunpack.c.h.bf16 %v3229_v42 }
  0x18   : > { %3471 = vmatprep.mubr.msk.f32.mxu0 %vm446_vm4, %v4187_v33  ;;  %3420 = vmatmul.mubr.msk.f32.gmra.mrb[4].mxu1 %vm446_vm4, %v4158_v22  ;;  %v375_v50 = vsel %vm361_vm3, %v373_v40, %v374_v44  ;;  %v377_v51 = vrot.slane %v4224_v45, 7  ;;  %v4246_v55 = vunpack.c.l.bf16 %v3230_v49  ;;  %v4254_v58 = vunpack.c.h.bf16 %v3230_v49 }
  0x19   : > { %3422 = vmatprep.mubr.msk.f32.mxu1 %vm446_vm4, %v4163_v24  ;;  %v430_v53 = vsel %vm361_vm3, 0.0, %v376_v47  ;;  %v379_v54 = vrot.slane %v4230_v48, 7  ;;  %v380_v57 = vrot.slane %v4240_v52, 7  ;;  %v4277_v3 = vunpack.c.l.bf16 %v3231_v0 }
  0x1a   : > { %v378_v56 = vsel %vm361_vm3, %v376_v47, %v377_v51  ;;  %v382_v60 = vrot.slane %v4246_v55, 7  ;;  %v383_v62 = vrot.slane %v4254_v58, 7  ;;  %v4287_v5 = vunpack.c.h.bf16 %v3231_v0 }
  0x1b   : > { %3472 = vmatmul.mubr.msk.f32.gmra.mrb[4].mxu0 %vm446_vm4, %v4200_v36  ;;  %v431_v59 = vsel %vm361_vm3, 0.0, %v379_v54  ;;  %v381_v61 = vsel %vm361_vm3, %v379_v54, %v380_v57  ;;  %v4293_v6 = vunpack.c.l.bf16 %v3232_v4  ;;  %v4301_v8 = vunpack.c.h.bf16 %v3232_v4 }
  0x1c   : > { %3474 = vmatprep.mubr.msk.f32.mxu0 %vm446_vm4, %v4208_v39  ;;  %3423 = vmatmul.mubr.msk.f32.gmra.mrb[6].mxu1 %vm446_vm4, %v4172_v29  ;;  %v432_v63 = vsel %vm361_vm3, 0.0, %v382_v60  ;;  %v384_v1 = vsel %vm361_vm3, %v382_v60, %v383_v62  ;;  %v4305_v9 = vunpack.c.l.bf16 %v3233_v7  ;;  %v4316_v2 = vunpack.c.h.bf16 %v3233_v7 }
  0x1d   : > { %3425 = vmatprep.mubr.msk.f32.mxu1 %vm446_vm4, %v4174_v30  ;;  %v4318_v11 = vunpack.c.l.bf16 %v3234_v10  ;;  %v4328_v13 = vunpack.c.h.bf16 %v3234_v10  ;;  %v4330_v14 = vunpack.c.l.bf16 %v3235_v12  ;;  %v4339_v16 = vunpack.c.h.bf16 %v3235_v12 }
  0x1e   : > { %v385_v23 = vrot.slane %v4277_v3, 7  ;;  %v4353_v26 = vunpack.c.l.bf16 %v3237_v18  ;;  %v386_v28 = vrot.slane %v4287_v5, 7  ;;  %v4367_v34 = vunpack.c.l.bf16 %v3238_v27 }
  0x1f   : > { %3475 = vmatmul.mubr.msk.f32.gmra.mrb[6].mxu0 %vm446_vm4, %v4221_v43  ;;  %v4379_v40 = vunpack.c.h.bf16 %v3238_v27  ;;  %v395_v49 = vrot.slane %v4328_v13, 7  ;;  %v397_v51 = vrot.slane %v4330_v14, 7  ;;  %v398_v54 = vrot.slane %v4339_v16, 7 }
  0x20   : > { %3477 = vmatprep.mubr.msk.f32.mxu0 %vm446_vm4, %v429_v46  ;;  %3426 = vmatmul.mubr.msk.f32.gmra.mrb[8].mxu1 %vm446_vm4, %v4203_v38  ;;  %v387_v35 = vsel %vm361_vm3, %v385_v23, %v386_v28  ;;  %v403_v62 = vrot.slane %v4353_v26, 7  ;;  %v406_v7 = vrot.slane %v4367_v34, 7 }
  0x21   : > { %3428 = vmatprep.mubr.msk.f32.mxu1 %vm446_vm4, %v4211_v41 }
  0x22   : > { %v439_v4 = vsel %vm361_vm3, 0.0, %v403_v62 }
  0x23   : > { %3478 = vmatmul.mubr.msk.f32.gmra.mrb[8].mxu0 %vm446_vm4, %v375_v50 }
  0x24   : > { %3480 = vmatprep.mubr.msk.f32.mxu0 %vm446_vm4, %v430_v53  ;;  %3429 = vmatmul.mubr.msk.f32.gmra.mrb[10].mxu1 %vm446_vm4, %v4224_v45 }
  0x25   : > { %3431 = vmatprep.mubr.msk.f32.mxu1 %vm446_vm4, %v4230_v48 }
  0x27   : > { %3481 = vmatmul.mubr.msk.f32.gmra.mrb[10].mxu0 %vm446_vm4, %v378_v56 }
  0x28   : > { %3483 = vmatprep.mubr.msk.f32.mxu0 %vm446_vm4, %v431_v59  ;;  %3432 = vmatmul.mubr.msk.f32.gmra.mrb[12].mxu1 %vm446_vm4, %v4240_v52 }
  0x29   : > { %3434 = vmatprep.mubr.msk.f32.mxu1 %vm446_vm4, %v4246_v55 }
  0x2b   : > { %3484 = vmatmul.mubr.msk.f32.gmra.mrb[12].mxu0 %vm446_vm4, %v381_v61 }
  0x2c   : > { %3486 = vmatprep.mubr.msk.f32.mxu0 %vm446_vm4, %v432_v63  ;;  %3435 = vmatmul.mubr.msk.f32.gmra.mrb[14].mxu1 %vm446_vm4, %v4254_v58 }
  0x2d   : > { %3437 = vmatprep.mubr.msk.f32.mxu1 %vm446_vm4, %v4277_v3 }
  0x2f   : > { %3487 = vmatmul.mubr.msk.f32.gmra.mrb[14].mxu0 %vm446_vm4, %v384_v1 }
  0x30   : > { %3517 = vmatprep.mubr.msk.f32.mxu0 %vm446_vm4, %v4181_v31  ;;  %3438 = vmatmul.mubr.msk.f32.gmra.mrb[16].mxu1 %vm446_vm4, %v4287_v5  ;;  %v433_v31 = vsel %vm361_vm3, 0.0, %v385_v23  ;;  %v440_v23 = vsel %vm361_vm3, 0.0, %v406_v7 }
  0x31   : > { %3440 = vmatprep.mubr.msk.f32.mxu1 %vm446_vm4, %v4293_v6 }
  0x33   : > { %3518 = vmatmul.mubr.msk.f32.vlgmr.msra.gmra.mrb[0].mxu0 %vm446_vm4, %v4184_v32  ;;  %v388_v32 = vrot.slane %v4293_v6, 7 }
  0x34   : > { %3676 = vmatpush3.bf16.msk.msra.mxu0 %vm4102_vm2, %v4134_v15  ;;  %3520 = vmatprep.mubr.msk.f32.mxu0 %vm446_vm4, %v4187_v33  ;;  %v3236_v15 = vld [vmem:[%s4140_s18 + $0x60] sm:$0xff]   ;;  %v4365_v33 = vunpack.c.h.bf16 %v3237_v18 }
  0x35   : > { %3441 = vmatmul.mubr.msk.f32.gmra.mrb[18].mxu1 %vm446_vm4, %v4301_v8  ;;  %v4341_v17 = vunpack.c.l.bf16 %v3236_v15  ;;  %v4351_v25 = vunpack.c.h.bf16 %v3236_v15  ;;  %v434_v37 = vsel %vm361_vm3, 0.0, %v388_v32  ;;  %v407_v15 = vrot.slane %v4379_v40, 7 }
  0x36   : > { %3443 = vmatprep.mubr.msk.f32.mxu1 %vm446_vm4, %v4305_v9 }
  0x37   : > { %3521 = vmatmul.mubr.msk.f32.gmra.mrb[2].mxu0 %vm446_vm4, %v4200_v36  ;;  %v389_v36 = vrot.slane %v4301_v8, 7  ;;  %v400_v57 = vrot.slane %v4341_v17, 7  ;;  %v401_v60 = vrot.slane %v4351_v25, 7  ;;  %v408_v28 = vsel %vm361_vm3, %v406_v7, %v407_v15 }
  0x38   : > { %3523 = vmatprep.mubr.msk.f32.mxu0 %vm446_vm4, %v4208_v39  ;;  %v391_v39 = vrot.slane %v4305_v9, 7 }
  0x39   : > { %3444 = vmatmul.mubr.msk.f32.gmra.mrb[20].mxu1 %vm446_vm4, %v4316_v2  ;;  %v390_v42 = vsel %vm361_vm3, %v388_v32, %v389_v36  ;;  %v402_v0 = vsel %vm361_vm3, %v400_v57, %v401_v60 }
  0x3a   : > { %3446 = vmatprep.mubr.msk.f32.mxu1 %vm446_vm4, %v4318_v11  ;;  %v435_v44 = vsel %vm361_vm3, 0.0, %v391_v39 }
  0x3b   : > { %3524 = vmatmul.mubr.msk.f32.gmra.mrb[4].mxu0 %vm446_vm4, %v4221_v43  ;;  %v392_v43 = vrot.slane %v4316_v2, 7 }
  0x3c   : > { %3526 = vmatprep.mubr.msk.f32.mxu0 %vm446_vm4, %v429_v46  ;;  %v394_v46 = vrot.slane %v4318_v11, 7 }
  0x3d   : > { %3447 = vmatmul.mubr.msk.f32.gmra.mrb[22].mxu1 %vm446_vm4, %v4328_v13  ;;  %v393_v47 = vsel %vm361_vm3, %v391_v39, %v392_v43 }
  0x3e   : > { %3449 = vmatprep.mubr.msk.f32.mxu1 %vm446_vm4, %v4330_v14 }
  0x3f   : > { %3527 = vmatmul.mubr.msk.f32.gmra.mrb[6].mxu0 %vm446_vm4, %v375_v50  ;;  %v436_v50 = vsel %vm361_vm3, 0.0, %v394_v46 }
  0x40   : > { %3529 = vmatprep.mubr.msk.f32.mxu0 %vm446_vm4, %v430_v53  ;;  %v396_v53 = vsel %vm361_vm3, %v394_v46, %v395_v49 }
  0x41   : > { %3450 = vmatmul.mubr.msk.f32.gmra.mrb[24].mxu1 %vm446_vm4, %v4339_v16 }
  0x42   : > { %3452 = vmatprep.mubr.msk.f32.mxu1 %vm446_vm4, %v4341_v17 }
  0x43   : > { %3530 = vmatmul.mubr.msk.f32.gmra.mrb[8].mxu0 %vm446_vm4, %v378_v56  ;;  %v437_v56 = vsel %vm361_vm3, 0.0, %v397_v51 }
  0x44   : > { %3532 = vmatprep.mubr.msk.f32.mxu0 %vm446_vm4, %v431_v59  ;;  %v399_v59 = vsel %vm361_vm3, %v397_v51, %v398_v54 }
  0x45   : > { %3453 = vmatmul.mubr.msk.f32.gmra.mrb[26].mxu1 %vm446_vm4, %v4351_v25 }
  0x46   : > { %3455 = vmatprep.mubr.msk.f32.mxu1 %vm446_vm4, %v4353_v26 }
  0x47   : > { %3533 = vmatmul.mubr.msk.f32.gmra.mrb[10].mxu0 %vm446_vm4, %v381_v61  ;;  %v438_v61 = vsel %vm361_vm3, 0.0, %v400_v57 }
  0x48   : > { %3535 = vmatprep.mubr.msk.f32.mxu0 %vm446_vm4, %v432_v63  ;;  %v4415_v63 = vld [vmem:[%s4140_s18 + $0x78] sm:$0xff]  }
  0x49   : > { %3456 = vmatmul.mubr.msk.f32.gmra.mrb[28].mxu1 %vm446_vm4, %v4365_v33  ;;  %v3143_v10 = vunpack.c.l.bf16 %v4415_v63  ;;  %v3144_v18 = vunpack.c.h.bf16 %v4415_v63 }
  0x4a   : > { %3458 = vmatprep.mubr.msk.f32.mxu1 %vm446_vm4, %v4367_v34 }
  0x4b   : > { %3536 = vmatmul.mubr.msk.f32.gmra.mrb[12].mxu0 %vm446_vm4, %v384_v1  ;;  %v404_v1 = vrot.slane %v4365_v33, 7  ;;  %v1048_v27 = vrot.slane %v3143_v10, 7 }
  0x4c   : > { %3538 = vmatprep.mubr.msk.f32.mxu0 %vm446_vm4, %v433_v31 }
  0x4d   : > { %3459 = vmatmul.mubr.msk.f32.gmra.mrb[30].mxu1 %vm446_vm4, %v4379_v40  ;;  %v405_v12 = vsel %vm361_vm3, %v403_v62, %v404_v1  ;;  %v1052_v32 = vsel %vm361_vm3, 0.0, %v1048_v27 }
  0x4e   : > { %3489 = vmatprep.mubr.msk.f32.mxu1 %vm446_vm4, %v433_v31  ;;  %v1049_v31 = vrot.slane %v3144_v18, 7 }
  0x4f   : > { %3539 = vmatmul.mubr.msk.f32.gmra.mrb[14].mxu0 %vm446_vm4, %v387_v35 }
  0x50   : > { %3541 = vmatprep.mubr.msk.f32.mxu0 %vm446_vm4, %v434_v37 }
  0x51   : > { %3490 = vmatmul.mubr.msk.f32.vlgmr.msra.gmra.mrb[16].mxu1 %vm446_vm4, %v387_v35  ;;  %v1050_v35 = vsel %vm361_vm3, %v1048_v27, %v1049_v31 }
  0x52   : > { %3492 = vmatprep.mubr.msk.f32.mxu1 %vm446_vm4, %v434_v37 }
  0x53   : > { %3542 = vmatmul.mubr.msk.f32.gmra.mrb[16].mxu0 %vm446_vm4, %v390_v42 }
  0x54   : > { %3544 = vmatprep.mubr.msk.f32.mxu0 %vm446_vm4, %v435_v44 }
  0x55   : > { %3493 = vmatmul.mubr.msk.f32.gmra.mrb[18].mxu1 %vm446_vm4, %v390_v42 }
  0x56   : > { %3495 = vmatprep.mubr.msk.f32.mxu1 %vm446_vm4, %v435_v44  ;;  %v4566_v44 = vld [vmem:[%s5030_s2] ss:$0 sm:$0xff] }
  0x57   : > { %3545 = vmatmul.mubr.msk.f32.gmra.mrb[18].mxu0 %vm446_vm4, %v393_v47 }
  0x58   : > { %3547 = vmatprep.mubr.msk.f32.mxu0 %vm446_vm4, %v436_v50 }
  0x59   : > { %3496 = vmatmul.mubr.msk.f32.gmra.mrb[20].mxu1 %vm446_vm4, %v393_v47 }
  0x5a   : > { %3498 = vmatprep.mubr.msk.f32.mxu1 %vm446_vm4, %v436_v50 }
  0x5b   : > { %3548 = vmatmul.mubr.msk.f32.gmra.mrb[20].mxu0 %vm446_vm4, %v396_v53 }
  0x5c   : > { %3550 = vmatprep.mubr.msk.f32.mxu0 %vm446_vm4, %v437_v56 }
  0x5d   : > { %3499 = vmatmul.mubr.msk.f32.gmra.mrb[22].mxu1 %vm446_vm4, %v396_v53 }
  0x5e   : > { %3501 = vmatprep.mubr.msk.f32.mxu1 %vm446_vm4, %v437_v56 }
  0x5f   : > { %3551 = vmatmul.mubr.msk.f32.gmra.mrb[22].mxu0 %vm446_vm4, %v399_v59 }
  0x60   : > { %3553 = vmatprep.mubr.msk.f32.mxu0 %vm446_vm4, %v438_v61 }
  0x61   : > { %3502 = vmatmul.mubr.msk.f32.gmra.mrb[24].mxu1 %vm446_vm4, %v399_v59 }
  0x62   : > { %3504 = vmatprep.mubr.msk.f32.mxu1 %vm446_vm4, %v438_v61 }
  0x63   : > { %3554 = vmatmul.mubr.msk.f32.gmra.mrb[24].mxu0 %vm446_vm4, %v402_v0 }
  0x64   : > { %3556 = vmatprep.mubr.msk.f32.mxu0 %vm446_vm4, %v439_v4 }
  0x65   : > { %3505 = vmatmul.mubr.msk.f32.gmra.mrb[26].mxu1 %vm446_vm4, %v402_v0 }
  0x66   : > { %3507 = vmatprep.mubr.msk.f32.mxu1 %vm446_vm4, %v439_v4 }
  0x67   : > { %3557 = vmatmul.mubr.msk.f32.gmra.mrb[26].mxu0 %vm446_vm4, %v405_v12 }
  0x68   : > { %3559 = vmatprep.mubr.msk.f32.mxu0 %vm446_vm4, %v440_v23 }
  0x69   : > { %3508 = vmatmul.mubr.msk.f32.gmra.mrb[28].mxu1 %vm446_vm4, %v405_v12 }
  0x6a   : > { %3510 = vmatprep.mubr.msk.f32.mxu1 %vm446_vm4, %v440_v23 }
  0x6b   : > { %3560 = vmatmul.mubr.msk.f32.gmra.mrb[28].mxu0 %vm446_vm4, %v408_v28 }
  0x6c   : > { %3562 = vmatprep.mubr.msk.f32.mxu0 %vm446_vm4, %v1052_v32 }
  0x6d   : > { %3511 = vmatmul.mubr.msk.f32.gmra.mrb[30].mxu1 %vm446_vm4, %v408_v28 }
  0x6f   : > { %3563 = vmatmul.mubr.msk.f32.gmra.mrb[30].mxu0 %vm446_vm4, %v1050_v35 }
  0x70   : > { %3569 = vmatprep.mubr.msk.f32.mxu0 %vm446_vm4, %v4152_v19  ;;  %v3785_v19 = vld [vmem:[%s5031_s3] sm:$0xff]  }
  0x71   : > { %3617 = vmatprep.subr.bf16.mxu1 %v3785_v19 }
  0x72   : > { %3618 = vmatpush3.bf16.msra.mxu1 %v3785_v19 }
  0x73   : > { %3570 = vmatmul.mubr.msk.f32.vlgmr.msra.gmra.mrb[0].mxu0 %vm446_vm4, %v4154_v20 }
  0x74   : > { %3572 = vmatprep.mubr.msk.f32.mxu0 %vm446_vm4, %v4156_v21 }
  0x77   : > { %3573 = vmatmul.mubr.msk.f32.gmra.mrb[2].mxu0 %vm446_vm4, %v4158_v22 }
  0x78   : > { %3575 = vmatprep.mubr.msk.f32.mxu0 %vm446_vm4, %v4163_v24  ;;  %v3786_v24 = vld [vmem:[%s5031_s3 + $0x8] sm:$0xff]  }
  0x79   : > { %3619 = vmatprep.subr.bf16.mxu1 %v3786_v24 }
  0x7a   : > { %3620 = vmatpush3.bf16.msra.mxu1 %v3786_v24 }
  0x7b   : > { %3576 = vmatmul.mubr.msk.f32.gmra.mrb[4].mxu0 %vm446_vm4, %v4172_v29 }
  0x7c   : > { %3578 = vmatprep.mubr.msk.f32.mxu0 %vm446_vm4, %v4174_v30 }
  0x7f   : > { %3579 = vmatmul.mubr.msk.f32.gmra.mrb[6].mxu0 %vm446_vm4, %v4203_v38 }
  0x80   : > { %3581 = vmatprep.mubr.msk.f32.mxu0 %vm446_vm4, %v4211_v41 }
  0x83   : > { %3582 = vmatmul.mubr.msk.f32.gmra.mrb[8].mxu0 %vm446_vm4, %v4224_v45 }
  0x84   : > { %3584 = vmatprep.mubr.msk.f32.mxu0 %vm446_vm4, %v4230_v48 }
  0x87   : > { %3585 = vmatmul.mubr.msk.f32.gmra.mrb[10].mxu0 %vm446_vm4, %v4240_v52 }
  0x88   : > { %3587 = vmatprep.mubr.msk.f32.mxu0 %vm446_vm4, %v4246_v55 }
  0x8b   : > { %3588 = vmatmul.mubr.msk.f32.gmra.mrb[12].mxu0 %vm446_vm4, %v4254_v58 }
  0x8c   : > { %3590 = vmatprep.mubr.msk.f32.mxu0 %vm446_vm4, %v4277_v3 }
  0x8f   : > { %3591 = vmatmul.mubr.msk.f32.gmra.mrb[14].mxu0 %vm446_vm4, %v4287_v5 }
  0x90   : > { %3593 = vmatprep.mubr.msk.f32.mxu0 %vm446_vm4, %v4293_v6 }
  0x93   : > { %3594 = vmatmul.mubr.msk.f32.gmra.mrb[16].mxu0 %vm446_vm4, %v4301_v8 }
  0x94   : > { %3596 = vmatprep.mubr.msk.f32.mxu0 %vm446_vm4, %v4305_v9 }
  0x97   : > { %3597 = vmatmul.mubr.msk.f32.gmra.mrb[18].mxu0 %vm446_vm4, %v4316_v2 }
  0x98   : > { %3599 = vmatprep.mubr.msk.f32.mxu0 %vm446_vm4, %v4318_v11 }
  0x9b   : > { %3600 = vmatmul.mubr.msk.f32.gmra.mrb[20].mxu0 %vm446_vm4, %v4328_v13 }
  0x9c   : > { %3602 = vmatprep.mubr.msk.f32.mxu0 %vm446_vm4, %v4330_v14 }
  0x9f   : > { %3603 = vmatmul.mubr.msk.f32.gmra.mrb[22].mxu0 %vm446_vm4, %v4339_v16 }
  0xa0   : > { %3605 = vmatprep.mubr.msk.f32.mxu0 %vm446_vm4, %v4341_v17 }
  0xa3   : > { %3606 = vmatmul.mubr.msk.f32.gmra.mrb[24].mxu0 %vm446_vm4, %v4351_v25 }
  0xa4   : > { %3608 = vmatprep.mubr.msk.f32.mxu0 %vm446_vm4, %v4353_v26 }
  0xa7   : > { %3609 = vmatmul.mubr.msk.f32.gmra.mrb[26].mxu0 %vm446_vm4, %v4365_v33 }
  0xa8   : > { %3611 = vmatprep.mubr.msk.f32.mxu0 %vm446_vm4, %v4367_v34 }
  0xab   : > { %3612 = vmatmul.mubr.msk.f32.gmra.mrb[28].mxu0 %vm446_vm4, %v4379_v40 }
  0xac   : > { %3614 = vmatprep.mubr.msk.f32.mxu0 %vm446_vm4, %v3143_v10 }
  0xaf   : > { %3615 = vmatmul.mubr.msk.f32.gmra.mrb[30].mxu0 %vm446_vm4, %v3144_v18 }
  0xe2   : > { %v3415_v20 = vpop.f32.mrb[0].mxu1 }
  0xe3   : > { %v579_v21 = vpop.f32.mrb[1].mxu1 }
  0xe7   : > { %v3418_v22 = vpop.f32.mrb[2].mxu1 }
  0xe8   : > { %v589_v29 = vpop.f32.mrb[3].mxu1 }
  0xeb   : > { %v3421_v30 = vpop.f32.mrb[4].mxu1 }
  0xec   : > { %v599_v38 = vpop.f32.mrb[5].mxu1 }
  0xef   : > { %v3424_v41 = vpop.f32.mrb[6].mxu1 }
  0xf0   : > { %v609_v45 = vpop.f32.mrb[7].mxu1 }
  0xf3   : > { %v4515_v48 = vpop.f32.mrb[8].mxu1 }
  0xf4   : > { %v4517_v52 = vpop.f32.mrb[9].mxu1 }
  0xf7   : > { %v4519_v55 = vpop.f32.mrb[10].mxu1 }
  0xf8   : > { %v4521_v58 = vpop.f32.mrb[11].mxu1 }
  0xfb   : > { %v4523_v3 = vpop.f32.mrb[12].mxu1 }
  0xfc   : > { %v4525_v5 = vpop.f32.mrb[13].mxu1 }
  0xff   : > { %v4527_v6 = vpop.f32.mrb[14].mxu1 }
 0x100   : > { %v4529_v8 = vpop.f32.mrb[15].mxu1 }
 0x124   : > { %v4531_v9 = vpop.f32.mrb[16].mxu1 }
 0x125   : > { %v4533_v2 = vpop.f32.mrb[17].mxu1 }
 0x128   : > { %v4535_v11 = vpop.f32.mrb[18].mxu1 }
 0x129   : > { %v4537_v13 = vpop.f32.mrb[19].mxu1 }
 0x12c   : > { %v4539_v14 = vpop.f32.mrb[20].mxu1 }
 0x12d   : > { %v4541_v16 = vpop.f32.mrb[21].mxu1 }
 0x130   : > { %v4543_v17 = vpop.f32.mrb[22].mxu1 }
 0x131   : > { %v4545_v25 = vpop.f32.mrb[23].mxu1 }
 0x134   : > { %v4547_v26 = vpop.f32.mrb[24].mxu1 }
 0x135   : > { %v4549_v33 = vpop.f32.mrb[25].mxu1 }
 0x138   : > { %v4551_v34 = vpop.f32.mrb[26].mxu1 }
 0x139   : > { %v4553_v36 = vpop.f32.mrb[27].mxu1 }
 0x13c   : > { %v4555_v37 = vpop.f32.mrb[28].mxu1 }
 0x13d   : > { %v4557_v39 = vpop.f32.mrb[29].mxu1 }
 0x140   : > { %v4559_v40 = vpop.f32.mrb[30].mxu1 }
 0x141   : > { %v4561_v42 = vpop.f32.mrb[31].mxu1 }
 0x146   : > { %v3571_v43 = vpop.f32.mrb[0].mxu0 }
 0x147   : > { %v3679_v46 = vadd.f32 %v3571_v43, %v3415_v20  ;;  %v1397_v47 = vpop.f32.mrb[1].mxu0 }
 0x148   : > { %v3680_v49 = vadd.f32 %v1397_v47, %v579_v21 }
 0x149   : > { %v4569_v50 = vadd.f32 %v3679_v46, %v4566_v44 }
 0x14a   : > { %v4572_v51 = vadd.f32 %v3680_v49, %v4566_v44  ;;  %v3574_v53 = vpop.f32.mrb[2].mxu0 }
 0x14b   : > { %v2866_v54 = vmul.f32 -1.442695, %v4569_v50  ;;  %v3681_v56 = vadd.f32 %v3574_v53, %v3418_v22  ;;  %v1407_v57 = vpop.f32.mrb[3].mxu0 }
 0x14c   : > { %v2865_v59 = vmul.f32 -1.442695, %v4572_v51  ;;  %v3682_v60 = vadd.f32 %v1407_v57, %v589_v29 }
 0x14d   : > { %3787 = vpow2.f32 %v2866_v54  ;;  %v4577_v61 = vadd.f32 %v3681_v56, %v4566_v44 }
 0x14e   : > { %3789 = vpow2.f32 %v2865_v59  ;;  %v4580_v62 = vadd.f32 %v3682_v60, %v4566_v44  ;;  %v3577_v63 = vpop.f32.mrb[4].mxu0 }
 0x14f   : > { %v2868_v0 = vmul.f32 -1.442695, %v4577_v61  ;;  %v3683_v1 = vadd.f32 %v3577_v63, %v3421_v30  ;;  %v1417_v4 = vpop.f32.mrb[5].mxu0 }
 0x150   : > { %v2867_v7 = vmul.f32 -1.442695, %v4580_v62  ;;  %v3684_v10 = vadd.f32 %v1417_v4, %v599_v38 }
 0x151   : > { %3791 = vpow2.f32 %v2868_v0  ;;  %v4585_v12 = vadd.f32 %v3683_v1, %v4566_v44 }
 0x152   : > { %3793 = vpow2.f32 %v2867_v7  ;;  %v4588_v15 = vadd.f32 %v3684_v10, %v4566_v44  ;;  %v3580_v18 = vpop.f32.mrb[6].mxu0 }
 0x153   : > { %v2870_v23 = vmul.f32 -1.442695, %v4585_v12  ;;  %v3685_v27 = vadd.f32 %v3580_v18, %v3424_v41  ;;  %v1427_v28 = vpop.f32.mrb[7].mxu0 }
 0x154   : > { %v2869_v31 = vmul.f32 -1.442695, %v4588_v15  ;;  %v3686_v32 = vadd.f32 %v1427_v28, %v609_v45 }
 0x155   : > { %3795 = vpow2.f32 %v2870_v23  ;;  %v4593_v35 = vadd.f32 %v3685_v27, %v4566_v44 }
 0x156   : > { %3797 = vpow2.f32 %v2869_v31  ;;  %v4596_v19 = vadd.f32 %v3686_v32, %v4566_v44  ;;  %v3583_v20 = vpop.f32.mrb[8].mxu0 }
 0x157   : > { %v3788_v21 = vpop.eup %3787  ;;  %v2872_v22 = vmul.f32 -1.442695, %v4593_v35  ;;  %v3687_v24 = vadd.f32 %v3583_v20, %v4515_v48  ;;  %v1437_v29 = vpop.f32.mrb[9].mxu0 }
 0x158   : > { %v3790_v30 = vpop.eup %3789  ;;  %v1724_v38 = vadd.f32 1.0, %v3788_v21  ;;  %v2871_v41 = vmul.f32 -1.442695, %v4596_v19  ;;  %v3688_v45 = vadd.f32 %v1437_v29, %v4517_v52 }
 0x159   : > { %v1723_v43 = vadd.f32 1.0, %v3790_v30  ;;  %3799 = vpow2.f32 %v2872_v22  ;;  %v4603_v46 = vadd.f32 %v3687_v24, %v4566_v44 }
 0x15a   : > { %3801 = vrcp.f32 %v1724_v38  ;;  %v4606_v47 = vadd.f32 %v3688_v45, %v4566_v44  ;;  %v3586_v49 = vpop.f32.mrb[10].mxu0 }
 0x15b   : > { %v3792_v53 = vpop.eup %3791  ;;  %3803 = vrcp.f32 %v1723_v43  ;;  %v2874_v48 = vmul.f32 -1.442695, %v4603_v46  ;;  %v3689_v54 = vadd.f32 %v3586_v49, %v4519_v55  ;;  %v1447_v56 = vpop.f32.mrb[11].mxu0 }
 0x15c   : > { %v3794_v57 = vpop.eup %3793  ;;  %v1726_v59 = vadd.f32 1.0, %v3792_v53  ;;  %3805 = vpow2.f32 %v2871_v41  ;;  %v2873_v52 = vmul.f32 -1.442695, %v4606_v47  ;;  %v3690_v60 = vadd.f32 %v1447_v56, %v4521_v58 }
 0x15d   : > { %v1725_v63 = vadd.f32 1.0, %v3794_v57  ;;  %3807 = vpow2.f32 %v2874_v48  ;;  %v4613_v0 = vadd.f32 %v3689_v54, %v4566_v44 }
 0x15e   : > { %3809 = vrcp.f32 %v1726_v59  ;;  %v4616_v1 = vadd.f32 %v3690_v60, %v4566_v44  ;;  %v3589_v4 = vpop.f32.mrb[12].mxu0 }
 0x15f   : > { %v3796_v7 = vpop.eup %3795  ;;  %3811 = vrcp.f32 %v1725_v63  ;;  %v2876_v55 = vmul.f32 -1.442695, %v4613_v0  ;;  %v3691_v10 = vadd.f32 %v3589_v4, %v4523_v3  ;;  %v1457_v18 = vpop.f32.mrb[13].mxu0 }
 0x160   : > { %v3798_v23 = vpop.eup %3797  ;;  %v1728_v27 = vadd.f32 1.0, %v3796_v7  ;;  %3813 = vpow2.f32 %v2873_v52  ;;  %v2875_v58 = vmul.f32 -1.442695, %v4616_v1  ;;  %v3692_v28 = vadd.f32 %v1457_v18, %v4525_v5 }
 0x161   : > { %v1727_v31 = vadd.f32 1.0, %v3798_v23  ;;  %3815 = vpow2.f32 %v2876_v55  ;;  %v4623_v32 = vadd.f32 %v3691_v10, %v4566_v44 }
 0x162   : > { %3817 = vrcp.f32 %v1728_v27  ;;  %v4626_v20 = vadd.f32 %v3692_v28, %v4566_v44  ;;  %v3592_v21 = vpop.f32.mrb[14].mxu0 }
 0x163   : > { %v3800_v22 = vpop.eup %3799  ;;  %3819 = vrcp.f32 %v1727_v31  ;;  %v2878_v3 = vmul.f32 -1.442695, %v4623_v32  ;;  %v3693_v24 = vadd.f32 %v3592_v21, %v4527_v6  ;;  %v1467_v29 = vpop.f32.mrb[15].mxu0 }
 0x164   : > { %v3802_v30 = vpop.eup %3801  ;;  %v1730_v5 = vadd.f32 1.0, %v3800_v22  ;;  %3821 = vpow2.f32 %v2875_v58  ;;  %v2877_v38 = vmul.f32 -1.442695, %v4626_v20  ;;  %v3694_v41 = vadd.f32 %v1467_v29, %v4529_v8 }
 0x165   : > { %v3804_v45 = vpop.eup %3803  ;;  %v1820_v43 = vmul.f32 %v3802_v30, %v4569_v50  ;;  %3823 = vpow2.f32 %v2878_v3  ;;  %v4634_v49 = vadd.f32 %v3693_v24, %v4566_v44 }
 0x166   : > { %v3806_v53 = vpop.eup %3805  ;;  %v1819_v6 = vmul.f32 %v3804_v45, %v4572_v51  ;;  %3825 = vrcp.f32 %v1730_v5  ;;  %v4644_v8 = vadd.f32 %v3694_v41, %v4566_v44  ;;  %v3595_v48 = vpop.f32.mrb[16].mxu0 }
 0x167   : > { %v3808_v50 = vpop.eup %3807  ;;  %v3018_v54 = vpack.c.bf16 %v1820_v43, %v1820_v43  ;;  %v1729_v56 = vadd.f32 1.0, %v3806_v53  ;;  %3827 = vpow2.f32 %v2877_v38  ;;  %v2880_v57 = vmul.f32 -1.442695, %v4634_v49  ;;  %v1477_v59 = vpop.f32.mrb[17].mxu0 }
 0x168   : > { %v3810_v52 = vpop.eup %3809  ;;  %v1851_v60 = vpack.c.bf16 %v1820_v43, %v1819_v6  ;;  %v3017_v63 = vpack.c.bf16 %v1819_v6, %v1819_v6  ;;  %v1732_v4 = vadd.f32 1.0, %v3808_v50  ;;  %v2879_v51 = vmul.f32 -1.442695, %v4644_v8 }
 0x169   : > { %v3812_v7 = vpop.eup %3811  ;;  %1981 = vst.msk [vmem:[%s4640_s28 + $0x4] sm:$0xf] %vm1979_vm5, %v3018_v54  ;;  %v1822_v55 = vmul.f32 %v3810_v52, %v4577_v61  ;;  %3829 = vrcp.f32 %v1729_v56  ;;  %v3695_v10 = vadd.f32 %v3595_v48, %v4531_v9  ;;  %v3696_v18 = vadd.f32 %v1477_v59, %v4533_v2 }
 0x16a   : > { %v3814_v23 = vpop.eup %3813  ;;  %1980 = vst.msk [vmem:[%s4640_s28] sm:$0xf] %vm1979_vm5, %v3017_v63  ;;  %v1821_v27 = vmul.f32 %v3812_v7, %v4580_v62  ;;  %3831 = vrcp.f32 %v1732_v4  ;;  %v3598_v58 = vpop.f32.mrb[18].mxu0  ;;  %3621 = vmatprep.mubr.msk.bf16.mxu1 %vm2035_vm6, %v1851_v60 }
 0x16b   : > { %v3816_v28 = vpop.eup %3815  ;;  %v3020_v31 = vpack.c.bf16 %v1822_v55, %v1822_v55  ;;  %v1731_v21 = vadd.f32 1.0, %v3814_v23  ;;  %3833 = vpow2.f32 %v2880_v57  ;;  %v4658_v61 = vadd.f32 %v3695_v10, %v4566_v44  ;;  %v1487_v9 = vpop.f32.mrb[19].mxu0 }
 0x16c   : > { %v3818_v2 = vpop.eup %3817  ;;  %v1852_v22 = vpack.c.bf16 %v1822_v55, %v1821_v27  ;;  %v3019_v3 = vpack.c.bf16 %v1821_v27, %v1821_v27  ;;  %v1734_v24 = vadd.f32 1.0, %v3816_v28  ;;  %3835 = vpow2.f32 %v2879_v51 }
 0x16d   : > { %v3820_v62 = vpop.eup %3819  ;;  %1983 = vst.msk [vmem:[%s4640_s28 + $0xc] sm:$0xf] %vm1979_vm5, %v3020_v31  ;;  %v1824_v29 = vmul.f32 %v3818_v2, %v4585_v12  ;;  %3837 = vrcp.f32 %v1731_v21  ;;  %v2882_v30 = vmul.f32 -1.442695, %v4658_v61  ;;  %v4665_v5 = vadd.f32 %v3696_v18, %v4566_v44 }
 0x16e   : > { %v3822_v38 = vpop.eup %3821  ;;  %1982 = vst.msk [vmem:[%s4640_s28 + $0x8] sm:$0xf] %vm1979_vm5, %v3019_v3  ;;  %v1823_v41 = vmul.f32 %v3820_v62, %v4588_v15  ;;  %3839 = vrcp.f32 %v1734_v24  ;;  %v3697_v45 = vadd.f32 %v3598_v58, %v4535_v11  ;;  %v3698_v43 = vadd.f32 %v1487_v9, %v4537_v13  ;;  %v3601_v53 = vpop.f32.mrb[20].mxu0  ;;  %3622 = vmatmul.mubr.msk.bf16.vlgmr.msra.gmra.mrb[32].mxu1 %vm2035_vm6, %v1852_v22 }
 0x16f   : > { %v3824_v12 = vpop.eup %3823  ;;  %v3022_v6 = vpack.c.bf16 %v1824_v29, %v1824_v29  ;;  %v1733_v48 = vadd.f32 1.0, %v3822_v38  ;;  %3841 = vpow2.f32 %v2882_v30  ;;  %v2881_v50 = vmul.f32 -1.442695, %v4665_v5  ;;  %v1497_v54 = vpop.f32.mrb[21].mxu0 }
 0x170   : > { %v3826_v56 = vpop.eup %3825  ;;  %v1853_v57 = vpack.c.bf16 %v1824_v29, %v1823_v41  ;;  %v3021_v15 = vpack.c.bf16 %v1823_v41, %v1823_v41  ;;  %v1736_v59 = vadd.f32 1.0, %v3824_v12  ;;  %v4675_v11 = vadd.f32 %v3697_v45, %v4566_v44 }
 0x171   : > { %v3828_v52 = vpop.eup %3827  ;;  %1985 = vst.msk [vmem:[%s4640_s28 + $0x14] sm:$0xf] %vm1979_vm5, %v3022_v6  ;;  %v1826_v13 = vmul.f32 %v3826_v56, %v4593_v35  ;;  %3843 = vrcp.f32 %v1733_v48  ;;  %v4681_v60 = vadd.f32 %v3698_v43, %v4566_v44  ;;  %v3699_v63 = vadd.f32 %v3601_v53, %v4539_v14 }
 0x172   : > { %1984 = vst.msk [vmem:[%s4640_s28 + $0x10] sm:$0xf] %vm1979_vm5, %v3021_v15  ;;  %3845 = vrcp.f32 %v1736_v59  ;;  %v1735_v4 = vadd.f32 1.0, %v3828_v52  ;;  %v2884_v51 = vmul.f32 -1.442695, %v4675_v11  ;;  %v3700_v7 = vadd.f32 %v1497_v54, %v4541_v16  ;;  %v3604_v55 = vpop.f32.mrb[22].mxu0  ;;  %3625 = vmatprep.mubr.msk.bf16.mxu1 %vm2035_vm6, %v1853_v57 }
 0x173   : > { %v3830_v10 = vpop.eup %3829  ;;  %v3024_v35 = vpack.c.bf16 %v1826_v13, %v1826_v13  ;;  %3847 = vpow2.f32 %v2881_v50  ;;  %v2883_v18 = vmul.f32 -1.442695, %v4681_v60  ;;  %v4691_v23 = vadd.f32 %v3699_v63, %v4566_v44  ;;  %v1507_v14 = vpop.f32.mrb[23].mxu0 }
 0x174   : > { %v3832_v27 = vpop.eup %3831  ;;  %v1825_v58 = vmul.f32 %v3830_v10, %v4596_v19  ;;  %3849 = vrcp.f32 %v1735_v4  ;;  %v4695_v28 = vadd.f32 %v3700_v7, %v4566_v44  ;;  %v3701_v16 = vadd.f32 %v3604_v55, %v4543_v17 }
 0x175   : > { %v3834_v31 = vpop.eup %3833  ;;  %1987 = vst.msk [vmem:[%s4640_s28 + $0x1c] sm:$0xf] %vm1979_vm5, %v3024_v35  ;;  %v1828_v21 = vmul.f32 %v3832_v27, %v4603_v46  ;;  %3851 = vpow2.f32 %v2884_v51  ;;  %v2886_v9 = vmul.f32 -1.442695, %v4691_v23  ;;  %v3702_v2 = vadd.f32 %v1507_v14, %v4545_v25 }
 0x176   : > { %v3836_v22 = vpop.eup %3835  ;;  %v1854_v3 = vpack.c.bf16 %v1826_v13, %v1825_v58  ;;  %v3023_v19 = vpack.c.bf16 %v1825_v58, %v1825_v58  ;;  %v1738_v24 = vadd.f32 1.0, %v3834_v31  ;;  %3853 = vpow2.f32 %v2883_v18  ;;  %v3607_v62 = vpop.f32.mrb[24].mxu0 }
 0x177   : > { %v3838_v29 = vpop.eup %3837  ;;  %v3026_v17 = vpack.c.bf16 %v1828_v21, %v1828_v21  ;;  %v1737_v30 = vadd.f32 1.0, %v3836_v22  ;;  %3855 = vpow2.f32 %v2886_v9  ;;  %v2885_v38 = vmul.f32 -1.442695, %v4695_v28  ;;  %v1517_v46 = vpop.f32.mrb[25].mxu0 }
 0x178   : > { %v3840_v41 = vpop.eup %3839  ;;  %1986 = vst.msk [vmem:[%s4640_s28 + $0x18] sm:$0xf] %vm1979_vm5, %v3023_v19  ;;  %v1827_v45 = vmul.f32 %v3838_v29, %v4606_v47  ;;  %3857 = vrcp.f32 %v1738_v24  ;;  %v4708_v25 = vadd.f32 %v3701_v16, %v4566_v44  ;;  %v4711_v43 = vadd.f32 %v3702_v2, %v4566_v44  ;;  %3626 = vmatmul.mubr.msk.bf16.gmra.mrb[36].mxu1 %vm2035_vm6, %v1854_v3 }
 0x179   : > { %v3842_v53 = vpop.eup %3841  ;;  %1989 = vst.msk [vmem:[%s4640_s28 + $0x24] sm:$0xf] %vm1979_vm5, %v3026_v17  ;;  %v1830_v12 = vmul.f32 %v3840_v41, %v4613_v0  ;;  %3859 = vrcp.f32 %v1737_v30  ;;  %v3703_v6 = vadd.f32 %v3607_v62, %v4547_v26  ;;  %v3704_v47 = vadd.f32 %v1517_v46, %v4549_v33 }
 0x17a   : > { %v1855_v48 = vpack.c.bf16 %v1828_v21, %v1827_v45  ;;  %v3025_v50 = vpack.c.bf16 %v1827_v45, %v1827_v45  ;;  %v1740_v54 = vadd.f32 1.0, %v3842_v53  ;;  %3861 = vpow2.f32 %v2885_v38  ;;  %v3610_v56 = vpop.f32.mrb[26].mxu0 }
 0x17b   : > { %v3844_v57 = vpop.eup %3843  ;;  %v3028_v15 = vpack.c.bf16 %v1830_v12, %v1830_v12  ;;  %v2888_v59 = vmul.f32 -1.442695, %v4708_v25  ;;  %v2887_v52 = vmul.f32 -1.442695, %v4711_v43  ;;  %v4722_v0 = vadd.f32 %v3703_v6, %v4566_v44  ;;  %v1527_v13 = vpop.f32.mrb[27].mxu0 }
 0x17c   : > { %v3846_v63 = vpop.eup %3845  ;;  %1988 = vst.msk [vmem:[%s4640_s28 + $0x20] sm:$0xf] %vm1979_vm5, %v3025_v50  ;;  %v1829_v26 = vmul.f32 %v3844_v57, %v4616_v1  ;;  %3863 = vrcp.f32 %v1740_v54  ;;  %v4728_v33 = vadd.f32 %v3704_v47, %v4566_v44  ;;  %v3705_v4 = vadd.f32 %v3610_v56, %v4551_v34  ;;  %3629 = vmatprep.mubr.msk.bf16.mxu1 %vm2035_vm6, %v1855_v48 }
 0x17d   : > { %v3848_v51 = vpop.eup %3847  ;;  %1991 = vst.msk [vmem:[%s4640_s28 + $0x2c] sm:$0xf] %vm1979_vm5, %v3028_v15  ;;  %v1832_v7 = vmul.f32 %v3846_v63, %v4623_v32  ;;  %3865 = vpow2.f32 %v2888_v59  ;;  %v2890_v55 = vmul.f32 -1.442695, %v4722_v0  ;;  %v3706_v10 = vadd.f32 %v1527_v13, %v4553_v36 }
 0x17e   : > { %v3850_v1 = vpop.eup %3849  ;;  %v1856_v35 = vpack.c.bf16 %v1830_v12, %v1829_v26  ;;  %v3027_v18 = vpack.c.bf16 %v1829_v26, %v1829_v26  ;;  %v1739_v14 = vadd.f32 1.0, %v3848_v51  ;;  %3867 = vpow2.f32 %v2887_v52  ;;  %v3613_v34 = vpop.f32.mrb[28].mxu0 }
 0x17f   : > { %v3852_v27 = vpop.eup %3851  ;;  %v3030_v58 = vpack.c.bf16 %v1832_v7, %v1832_v7  ;;  %v1831_v16 = vmul.f32 %v3850_v1, %v4626_v20  ;;  %3869 = vpow2.f32 %v2890_v55  ;;  %v2889_v32 = vmul.f32 -1.442695, %v4728_v33  ;;  %v1537_v31 = vpop.f32.mrb[29].mxu0 }
 0x180   : > { %v3854_v21 = vpop.eup %3853  ;;  %1990 = vst.msk [vmem:[%s4640_s28 + $0x28] sm:$0xf] %vm1979_vm5, %v3027_v18  ;;  %3871 = vrcp.f32 %v1739_v14  ;;  %v1742_v36 = vadd.f32 1.0, %v3852_v27  ;;  %v4742_v9 = vadd.f32 %v3705_v4, %v4566_v44  ;;  %v4745_v2 = vadd.f32 %v3706_v10, %v4566_v44  ;;  %3630 = vmatmul.mubr.msk.bf16.gmra.mrb[40].mxu1 %vm2035_vm6, %v1856_v35 }
 0x181   : > { %v3856_v22 = vpop.eup %3855  ;;  %1993 = vst.msk [vmem:[%s4640_s28 + $0x34] sm:$0xf] %vm1979_vm5, %v3030_v58  ;;  %v1857_v20 = vpack.c.bf16 %v1832_v7, %v1831_v16  ;;  %v3029_v3 = vpack.c.bf16 %v1831_v16, %v1831_v16  ;;  %v1741_v19 = vadd.f32 1.0, %v3854_v21  ;;  %3873 = vpow2.f32 %v2889_v32 }
 0x182   : > { %v3858_v24 = vpop.eup %3857  ;;  %3875 = vrcp.f32 %v1742_v36  ;;  %v1744_v62 = vadd.f32 1.0, %v3856_v22  ;;  %v2892_v29 = vmul.f32 -1.442695, %v4742_v9  ;;  %v2891_v17 = vmul.f32 -1.442695, %v4745_v2  ;;  %v3616_v30 = vpop.f32.mrb[30].mxu0 }
 0x183   : > { %v3860_v38 = vpop.eup %3859  ;;  %1992 = vst.msk [vmem:[%s4640_s28 + $0x30] sm:$0xf] %vm1979_vm5, %v3029_v3  ;;  %v1834_v46 = vmul.f32 %v3858_v24, %v4634_v49  ;;  %3877 = vrcp.f32 %v1741_v19  ;;  %v3707_v41 = vadd.f32 %v3613_v34, %v4555_v37  ;;  %v3708_v45 = vadd.f32 %v1537_v31, %v4557_v39  ;;  %3633 = vmatprep.mubr.msk.bf16.mxu1 %vm2035_vm6, %v1857_v20  ;;  %v1547_v53 = vpop.f32.mrb[31].mxu0 }
 0x184   : > { %v3862_v12 = vpop.eup %3861  ;;  %v1833_v6 = vmul.f32 %v3860_v38, %v4644_v8  ;;  %3879 = vrcp.f32 %v1744_v62  ;;  %v3709_v47 = vadd.f32 %v3616_v30, %v4559_v40  ;;  %v3710_v48 = vadd.f32 %v1547_v53, %v4561_v42 }
 0x185   : > { %v3032_v50 = vpack.c.bf16 %v1834_v46, %v1834_v46  ;;  %v1743_v49 = vadd.f32 1.0, %v3862_v12  ;;  %3881 = vpow2.f32 %v2892_v29  ;;  %v4762_v37 = vadd.f32 %v3707_v41, %v4566_v44 }
 0x186   : > { %v3864_v39 = vpop.eup %3863  ;;  %v1858_v54 = vpack.c.bf16 %v1834_v46, %v1833_v6  ;;  %v3031_v56 = vpack.c.bf16 %v1833_v6, %v1833_v6  ;;  %3883 = vpow2.f32 %v2891_v17  ;;  %v4765_v57 = vadd.f32 %v3708_v45, %v4566_v44 }
 0x187   : > { %v3866_v8 = vpop.eup %3865  ;;  %1995 = vst.msk [vmem:[%s4640_s28 + $0x3c] sm:$0xf] %vm1979_vm5, %v3032_v50  ;;  %v1836_v40 = vmul.f32 %v3864_v39, %v4658_v61  ;;  %3885 = vrcp.f32 %v1743_v49  ;;  %v2894_v42 = vmul.f32 -1.442695, %v4762_v37  ;;  %v4772_v15 = vadd.f32 %v3709_v47, %v4566_v44 }
 0x188   : > { %v3868_v59 = vpop.eup %3867  ;;  %1994 = vst.msk [vmem:[%s4640_s28 + $0x38] sm:$0xf] %vm1979_vm5, %v3031_v56  ;;  %v1746_v52 = vadd.f32 1.0, %v3866_v8  ;;  %v4777_v13 = vadd.f32 %v3710_v48, %v4566_v44  ;;  %3634 = vmatmul.mubr.msk.bf16.gmra.mrb[44].mxu1 %vm2035_vm6, %v1858_v54  ;;  %v2893_v61 = vmul.f32 -1.442695, %v4765_v57 }
 0x189   : > { %v3870_v63 = vpop.eup %3869  ;;  %v3034_v26 = vpack.c.bf16 %v1836_v40, %v1836_v40  ;;  %v1745_v4 = vadd.f32 1.0, %v3868_v59  ;;  %3887 = vpow2.f32 %v2894_v42  ;;  %v2896_v44 = vmul.f32 -1.442695, %v4772_v15 }
 0x18a   : > { %v3872_v51 = vpop.eup %3871  ;;  %3889 = vrcp.f32 %v1746_v52  ;;  %v1748_v7 = vadd.f32 1.0, %v3870_v63  ;;  %v2895_v18 = vmul.f32 -1.442695, %v4777_v13 }
 0x18b   : > { %v3874_v55 = vpop.eup %3873  ;;  %1997 = vst.msk [vmem:[%s4640_s28 + $0x44] sm:$0xf] %vm1979_vm5, %v3034_v26  ;;  %v1835_v10 = vmul.f32 %v3872_v51, %v4665_v5  ;;  %3891 = vrcp.f32 %v1745_v4 }
 0x18c   : > { %v3876_v1 = vpop.eup %3875  ;;  %3893 = vrcp.f32 %v1748_v7  ;;  %v1747_v35 = vadd.f32 1.0, %v3874_v55 }
 0x18d   : > { %v3878_v14 = vpop.eup %3877  ;;  %v1859_v34 = vpack.c.bf16 %v1836_v40, %v1835_v10  ;;  %v3033_v27 = vpack.c.bf16 %v1835_v10, %v1835_v10  ;;  %v1838_v58 = vmul.f32 %v3876_v1, %v4675_v11  ;;  %3895 = vpow2.f32 %v2893_v61 }
 0x18e   : > { %v3880_v16 = vpop.eup %3879  ;;  %v1837_v32 = vmul.f32 %v3878_v14, %v4681_v60  ;;  %3897 = vrcp.f32 %v1747_v35 }
 0x18f   : > { %v3882_v5 = vpop.eup %3881  ;;  %1996 = vst.msk [vmem:[%s4640_s28 + $0x40] sm:$0xf] %vm1979_vm5, %v3033_v27  ;;  %v3036_v31 = vpack.c.bf16 %v1838_v58, %v1838_v58  ;;  %v1840_v21 = vmul.f32 %v3880_v16, %v4691_v23  ;;  %3899 = vpow2.f32 %v2896_v44  ;;  %3637 = vmatprep.mubr.msk.bf16.mxu1 %vm2035_vm6, %v1859_v34 }
 0x190   : > { %v3884_v36 = vpop.eup %3883  ;;  %v1860_v22 = vpack.c.bf16 %v1838_v58, %v1837_v32  ;;  %v3035_v11 = vpack.c.bf16 %v1837_v32, %v1837_v32  ;;  %v1750_v20 = vadd.f32 1.0, %v3882_v5  ;;  %3901 = vpow2.f32 %v2895_v18 }
 0x191   : > { %v3886_v3 = vpop.eup %3885  ;;  %1999 = vst.msk [vmem:[%s4640_s28 + $0x4c] sm:$0xf] %vm1979_vm5, %v3036_v31  ;;  %v3038_v60 = vpack.c.bf16 %v1840_v21, %v1840_v21  ;;  %v1749_v19 = vadd.f32 1.0, %v3884_v36 }
 0x192   : > { %1998 = vst.msk [vmem:[%s4640_s28 + $0x48] sm:$0xf] %vm1979_vm5, %v3035_v11  ;;  %v1839_v24 = vmul.f32 %v3886_v3, %v4695_v28  ;;  %3903 = vrcp.f32 %v1750_v20  ;;  %3638 = vmatmul.mubr.msk.bf16.gmra.mrb[48].mxu1 %vm2035_vm6, %v1860_v22 }
 0x193   : > { %v3888_v23 = vpop.eup %3887  ;;  %2001 = vst.msk [vmem:[%s4640_s28 + $0x54] sm:$0xf] %vm1979_vm5, %v3038_v60  ;;  %3905 = vrcp.f32 %v1749_v19 }
 0x194   : > { %v3890_v62 = vpop.eup %3889  ;;  %v1861_v29 = vpack.c.bf16 %v1840_v21, %v1839_v24  ;;  %v3037_v17 = vpack.c.bf16 %v1839_v24, %v1839_v24  ;;  %v1752_v30 = vadd.f32 1.0, %v3888_v23 }
 0x195   : > { %v3892_v38 = vpop.eup %3891  ;;  %v1842_v46 = vmul.f32 %v3890_v62, %v4708_v25 }
 0x196   : > { %v3894_v41 = vpop.eup %3893  ;;  %2000 = vst.msk [vmem:[%s4640_s28 + $0x50] sm:$0xf] %vm1979_vm5, %v3037_v17  ;;  %v1841_v28 = vmul.f32 %v3892_v38, %v4711_v43  ;;  %3907 = vrcp.f32 %v1752_v30  ;;  %3641 = vmatprep.mubr.msk.bf16.mxu1 %vm2035_vm6, %v1861_v29 }
 0x197   : > { %v3896_v45 = vpop.eup %3895  ;;  %v3040_v53 = vpack.c.bf16 %v1842_v46, %v1842_v46  ;;  %v1844_v12 = vmul.f32 %v3894_v41, %v4722_v0 }
 0x198   : > { %v3898_v6 = vpop.eup %3897  ;;  %v1862_v47 = vpack.c.bf16 %v1842_v46, %v1841_v28  ;;  %v3039_v48 = vpack.c.bf16 %v1841_v28, %v1841_v28  ;;  %v1751_v50 = vadd.f32 1.0, %v3896_v45 }
 0x199   : > { %v3900_v49 = vpop.eup %3899  ;;  %2003 = vst.msk [vmem:[%s4640_s28 + $0x5c] sm:$0xf] %vm1979_vm5, %v3040_v53  ;;  %v3042_v25 = vpack.c.bf16 %v1844_v12, %v1844_v12  ;;  %v1843_v39 = vmul.f32 %v3898_v6, %v4728_v33 }
 0x19a   : > { %v3902_v43 = vpop.eup %3901  ;;  %2002 = vst.msk [vmem:[%s4640_s28 + $0x58] sm:$0xf] %vm1979_vm5, %v3039_v48  ;;  %3909 = vrcp.f32 %v1751_v50  ;;  %v1754_v54 = vadd.f32 1.0, %v3900_v49  ;;  %3642 = vmatmul.mubr.msk.bf16.gmra.mrb[52].mxu1 %vm2035_vm6, %v1862_v47 }
 0x19b   : > { %2005 = vst.msk [vmem:[%s4640_s28 + $0x64] sm:$0xf] %vm1979_vm5, %v3042_v25  ;;  %v1863_v0 = vpack.c.bf16 %v1844_v12, %v1843_v39  ;;  %v3041_v56 = vpack.c.bf16 %v1843_v39, %v1843_v39  ;;  %v1753_v8 = vadd.f32 1.0, %v3902_v43 }
 0x19c   : > { %v3904_v40 = vpop.eup %3903  ;;  %3911 = vrcp.f32 %v1754_v54 }
 0x19d   : > { %v3906_v42 = vpop.eup %3905  ;;  %2004 = vst.msk [vmem:[%s4640_s28 + $0x60] sm:$0xf] %vm1979_vm5, %v3041_v56  ;;  %v1846_v33 = vmul.f32 %v3904_v40, %v4742_v9  ;;  %3913 = vrcp.f32 %v1753_v8  ;;  %3645 = vmatprep.mubr.msk.bf16.mxu1 %vm2035_vm6, %v1863_v0 }
 0x19e   : > { %v1845_v59 = vmul.f32 %v3906_v42, %v4745_v2 }
 0x19f   : > { %v3044_v52 = vpack.c.bf16 %v1846_v33, %v1846_v33 }
 0x1a0   : > { %v3908_v63 = vpop.eup %3907  ;;  %v1864_v26 = vpack.c.bf16 %v1846_v33, %v1845_v59  ;;  %v3043_v4 = vpack.c.bf16 %v1845_v59, %v1845_v59 }
 0x1a1   : > { %2007 = vst.msk [vmem:[%s4640_s28 + $0x6c] sm:$0xf] %vm1979_vm5, %v3044_v52  ;;  %v1848_v61 = vmul.f32 %v3908_v63, %v4762_v37 }
 0x1a2   : > { %2006 = vst.msk [vmem:[%s4640_s28 + $0x68] sm:$0xf] %vm1979_vm5, %v3043_v4  ;;  %3646 = vmatmul.mubr.msk.bf16.gmra.mrb[56].mxu1 %vm2035_vm6, %v1864_v26 }
 0x1a3   : > { %v3046_v9 = vpack.c.bf16 %v1848_v61, %v1848_v61 }
 0x1a4   : > { %v3910_v51 = vpop.eup %3909 }
 0x1a5   : > { %2009 = vst.msk [vmem:[%s4640_s28 + $0x74] sm:$0xf] %vm1979_vm5, %v3046_v9  ;;  %v1847_v2 = vmul.f32 %v3910_v51, %v4765_v57  ;;  %v4841_v57 = vld [vmem:[%s5032_s4] ss:$0 sm:$0xff] }
 0x1a6   : > { %v3912_v7 = vpop.eup %3911 }
 0x1a7   : > { %v3914_v55 = vpop.eup %3913  ;;  %v1865_v10 = vpack.c.bf16 %v1848_v61, %v1847_v2  ;;  %v3045_v44 = vpack.c.bf16 %v1847_v2, %v1847_v2  ;;  %v1850_v1 = vmul.f32 %v3912_v7, %v4772_v15 }
 0x1a8   : > { %v1849_v37 = vmul.f32 %v3914_v55, %v4777_v13 }
 0x1a9   : > { %2008 = vst.msk [vmem:[%s4640_s28 + $0x70] sm:$0xf] %vm1979_vm5, %v3045_v44  ;;  %v3048_v35 = vpack.c.bf16 %v1850_v1, %v1850_v1  ;;  %3649 = vmatprep.mubr.msk.bf16.mxu1 %vm2035_vm6, %v1865_v10 }
 0x1aa   : > { %v1866_v18 = vpack.c.bf16 %v1850_v1, %v1849_v37  ;;  %v3047_v14 = vpack.c.bf16 %v1849_v37, %v1849_v37 }
 0x1ab   : > { %2011 = vst.msk [vmem:[%s4640_s28 + $0x7c] sm:$0xf] %vm1979_vm5, %v3048_v35 }
 0x1ac   : > { %2010 = vst.msk [vmem:[%s4640_s28 + $0x78] sm:$0xf] %vm1979_vm5, %v3047_v14  ;;  %3650 = vmatmul.mubr.msk.bf16.gmra.mrb[60].mxu1 %vm2035_vm6, %v1866_v18 }
 0x241   : > { %v3623_v15 = vpop.f32.mrb[32].mxu1 }
 0x242   : > { %v4844_v13 = vadd.f32 %v3623_v15, %v4841_v57  ;;  %v2118_v34 = vpop.f32.mrb[33].mxu1 }
 0x243   : > { %v4847_v27 = vadd.f32 %v4841_v57, %v2118_v34  ;;  %v3624_v58 = vpop.f32.mrb[34].mxu1 }
 0x244   : > { %v2950_v16 = vmul.f32 -1.442695, %v4844_v13  ;;  %v4851_v32 = vadd.f32 %v3624_v58, %v4841_v57  ;;  %v2121_v5 = vpop.f32.mrb[35].mxu1 }
 0x245   : > { %v2948_v31 = vmul.f32 -1.442695, %v4847_v27  ;;  %v4855_v21 = vadd.f32 %v4841_v57, %v2121_v5 }
 0x246   : > { %3915 = vpow2.f32 %v2950_v16  ;;  %v2951_v36 = vmul.f32 -1.442695, %v4851_v32 }
 0x247   : > { %3917 = vpow2.f32 %v2948_v31  ;;  %v2949_v22 = vmul.f32 -1.442695, %v4855_v21 }
 0x248   : > { %3919 = vpow2.f32 %v2951_v36 }
 0x249   : > { %3921 = vpow2.f32 %v2949_v22 }
 0x24b   : > { %v3627_v11 = vpop.f32.mrb[36].mxu1 }
 0x24c   : > { %v4860_v20 = vadd.f32 %v3627_v11, %v4841_v57  ;;  %v2134_v3 = vpop.f32.mrb[37].mxu1 }
 0x24d   : > { %v4863_v60 = vadd.f32 %v4841_v57, %v2134_v3  ;;  %v3628_v19 = vpop.f32.mrb[38].mxu1 }
 0x24e   : > { %v2954_v24 = vmul.f32 -1.442695, %v4860_v20  ;;  %v4867_v23 = vadd.f32 %v3628_v19, %v4841_v57  ;;  %v2137_v62 = vpop.f32.mrb[39].mxu1 }
 0x24f   : > { %v2952_v29 = vmul.f32 -1.442695, %v4863_v60  ;;  %v4871_v17 = vadd.f32 %v4841_v57, %v2137_v62 }
 0x250   : > { %v3916_v30 = vpop.eup %3915  ;;  %3923 = vpow2.f32 %v2954_v24  ;;  %v2955_v38 = vmul.f32 -1.442695, %v4867_v23 }
 0x251   : > { %v3918_v46 = vpop.eup %3917  ;;  %v2343_v41 = vadd.f32 1.0, %v3916_v30  ;;  %3925 = vpow2.f32 %v2952_v29  ;;  %v2953_v6 = vmul.f32 -1.442695, %v4871_v17 }
 0x252   : > { %v3920_v28 = vpop.eup %3919  ;;  %v2341_v45 = vadd.f32 1.0, %v3918_v46  ;;  %3927 = vpow2.f32 %v2955_v38 }
 0x253   : > { %v3922_v53 = vpop.eup %3921  ;;  %3929 = vrcp.f32 %v2343_v41  ;;  %v2344_v12 = vadd.f32 1.0, %v3920_v28  ;;  %v3631_v47 = vpop.f32.mrb[40].mxu1 }
 0x254   : > { %3931 = vrcp.f32 %v2341_v45  ;;  %v2342_v48 = vadd.f32 1.0, %v3922_v53  ;;  %v4876_v50 = vadd.f32 %v3631_v47, %v4841_v57  ;;  %v2150_v49 = vpop.f32.mrb[41].mxu1 }
 0x255   : > { %3933 = vrcp.f32 %v2344_v12  ;;  %v4879_v25 = vadd.f32 %v4841_v57, %v2150_v49  ;;  %v3632_v39 = vpop.f32.mrb[42].mxu1 }
 0x256   : > { %3935 = vrcp.f32 %v2342_v48  ;;  %v2958_v43 = vmul.f32 -1.442695, %v4876_v50  ;;  %v4883_v54 = vadd.f32 %v3632_v39, %v4841_v57  ;;  %v2153_v0 = vpop.f32.mrb[43].mxu1 }
 0x257   : > { %3937 = vpow2.f32 %v2953_v6  ;;  %v2956_v56 = vmul.f32 -1.442695, %v4879_v25  ;;  %v4887_v8 = vadd.f32 %v4841_v57, %v2153_v0 }
 0x258   : > { %3939 = vpow2.f32 %v2958_v43  ;;  %v2959_v40 = vmul.f32 -1.442695, %v4883_v54 }
 0x259   : > { %3941 = vpow2.f32 %v2956_v56  ;;  %v2957_v42 = vmul.f32 -1.442695, %v4887_v8 }
 0x25a   : > { %v3924_v33 = vpop.eup %3923  ;;  %3943 = vpow2.f32 %v2959_v40 }
 0x25b   : > { %v3926_v59 = vpop.eup %3925  ;;  %v2347_v52 = vadd.f32 1.0, %v3924_v33  ;;  %3945 = vpow2.f32 %v2957_v42  ;;  %v3635_v63 = vpop.f32.mrb[44].mxu1 }
 0x25c   : > { %v3928_v26 = vpop.eup %3927  ;;  %v2345_v4 = vadd.f32 1.0, %v3926_v59  ;;  %v4892_v61 = vadd.f32 %v3635_v63, %v4841_v57  ;;  %v2166_v9 = vpop.f32.mrb[45].mxu1 }
 0x25d   : > { %v3930_v51 = vpop.eup %3929  ;;  %3947 = vrcp.f32 %v2347_v52  ;;  %v2348_v2 = vadd.f32 1.0, %v3928_v26  ;;  %v4895_v7 = vadd.f32 %v4841_v57, %v2166_v9  ;;  %v3636_v55 = vpop.f32.mrb[46].mxu1 }
 0x25e   : > { %v3932_v10 = vpop.eup %3931  ;;  %3949 = vrcp.f32 %v2345_v4  ;;  %v2962_v44 = vmul.f32 -1.442695, %v4892_v61  ;;  %v4899_v1 = vadd.f32 %v3636_v55, %v4841_v57  ;;  %v2169_v37 = vpop.f32.mrb[47].mxu1  ;;  %v2439_v34 = vmul.f32 %v3930_v51, %v4844_v13 }
 0x25f   : > { %v3934_v35 = vpop.eup %3933  ;;  %3951 = vrcp.f32 %v2348_v2  ;;  %v2960_v18 = vmul.f32 -1.442695, %v4895_v7  ;;  %v4903_v14 = vadd.f32 %v4841_v57, %v2169_v37  ;;  %v2437_v31 = vmul.f32 %v3932_v10, %v4847_v27 }
 0x260   : > { %v3936_v15 = vpop.eup %3935  ;;  %v2440_v58 = vmul.f32 %v3934_v35, %v4851_v32  ;;  %3953 = vpow2.f32 %v2962_v44  ;;  %v2963_v16 = vmul.f32 -1.442695, %v4899_v1 }
 0x261   : > { %v3938_v5 = vpop.eup %3937  ;;  %v2438_v36 = vmul.f32 %v3936_v15, %v4855_v21  ;;  %3955 = vpow2.f32 %v2960_v18  ;;  %v2961_v13 = vmul.f32 -1.442695, %v4903_v14 }
 0x262   : > { %v3940_v22 = vpop.eup %3939  ;;  %v3153_v32 = vpack.c.bf16 %v2440_v58, %v2439_v34  ;;  %v2346_v11 = vadd.f32 1.0, %v3938_v5  ;;  %3957 = vpow2.f32 %v2963_v16 }
 0x263   : > { %v3942_v3 = vpop.eup %3941  ;;  %v3148_v19 = vpack.c.bf16 %v2438_v36, %v2437_v31  ;;  %v2351_v24 = vadd.f32 1.0, %v3940_v22  ;;  %3959 = vpow2.f32 %v2961_v13 }
 0x264   : > { %v3944_v27 = vpop.eup %3943  ;;  %3240 = vst [vmem:[%s4913_s9 + $0x8] sm:$0xff] %v3153_v32   ;;  %3961 = vrcp.f32 %v2346_v11  ;;  %v2349_v62 = vadd.f32 1.0, %v3942_v3 }
 0x265   : > { %v3946_v29 = vpop.eup %3945  ;;  %3149 = vst [vmem:[%s4913_s9] sm:$0xff] %v3148_v19   ;;  %3963 = vrcp.f32 %v2351_v24  ;;  %v2352_v21 = vadd.f32 1.0, %v3944_v27  ;;  %v3639_v30 = vpop.f32.mrb[48].mxu1 }
 0x266   : > { %3965 = vrcp.f32 %v2349_v62  ;;  %v2350_v38 = vadd.f32 1.0, %v3946_v29  ;;  %v4920_v46 = vadd.f32 %v3639_v30, %v4841_v57  ;;  %v2182_v41 = vpop.f32.mrb[49].mxu1 }
 0x267   : > { %v3948_v28 = vpop.eup %3947  ;;  %3967 = vrcp.f32 %v2352_v21  ;;  %v4923_v45 = vadd.f32 %v4841_v57, %v2182_v41  ;;  %v3640_v53 = vpop.f32.mrb[50].mxu1 }
 0x268   : > { %v3950_v12 = vpop.eup %3949  ;;  %3969 = vrcp.f32 %v2350_v38  ;;  %v2966_v6 = vmul.f32 -1.442695, %v4920_v46  ;;  %v4927_v47 = vadd.f32 %v3640_v53, %v4841_v57  ;;  %v2185_v48 = vpop.f32.mrb[51].mxu1  ;;  %v2443_v56 = vmul.f32 %v3948_v28, %v4860_v20 }
 0x269   : > { %v3952_v49 = vpop.eup %3951  ;;  %v2964_v39 = vmul.f32 -1.442695, %v4923_v45  ;;  %v4931_v43 = vadd.f32 %v4841_v57, %v2185_v48  ;;  %v2441_v37 = vmul.f32 %v3950_v12, %v4863_v60 }
 0x26a   : > { %v3954_v0 = vpop.eup %3953  ;;  %v2444_v40 = vmul.f32 %v3952_v49, %v4867_v23  ;;  %3971 = vpow2.f32 %v2966_v6  ;;  %v2967_v42 = vmul.f32 -1.442695, %v4927_v47 }
 0x26b   : > { %v3956_v33 = vpop.eup %3955  ;;  %v2355_v59 = vadd.f32 1.0, %v3954_v0  ;;  %3973 = vpow2.f32 %v2964_v39  ;;  %v2965_v51 = vmul.f32 -1.442695, %v4931_v43 }
 0x26c   : > { %v3958_v52 = vpop.eup %3957  ;;  %v3163_v63 = vpack.c.bf16 %v2444_v40, %v2443_v56  ;;  %v2353_v26 = vadd.f32 1.0, %v3956_v33  ;;  %3975 = vpow2.f32 %v2967_v42 }
 0x26d   : > { %v3960_v4 = vpop.eup %3959  ;;  %3977 = vrcp.f32 %v2355_v59  ;;  %v2356_v9 = vadd.f32 1.0, %v3958_v52  ;;  %v3643_v2 = vpop.f32.mrb[52].mxu1 }
 0x26e   : > { %v3962_v20 = vpop.eup %3961  ;;  %3242 = vst [vmem:[%s4913_s9 + $0x18] sm:$0xff] %v3163_v63   ;;  %3979 = vrcp.f32 %v2353_v26  ;;  %v2354_v23 = vadd.f32 1.0, %v3960_v4  ;;  %v4939_v55 = vadd.f32 %v3643_v2, %v4841_v57  ;;  %v2198_v10 = vpop.f32.mrb[53].mxu1 }
 0x26f   : > { %v3964_v44 = vpop.eup %3963  ;;  %v2442_v35 = vmul.f32 %v3962_v20, %v4871_v17  ;;  %3981 = vrcp.f32 %v2356_v9  ;;  %v4944_v18 = vadd.f32 %v4841_v57, %v2198_v10  ;;  %v3644_v15 = vpop.f32.mrb[54].mxu1 }
 0x270   : > { %v3966_v34 = vpop.eup %3965  ;;  %3983 = vrcp.f32 %v2354_v23  ;;  %v2970_v58 = vmul.f32 -1.442695, %v4939_v55  ;;  %v4948_v16 = vadd.f32 %v3644_v15, %v4841_v57  ;;  %v2201_v5 = vpop.f32.mrb[55].mxu1  ;;  %v2447_v60 = vmul.f32 %v3964_v44, %v4876_v50 }
 0x271   : > { %v3968_v31 = vpop.eup %3967  ;;  %v3158_v36 = vpack.c.bf16 %v2442_v35, %v2441_v37  ;;  %3985 = vpow2.f32 %v2965_v51  ;;  %v2968_v17 = vmul.f32 -1.442695, %v4944_v18  ;;  %v4955_v11 = vadd.f32 %v4841_v57, %v2201_v5 }
 0x272   : > { %v3970_v13 = vpop.eup %3969  ;;  %v2448_v22 = vmul.f32 %v3968_v31, %v4883_v54  ;;  %3987 = vpow2.f32 %v2970_v58  ;;  %v2971_v32 = vmul.f32 -1.442695, %v4948_v16  ;;  %v2445_v3 = vmul.f32 %v3966_v34, %v4879_v25 }
 0x273   : > { %3241 = vst [vmem:[%s4913_s9 + $0x10] sm:$0xff] %v3158_v36   ;;  %v2446_v19 = vmul.f32 %v3970_v13, %v4887_v8  ;;  %3989 = vpow2.f32 %v2968_v17  ;;  %v2969_v27 = vmul.f32 -1.442695, %v4955_v11 }
 0x274   : > { %v3972_v50 = vpop.eup %3971  ;;  %v3173_v24 = vpack.c.bf16 %v2448_v22, %v2447_v60  ;;  %3991 = vpow2.f32 %v2971_v32 }
 0x275   : > { %v3974_v54 = vpop.eup %3973  ;;  %v3168_v62 = vpack.c.bf16 %v2446_v19, %v2445_v3  ;;  %v2359_v29 = vadd.f32 1.0, %v3972_v50  ;;  %v3647_v21 = vpop.f32.mrb[56].mxu1  ;;  %3993 = vpow2.f32 %v2969_v27 }
 0x276   : > { %v3976_v30 = vpop.eup %3975  ;;  %3244 = vst [vmem:[%s4913_s9 + $0x28] sm:$0xff] %v3173_v24   ;;  %v2357_v38 = vadd.f32 1.0, %v3974_v54  ;;  %v4963_v41 = vadd.f32 %v3647_v21, %v4841_v57  ;;  %v2214_v25 = vpop.f32.mrb[57].mxu1 }
 0x277   : > { %v3978_v8 = vpop.eup %3977  ;;  %3243 = vst [vmem:[%s4913_s9 + $0x20] sm:$0xff] %v3168_v62   ;;  %3995 = vrcp.f32 %v2359_v29  ;;  %v2360_v28 = vadd.f32 1.0, %v3976_v30  ;;  %v4967_v53 = vadd.f32 %v4841_v57, %v2214_v25  ;;  %v3648_v12 = vpop.f32.mrb[58].mxu1 }
 0x278   : > { %v3980_v6 = vpop.eup %3979  ;;  %3997 = vrcp.f32 %v2357_v38  ;;  %v2974_v48 = vmul.f32 -1.442695, %v4963_v41  ;;  %v4971_v49 = vadd.f32 %v3648_v12, %v4841_v57  ;;  %v2217_v39 = vpop.f32.mrb[59].mxu1  ;;  %v2451_v33 = vmul.f32 %v3978_v8, %v4892_v61 }
 0x279   : > { %v3982_v0 = vpop.eup %3981  ;;  %3999 = vrcp.f32 %v2360_v28  ;;  %v2972_v56 = vmul.f32 -1.442695, %v4967_v53  ;;  %v4975_v40 = vadd.f32 %v4841_v57, %v2217_v39  ;;  %v2449_v26 = vmul.f32 %v3980_v6, %v4895_v7 }
 0x27a   : > { %v3984_v42 = vpop.eup %3983  ;;  %v2452_v59 = vmul.f32 %v3982_v0, %v4899_v1  ;;  %4001 = vpow2.f32 %v2974_v48  ;;  %v2975_v52 = vmul.f32 -1.442695, %v4971_v49 }
 0x27b   : > { %v3986_v63 = vpop.eup %3985  ;;  %v2450_v4 = vmul.f32 %v3984_v42, %v4903_v14  ;;  %4003 = vpow2.f32 %v2972_v56  ;;  %v2973_v9 = vmul.f32 -1.442695, %v4975_v40 }
 0x27c   : > { %v3988_v51 = vpop.eup %3987  ;;  %v3183_v2 = vpack.c.bf16 %v2452_v59, %v2451_v33  ;;  %v2358_v20 = vadd.f32 1.0, %v3986_v63  ;;  %4005 = vpow2.f32 %v2975_v52 }
 0x27d   : > { %v3990_v61 = vpop.eup %3989  ;;  %v3178_v23 = vpack.c.bf16 %v2450_v4, %v2449_v26  ;;  %v2363_v1 = vadd.f32 1.0, %v3988_v51  ;;  %4007 = vpow2.f32 %v2973_v9 }
 0x27e   : > { %v3992_v10 = vpop.eup %3991  ;;  %3246 = vst [vmem:[%s4913_s9 + $0x38] sm:$0xff] %v3183_v2   ;;  %4009 = vrcp.f32 %v2358_v20  ;;  %v2361_v44 = vadd.f32 1.0, %v3990_v61 }
 0x27f   : > { %3245 = vst [vmem:[%s4913_s9 + $0x30] sm:$0xff] %v3178_v23   ;;  %4011 = vrcp.f32 %v2363_v1  ;;  %v2364_v7 = vadd.f32 1.0, %v3992_v10  ;;  %v3651_v37 = vpop.f32.mrb[60].mxu1  ;;  %v3994_v14 = vpop.eup %3993 }
 0x280   : > { %4013 = vrcp.f32 %v2361_v44  ;;  %v4986_v35 = vadd.f32 %v3651_v37, %v4841_v57  ;;  %v2230_v15 = vpop.f32.mrb[61].mxu1  ;;  %v2362_v58 = vadd.f32 1.0, %v3994_v14 }
 0x281   : > { %v3996_v34 = vpop.eup %3995  ;;  %4015 = vrcp.f32 %v2364_v7  ;;  %v4989_v5 = vadd.f32 %v4841_v57, %v2230_v15  ;;  %v3652_v31 = vpop.f32.mrb[62].mxu1 }
 0x282   : > { %v3998_v36 = vpop.eup %3997  ;;  %v2978_v60 = vmul.f32 -1.442695, %v4986_v35  ;;  %v4993_v17 = vadd.f32 %v3652_v31, %v4841_v57  ;;  %v2233_v13 = vpop.f32.mrb[63].mxu1  ;;  %4017 = vrcp.f32 %v2362_v58  ;;  %v2455_v50 = vmul.f32 %v3996_v34, %v4920_v46 }
 0x283   : > { %v4000_v22 = vpop.eup %3999  ;;  %v2976_v32 = vmul.f32 -1.442695, %v4989_v5  ;;  %v4997_v3 = vadd.f32 %v4841_v57, %v2233_v13  ;;  %v2453_v28 = vmul.f32 %v3998_v36, %v4923_v45 }
 0x284   : > { %v4002_v19 = vpop.eup %4001  ;;  %v2456_v24 = vmul.f32 %v4000_v22, %v4927_v47  ;;  %4019 = vpow2.f32 %v2978_v60  ;;  %v2979_v27 = vmul.f32 -1.442695, %v4993_v17 }
 0x285   : > { %v4004_v54 = vpop.eup %4003  ;;  %v2367_v62 = vadd.f32 1.0, %v4002_v19  ;;  %4021 = vpow2.f32 %v2976_v32  ;;  %v2977_v25 = vmul.f32 -1.442695, %v4997_v3 }
 0x286   : > { %v4006_v29 = vpop.eup %4005  ;;  %v3193_v21 = vpack.c.bf16 %v2456_v24, %v2455_v50  ;;  %v2365_v30 = vadd.f32 1.0, %v4004_v54  ;;  %4023 = vpow2.f32 %v2979_v27 }
 0x287   : > { %v4008_v38 = vpop.eup %4007  ;;  %4025 = vrcp.f32 %v2367_v62  ;;  %v2368_v57 = vadd.f32 1.0, %v4006_v29 }
 0x288   : > { %v4010_v8 = vpop.eup %4009  ;;  %3248 = vst [vmem:[%s4913_s9 + $0x48] sm:$0xff] %v3193_v21   ;;  %4027 = vrcp.f32 %v2365_v30  ;;  %v2366_v46 = vadd.f32 1.0, %v4008_v38 }
 0x289   : > { %v4012_v47 = vpop.eup %4011  ;;  %v2454_v12 = vmul.f32 %v4010_v8, %v4931_v43  ;;  %4029 = vrcp.f32 %v2368_v57 }
 0x28a   : > { %v4014_v6 = vpop.eup %4013  ;;  %4031 = vrcp.f32 %v2366_v46  ;;  %v2459_v0 = vmul.f32 %v4012_v47, %v4939_v55 }
 0x28b   : > { %v4016_v48 = vpop.eup %4015  ;;  %v3188_v39 = vpack.c.bf16 %v2454_v12, %v2453_v28  ;;  %4033 = vpow2.f32 %v2977_v25  ;;  %v2457_v59 = vmul.f32 %v4014_v6, %v4944_v18 }
 0x28c   : > { %v2460_v56 = vmul.f32 %v4016_v48, %v4948_v16  ;;  %v4018_v42 = vpop.eup %4017 }
 0x28d   : > { %3247 = vst [vmem:[%s4913_s9 + $0x40] sm:$0xff] %v3188_v39   ;;  %v2458_v43 = vmul.f32 %v4018_v42, %v4955_v11 }
 0x28e   : > { %v4020_v33 = vpop.eup %4019  ;;  %v3203_v45 = vpack.c.bf16 %v2460_v56, %v2459_v0 }
 0x28f   : > { %v4022_v52 = vpop.eup %4021  ;;  %v2371_v63 = vadd.f32 1.0, %v4020_v33  ;;  %v3198_v4 = vpack.c.bf16 %v2458_v43, %v2457_v59 }
 0x290   : > { %v4024_v26 = vpop.eup %4023  ;;  %3250 = vst [vmem:[%s4913_s9 + $0x58] sm:$0xff] %v3203_v45   ;;  %v2369_v16 = vadd.f32 1.0, %v4022_v52 }
 0x291   : > { %v4026_v9 = vpop.eup %4025  ;;  %4035 = vrcp.f32 %v2371_v63  ;;  %v2372_v51 = vadd.f32 1.0, %v4024_v26  ;;  %3249 = vst [vmem:[%s4913_s9 + $0x50] sm:$0xff] %v3198_v4  }
 0x292   : > { %v4028_v55 = vpop.eup %4027  ;;  %v2463_v18 = vmul.f32 %v4026_v9, %v4963_v41 }
 0x293   : > { %v4030_v2 = vpop.eup %4029  ;;  %4037 = vrcp.f32 %v2372_v51  ;;  %v2461_v23 = vmul.f32 %v4028_v55, %v4967_v53 }
 0x294   : > { %v4032_v20 = vpop.eup %4031  ;;  %v2464_v11 = vmul.f32 %v4030_v2, %v4971_v49  ;;  %4039 = vrcp.f32 %v2369_v16 }
 0x295   : > { %v4034_v61 = vpop.eup %4033  ;;  %v2462_v1 = vmul.f32 %v4032_v20, %v4975_v40 }
 0x296   : > { %v3213_v10 = vpack.c.bf16 %v2464_v11, %v2463_v18  ;;  %v2370_v44 = vadd.f32 1.0, %v4034_v61 }
 0x297   : > { %v3208_v7 = vpack.c.bf16 %v2462_v1, %v2461_v23 }
 0x298   : > { %3252 = vst [vmem:[%s4913_s9 + $0x68] sm:$0xff] %v3213_v10   ;;  %4041 = vrcp.f32 %v2370_v44 }
 0x299   : > { %3251 = vst [vmem:[%s4913_s9 + $0x60] sm:$0xff] %v3208_v7  }
 0x29b   : > { %v4036_v37 = vpop.eup %4035 }
 0x29c   : > { %v2467_v41 = vmul.f32 %v4036_v37, %v4986_v35 }
 0x29d   : > { %v4038_v14 = vpop.eup %4037 }
 0x29e   : > { %v2468_v49 = vmul.f32 %v4038_v14, %v4993_v17  ;;  %v4040_v15 = vpop.eup %4039 }
 0x29f   : > { %v2465_v40 = vmul.f32 %v4040_v15, %v4989_v5 }
 0x2a0   : > { %v3223_v34 = vpack.c.bf16 %v2468_v49, %v2467_v41 }
 0x2a2   : > { %v4042_v53 = vpop.eup %4041  ;;  %3254 = vst [vmem:[%s4913_s9 + $0x78] sm:$0xff] %v3223_v34  }
 0x2a3   : > { %v2466_v58 = vmul.f32 %v4042_v53, %v4997_v3 }
 0x2a5   : > { %v3218_v31 = vpack.c.bf16 %v2466_v58, %v2465_v40 }
 0x2a7   : > { %3253 = vst [vmem:[%s4913_s9 + $0x70] sm:$0xff] %v3218_v31  }
 0x2a8 PF: > { %s17_s21 = sadd.s32 1, %s4049_s21  }
 0x2a9   : > { %p14_p4 = scmp.ge.s32.totalorder %s17_s21, 4  }
 0x2ab   :  { %16 = sbr.rel (!%p14_p4) target bundleno = 1 (0x1), region = 85 }

// kernel: deepfake_encoder_forward.5
= control target key start
LH: loop header
LB: loop body
LE: loop exit
PB: predicated region body
PF: predicated region fallthrough
CT: control target
= control target key end

     0   :  { %12 = vsyncpa [#allocation3], 0  ;;  %s2037_s0 = inlined_call_operand.vmem [shape: bf16[2,256,128], index: 0, kind: input, shape index: {}]   ;;  %s2038_s1 = inlined_call_operand.vmem [shape: bf16[2,256,32], index: 1, kind: input, shape index: {}]   ;;  %s2039_s2 = inlined_call_operand.vmem [shape: f32[2,1,128], index: 2, kind: input, shape index: {}]   ;;  %s2040_s3 = inlined_call_operand.vmem [shape: bf16[128,32], index: 3, kind: input, shape index: {}]   ;;  %s2041_s4 = inlined_call_operand.vmem [shape: f32[1,32], index: 4, kind: input, shape index: {}]   ;;  %s2042_s5 = inlined_call_operand.vmem [shape: bf16[32,128], index: 5, kind: input, shape index: {}]   ;;  %s2043_s6 = inlined_call_operand.vmem [shape: f32[1,128], index: 6, kind: input, shape index: {}]   ;;  %s2044_s7 = inlined_call_operand.hbm [shape: bf16[2,256,128], index: 7, kind: output, shape index: {}]  }
   0x1   :  { %14 = vsyncpa [#allocation3 + $0x1], 0  ;;  %s1684_s24 = smov 0   ;;  %s1686_s25 = smov 0  }
   0x2   :  { %s1688_s26 = smov 0   ;;  %s1690_s27 = smov 0  }
   0x3   :  { %s1692_s28 = smov 0   ;;  %s1694_s29 = smov 0  }
   0x4   :  { %s1696_s30 = smov 0   ;;  %s1698_s8 = smov 0  }
   0x5 LB: > { %2048 = sst [smem:[#allocation5_spill]] %s1635_s30  ;;  %s1108_s9 = sadd.s32 4294967295, %s1639_s8   ;;  %s1639_s8 = sphi %s1698_s8, %s20_s8   ;;  %s1635_s30 = sphi %s1696_s30, %s2055_s30   ;;  %s1631_s29 = sphi %s1694_s29, %s2060_s29   ;;  %s1627_s28 = sphi %s1692_s28, %s2053_s28   ;;  %s1623_s27 = sphi %s1690_s27, %s2059_s27   ;;  %s1619_s26 = sphi %s1688_s26, %s2058_s26   ;;  %s1615_s25 = sphi %s1686_s25, %s2057_s25   ;;  %s1611_s24 = sphi %s1684_s24, %s2056_s24  }
   0x6   : > { %s1109_s10 = sadd.s32 4294967294, %s1639_s8   ;;  %s29_s11 = sadd.s32 1, %s1631_s29 }
   0x7   : > { %p30_p0 = scmp.ge.s32.totalorder %s29_s11, 2  ;;  %s32_s12 = sadd.s32 1, %s1635_s30 }
   0x8   : > { %p217_p1 = scmp.ne.s32.totalorder %s1619_s26, %s1615_s25  ;;  %p218_p2 = scmp.eq.s32.totalorder %s1108_s9, 3 }
   0x9   : > { %s2062_s11 = smov (%p30_p0, %s29_s11), 0  ;;  %s2064_s12 = smov (!%p30_p0, %s32_s12), %s1635_s30 }
   0xa   : > { %2049 = sst [smem:[#allocation6_spill]] %s2062_s11  ;;  %s203_s13 = ssub.s32 %s1631_s29, %s2062_s11 }
   0xb   : > { %p1735_p3 = por %p218_p2, %p217_p1  ;;  %p34_p4 = scmp.ge.s32.totalorder %s2064_s12, 2 }
   0xc   : > { %p223_p5 = scmp.ne.s32.totalorder %s1615_s25, %s1611_s24  ;;  %p224_p6 = scmp.eq.s32.totalorder %s1109_s10, 3 }
   0xd   : > { %p1112_p7 = scmp.ge.s32.totalorder %s1639_s8, 1  ;;  %s2066_s12 = smov (%p34_p4, %s2064_s12), 0 }
   0xe   : > { %2051 = sst [smem:[#allocation7_spill]] %s2066_s12  ;;  %p1744_p8 = por %p224_p6, %p223_p5 }
   0xf   : > { %p286_p9 = scmp.lt.s32.totalorder %s1639_s8, 5  ;;  %s202_s16 = ssub.s32 %s1635_s30, %s2066_s12 }
  0x10   : > { %s207_s17 = sadd.s32 1, %s1619_s26  ;;  %s204_s18 = sor.u32 %s203_s13, %s202_s16 }
  0x11   : > { %p287_p10 = pnand %p1112_p7, %p286_p9  ;;  %p205_p11 = scmp.eq.s32.totalorder %s204_s18, 0 }
  0x12   : > { %v1471_v0 = vld [vmem:[%s2040_s3] sm:$0xff] (!%p287_p10)   ;;  %s1759_s22 = sshll.u32 (!%p287_p10), %s1623_s27, 4  ;;  %v1472_v1 = vld [vmem:[%s2040_s3 + $0x8] sm:$0xff] (!%p287_p10)   ;;  %p335_p12 = scmp.lt.s32.totalorder (!%p287_p10), %s1627_s28, 1  ;;  %v1473_v2 = vld [vmem:[%s2040_s3 + $0x10] sm:$0xff] (!%p287_p10)   ;;  %vm669_vm0 = vcmask (!%p287_p10), 261120  }
  0x13   : > { %s1753_s19 = scalar_select %p205_p11, %s1619_s26, %s207_s17  }
  0x14   : > { %290 = sbr.rel (%p287_p10) target bundleno = 561 (0x231), region = 48  ;;  %1346 = vmatprep.subr.bf16.mxu0 (!%p287_p10), %v1471_v0  ;;  %p337_p13 = scmp.lt.s32.totalorder (!%p287_p10), %s1759_s22, 31  ;;  %v1474_v3 = vld [vmem:[%s2040_s3 + $0x18] sm:$0xff] (!%p287_p10)   ;;  %v1475_v8 = vld [vmem:[%s2040_s3 + $0x20] sm:$0xff] (!%p287_p10)   ;;  %v1476_v12 = vld [vmem:[%s2040_s3 + $0x28] sm:$0xff] (!%p287_p10)  }
  0x15   : > { %1347 = vmatpush3.bf16.msra.mxu0 (!%p287_p10), %v1471_v0  ;;  %v1477_v14 = vld [vmem:[%s2040_s3 + $0x30] sm:$0xff] (!%p287_p10)   ;;  %v1478_v20 = vld [vmem:[%s2040_s3 + $0x38] sm:$0xff] (!%p287_p10)   ;;  %v1479_v57 = vld [vmem:[%s2042_s5] sm:$0xff] (!%p287_p10)   ;;  %s331_s21 = sand.u32 (!%p287_p10), 1, %s1615_s25   ;;  %s1175_s16 = sshll.u32 (!%p287_p10), %s1627_s28, 5 }
  0x16   : > { %1348 = vmatprep.subr.bf16.mxu0 (!%p287_p10), %v1472_v1  ;;  %1378 = vmatprep.subr.bf16.mxu1 (!%p287_p10), %v1479_v57  ;;  %v1480_v58 = vld [vmem:[%s2042_s5 + $0x8] sm:$0xff] (!%p287_p10)   ;;  %v1843_v61 = vld [vmem:[%s2041_s4] ss:$0 sm:$0xff] (!%p287_p10)  ;;  %s1641_s20 = smov (!%p287_p10), [#allocation2]  }
  0x17   : > { %1379 = vmatpush3.bf16.msra.mxu1 (!%p287_p10), %v1479_v57 }
  0x18   : > { %1380 = vmatprep.subr.bf16.mxu1 (!%p287_p10), %v1480_v58 }
  0x19   : > { %1349 = vmatpush3.bf16.msra.mxu0 (!%p287_p10), %v1472_v1 }
  0x1a   : > { %1350 = vmatprep.subr.bf16.mxu0 (!%p287_p10), %v1473_v2 }
  0x1b   : > { %s336_s10 = scalar_select %p335_p12, %s1627_s28, 1  ;;  %1381 = vmatpush3.bf16.msra.mxu1 %v1480_v58 }
  0x1c   : > { %s338_s17 = scalar_select %p337_p13, %s1759_s22, 31 }
  0x1d   : > { %s1115_s18 = sshll.u32 %s336_s10, 5  ;;  %s356_s23 = scalar_lea.vmem %s2039_s2, %s336_s10  ;;  %1351 = vmatpush3.bf16.msra.mxu0 %v1473_v2 }
  0x1e   : > { %s1771_s27 = sadd.s32 %s1115_s18, %s338_s17  ;;  %v1788_v5 = vld [vmem:[%s356_s23] ss:$0 sm:$0xff]  ;;  %1352 = vmatprep.subr.bf16.mxu0 %v1474_v3  ;;  %s1113_s23 = sshll.u32 %s331_s21, 6 }
  0x1f   : > { %s1116_s9 = sshll.u32 %s1771_s27, 2  ;;  %s1951_s13 = scalar_lea.vmem [#allocation2], %s1113_s23 }
  0x20   : > { %s1785_s30 = scalar_lea.vmem %s2037_s0, %s1116_s9  ;;  %s1836_s12 = scalar_lea.vmem %s2038_s1, %s1116_s9 }
  0x21   : > { %v1196_v4 = vld [vmem:[%s1785_s30] sm:$0xff]   ;;  %1353 = vmatpush3.bf16.msra.mxu0 %v1474_v3  ;;  %v1299_v13 = vld [vmem:[%s1785_s30 + $0x8] sm:$0xff]   ;;  %v1300_v15 = vld [vmem:[%s1785_s30 + $0x10] sm:$0xff]   ;;  %s999_s28 = sshll.u32 %s1951_s13, 4  ;;  %s1549_s27 = sshll.u32 %s1641_s20, 4  ;;  %s1979_s28 = int_to_ptr.vmem [resolvable:$true] %s999_s28  ;;  %s1550_s27 = int_to_ptr.vmem [resolvable:$false] %s1549_s27 }
  0x22   : > { %v1197_v6 = vunpack.c.l.bf16 %v1196_v4  ;;  %v1198_v7 = vunpack.c.h.bf16 %v1196_v4  ;;  %1354 = vmatprep.subr.bf16.mxu0 %v1475_v8  ;;  %v1201_v16 = vunpack.c.l.bf16 %v1299_v13  ;;  %v1202_v17 = vunpack.c.h.bf16 %v1299_v13  ;;  %v1301_v25 = vld [vmem:[%s1785_s30 + $0x18] sm:$0xff]   ;;  %v1302_v26 = vld [vmem:[%s1785_s30 + $0x20] sm:$0xff]   ;;  %v1303_v37 = vld [vmem:[%s1785_s30 + $0x28] sm:$0xff]   ;;  %s1545_s18 = scalar_lea.vmem %s1979_s28, 1024  ;;  %s1551_s9 = scalar_lea.vmem %s1550_s27, 2048 }
  0x23   : > { %v1205_v18 = vunpack.c.l.bf16 %v1300_v15  ;;  %v1206_v19 = vunpack.c.h.bf16 %v1300_v15  ;;  %v1209_v28 = vunpack.c.l.bf16 %v1301_v25  ;;  %v1210_v29 = vunpack.c.h.bf16 %v1301_v25  ;;  %v1304_v38 = vld [vmem:[%s1785_s30 + $0x30] sm:$0xff]   ;;  %v1305_v49 = vld [vmem:[%s1785_s30 + $0x38] sm:$0xff]   ;;  %v1306_v59 = vld [vmem:[%s1836_s12 + $0x8] sm:$0xff]   ;;  %s996_s30 = sadd.s32 %s1175_s16, %s1759_s22  ;;  %p1546_p0 = scmp.ne.s32.totalorder %s1979_s28, %s1545_s18 }
  0x24   : > { %v398_v9 = vmul.f32 %v1197_v6, %v1788_v5  ;;  %v399_v10 = vmul.f32 %v1198_v7, %v1788_v5  ;;  %v400_v21 = vmul.f32 %v1201_v16, %v1788_v5  ;;  %v401_v22 = vmul.f32 %v1202_v17, %v1788_v5  ;;  %v1228_v60 = vld [vmem:[%s1836_s12] sm:$0xff]   ;;  %s1176_s10 = sshll.u32 %s996_s30, 6  ;;  %p1552_p4 = scmp.lt.s32.totalorder %s1979_s28, %s1550_s27 }
  0x25   : > { %1355 = vmatpush3.bf16.msra.mxu0 %v1475_v8  ;;  %v402_v23 = vmul.f32 %v1205_v18, %v1788_v5  ;;  %v403_v24 = vmul.f32 %v1206_v19, %v1788_v5  ;;  %v1213_v31 = vunpack.c.l.bf16 %v1302_v26  ;;  %v1214_v32 = vunpack.c.h.bf16 %v1302_v26  ;;  %s1975_s22 = scalar_lea.hbm %s2044_s7, %s1176_s10  ;;  %p1547_p1 = pnand %p1546_p0, %p1735_p3 }
  0x26   : > { %v414_v11 = vpack.c.bf16 %v399_v10, %v398_v9  ;;  %1356 = vmatprep.subr.bf16.mxu0 %v1476_v12  ;;  %v415_v27 = vpack.c.bf16 %v401_v22, %v400_v21  ;;  %v404_v33 = vmul.f32 %v1209_v28, %v1788_v5  ;;  %v405_v34 = vmul.f32 %v1210_v29, %v1788_v5  ;;  %p1553_p5 = scmp.lt.s32.totalorder %s1551_s9, %s1545_s18 }
  0x27   : > { %v416_v30 = vpack.c.bf16 %v403_v24, %v402_v23  ;;  %v406_v35 = vmul.f32 %v1213_v31, %v1788_v5  ;;  %v407_v36 = vmul.f32 %v1214_v32, %v1788_v5  ;;  %v1217_v40 = vunpack.c.l.bf16 %v1303_v37  ;;  %v1310_v32 = vld [vmem:[%s1836_s12 + $0x28] sm:$0xff]   ;;  %p1548_p2 = pneg %p1547_p1 }
  0x28   : > { %1362 = vmatprep.mubr.bf16.mxu0 %v414_v11  ;;  %v417_v39 = vpack.c.bf16 %v405_v34, %v404_v33  ;;  %v1218_v41 = vunpack.c.h.bf16 %v1303_v37  ;;  %v1221_v43 = vunpack.c.l.bf16 %v1304_v38  ;;  %v1222_v44 = vunpack.c.h.bf16 %v1304_v38  ;;  %v1309_v34 = vld [vmem:[%s1836_s12 + $0x20] sm:$0xff]   ;;  %p1554_p6 = por %p1553_p5, %p1552_p4 }
  0x29   : > { %1357 = vmatpush3.bf16.msra.mxu0 %v1476_v12  ;;  %v418_v42 = vpack.c.bf16 %v407_v36, %v406_v35  ;;  %v408_v45 = vmul.f32 %v1217_v40, %v1788_v5  ;;  %v1225_v51 = vunpack.c.l.bf16 %v1305_v49  ;;  %v1226_v52 = vunpack.c.h.bf16 %v1305_v49  ;;  %v1308_v12 = vld [vmem:[%s1836_s12 + $0x18] sm:$0xff]  }
  0x2a   : > { %1358 = vmatprep.subr.bf16.mxu0 %v1477_v14  ;;  %v409_v46 = vmul.f32 %v1218_v41, %v1788_v5  ;;  %v410_v47 = vmul.f32 %v1221_v43, %v1788_v5  ;;  %v411_v48 = vmul.f32 %v1222_v44, %v1788_v5  ;;  %v1233_v62 = vunpack.c.l.bf16 %v1306_v59  ;;  %p1555_p7 = pnand %p1554_p6, %p1548_p2 }
  0x2b   : > { %v412_v54 = vmul.f32 %v1225_v51, %v1788_v5  ;;  %v413_v55 = vmul.f32 %v1226_v52, %v1788_v5  ;;  %v1229_v0 = vunpack.c.l.bf16 %v1228_v60  ;;  %v1234_v3 = vunpack.c.h.bf16 %v1306_v59  ;;  %v1312_v52 = vld [vmem:[%s1836_s12 + $0x38] sm:$0xff]  }
  0x2c   : > { %v419_v50 = vpack.c.bf16 %v409_v46, %v408_v45  ;;  %v420_v53 = vpack.c.bf16 %v411_v48, %v410_v47  ;;  %v1230_v6 = vunpack.c.h.bf16 %v1228_v60  ;;  %v1241_v17 = vunpack.c.l.bf16 %v1308_v12 }
  0x2d   : > { %1359 = vmatpush3.bf16.msra.mxu0 %v1477_v14  ;;  %v421_v56 = vpack.c.bf16 %v413_v55, %v412_v54  ;;  %v1307_v14 = vld [vmem:[%s1836_s12 + $0x10] sm:$0xff]   ;;  %v1242_v23 = vunpack.c.h.bf16 %v1308_v12  ;;  %v1249_v37 = vunpack.c.l.bf16 %v1310_v32  ;;  %v1245_v40 = vunpack.c.l.bf16 %v1309_v34 }
  0x2e   : > { %1360 = vmatprep.subr.bf16.mxu0 %v1478_v20  ;;  %v1237_v19 = vunpack.c.l.bf16 %v1307_v14  ;;  %v1238_v26 = vunpack.c.h.bf16 %v1307_v14  ;;  %v1250_v43 = vunpack.c.h.bf16 %v1310_v32  ;;  %v1246_v46 = vunpack.c.h.bf16 %v1309_v34  ;;  %v1311_v54 = vld [vmem:[%s1836_s12 + $0x30] sm:$0xff]   ;;  %s1985_s12 = scalar_lea.sflag [#allocation3], %s331_s21 }
  0x2f   : > { %v1257_v57 = vunpack.c.l.bf16 %v1312_v52  ;;  %v1253_v60 = vunpack.c.l.bf16 %v1311_v54 }
  0x31   : > { %1361 = vmatpush3.bf16.msra.mxu0 %v1478_v20 }
  0x34   : > { %1363 = vmatmul.mubr.bf16.vlgmr.msra.gmra.mrb[0].mxu0 %v415_v27 }
  0x35   : > { %1366 = vmatprep.mubr.bf16.mxu0 %v416_v30 }
  0x3c   : > { %1367 = vmatmul.mubr.bf16.gmra.mrb[4].mxu0 %v417_v39 }
  0x3d   : > { %1370 = vmatprep.mubr.bf16.mxu0 %v418_v42 }
  0x44   : > { %1371 = vmatmul.mubr.bf16.gmra.mrb[8].mxu0 %v419_v50 }
  0x45   : > { %1374 = vmatprep.mubr.bf16.mxu0 %v420_v53 }
  0x4c   : > { %1375 = vmatmul.mubr.bf16.gmra.mrb[12].mxu0 %v421_v56 }
 0x107   : > { %v1364_v63 = vpop.f32.mrb[0].mxu0 }
 0x108   : > { %v536_v1 = vadd.f32 %v1364_v63, %v1843_v61  ;;  %v527_v2 = vpop.f32.mrb[1].mxu0 }
 0x109   : > { %v528_v4 = vadd.f32 %v1843_v61, %v527_v2  ;;  %v1365_v5 = vpop.f32.mrb[2].mxu0 }
 0x10a   : > { %v624_v7 = vadd.f32 %v1233_v62, %v536_v1  ;;  %v539_v8 = vadd.f32 %v1365_v5, %v1843_v61  ;;  %v530_v9 = vpop.f32.mrb[3].mxu0 }
 0x10b   : > { %v622_v10 = vadd.f32 %v1229_v0, %v528_v4  ;;  %v531_v11 = vadd.f32 %v1843_v61, %v530_v9  ;;  %v1258_v0 = vunpack.c.h.bf16 %v1312_v52 }
 0x10c   : > { %v625_v13 = vadd.f32 %v1234_v3, %v539_v8  ;;  %v1254_v3 = vunpack.c.h.bf16 %v1311_v54 }
 0x10d   : > { %v623_v15 = vadd.f32 %v1230_v6, %v531_v11 }
 0x10e   : > { %v639_v16 = vpack.c.bf16 %v625_v13, %v624_v7  ;;  %v1878_v13 = vld [vmem:[%s2043_s6] ss:$0 sm:$0xff] }
 0x10f   : > { %v1368_v18 = vpop.f32.mrb[4].mxu0  ;;  %v638_v20 = vpack.c.bf16 %v623_v15, %v622_v10 }
 0x110   : > { %v552_v21 = vadd.f32 %v1368_v18, %v1843_v61  ;;  %v543_v22 = vpop.f32.mrb[5].mxu0 }
 0x111   : > { %v544_v24 = vadd.f32 %v1843_v61, %v543_v22  ;;  %v1369_v25 = vpop.f32.mrb[6].mxu0  ;;  %1382 = vmatprep.mubr.msk.bf16.mxu1 %vm669_vm0, %v638_v20 }
 0x112   : > { %v628_v27 = vadd.f32 %v1241_v17, %v552_v21  ;;  %v555_v28 = vadd.f32 %v1369_v25, %v1843_v61  ;;  %v546_v29 = vpop.f32.mrb[7].mxu0  ;;  %1383 = vmatmul.mubr.msk.bf16.vlgmr.msra.gmra.mrb[0].mxu1 %vm669_vm0, %v639_v16 }
 0x113   : > { %v626_v30 = vadd.f32 %v1237_v19, %v544_v24  ;;  %v547_v31 = vadd.f32 %v1843_v61, %v546_v29 }
 0x114   : > { %v629_v33 = vadd.f32 %v1242_v23, %v555_v28 }
 0x115   : > { %v627_v35 = vadd.f32 %v1238_v26, %v547_v31 }
 0x116   : > { %v641_v36 = vpack.c.bf16 %v629_v33, %v628_v27 }
 0x117   : > { %v640_v38 = vpack.c.bf16 %v627_v35, %v626_v30  ;;  %v1372_v39 = vpop.f32.mrb[8].mxu0 }
 0x118   : > { %v568_v41 = vadd.f32 %v1372_v39, %v1843_v61  ;;  %v559_v42 = vpop.f32.mrb[9].mxu0 }
 0x119   : > { %v560_v44 = vadd.f32 %v1843_v61, %v559_v42  ;;  %v1373_v45 = vpop.f32.mrb[10].mxu0  ;;  %1386 = vmatprep.mubr.msk.bf16.mxu1 %vm669_vm0, %v640_v38 }
 0x11a   : > { %v632_v47 = vadd.f32 %v1249_v37, %v568_v41  ;;  %v571_v48 = vadd.f32 %v1373_v45, %v1843_v61  ;;  %v562_v49 = vpop.f32.mrb[11].mxu0  ;;  %1387 = vmatmul.mubr.msk.bf16.gmra.mrb[4].mxu1 %vm669_vm0, %v641_v36 }
 0x11b   : > { %v630_v50 = vadd.f32 %v1245_v40, %v560_v44  ;;  %v563_v51 = vadd.f32 %v1843_v61, %v562_v49 }
 0x11c   : > { %v633_v53 = vadd.f32 %v1250_v43, %v571_v48 }
 0x11d   : > { %v631_v55 = vadd.f32 %v1246_v46, %v563_v51 }
 0x11e   : > { %v643_v56 = vpack.c.bf16 %v633_v53, %v632_v47 }
 0x11f   : > { %v642_v58 = vpack.c.bf16 %v631_v55, %v630_v50  ;;  %v1376_v59 = vpop.f32.mrb[12].mxu0 }
 0x120   : > { %v584_v62 = vadd.f32 %v1376_v59, %v1843_v61  ;;  %v575_v63 = vpop.f32.mrb[13].mxu0 }
 0x121   : > { %v576_v1 = vadd.f32 %v1843_v61, %v575_v63  ;;  %v1377_v2 = vpop.f32.mrb[14].mxu0  ;;  %1390 = vmatprep.mubr.msk.bf16.mxu1 %vm669_vm0, %v642_v58 }
 0x122   : > { %v636_v4 = vadd.f32 %v1257_v57, %v584_v62  ;;  %v587_v5 = vadd.f32 %v1377_v2, %v1843_v61  ;;  %v578_v6 = vpop.f32.mrb[15].mxu0  ;;  %1391 = vmatmul.mubr.msk.bf16.gmra.mrb[8].mxu1 %vm669_vm0, %v643_v56 }
 0x123   : > { %v634_v7 = vadd.f32 %v1253_v60, %v576_v1  ;;  %v579_v8 = vadd.f32 %v1843_v61, %v578_v6 }
 0x124   : > { %v637_v9 = vadd.f32 %v1258_v0, %v587_v5 }
 0x125   : > { %v635_v10 = vadd.f32 %v1254_v3, %v579_v8 }
 0x126   : > { %v645_v11 = vpack.c.bf16 %v637_v9, %v636_v4 }
 0x127   : > { %v644_v12 = vpack.c.bf16 %v635_v10, %v634_v7 }
 0x129   : > { %1394 = vmatprep.mubr.msk.bf16.mxu1 %vm669_vm0, %v644_v12 }
 0x12a   : > { %1395 = vmatmul.mubr.msk.bf16.gmra.mrb[12].mxu1 %vm669_vm0, %v645_v11 }
 0x1e5   : > { %v1384_v14 = vpop.f32.mrb[0].mxu1 }
 0x1e6   : > { %v1881_v15 = vadd.f32 %v1384_v14, %v1878_v13  ;;  %v728_v16 = vpop.f32.mrb[1].mxu1 }
 0x1e7   : > { %v1884_v61 = vadd.f32 %v1878_v13, %v728_v16  ;;  %v1385_v17 = vpop.f32.mrb[2].mxu1 }
 0x1e8   : > { %v1143_v18 = vmul.f32 -1.442695, %v1881_v15  ;;  %v1888_v19 = vadd.f32 %v1385_v17, %v1878_v13  ;;  %v731_v20 = vpop.f32.mrb[3].mxu1 }
 0x1e9   : > { %v1141_v21 = vmul.f32 -1.442695, %v1884_v61  ;;  %v1892_v22 = vadd.f32 %v1878_v13, %v731_v20 }
 0x1ea   : > { %1481 = vpow2.f32 %v1143_v18  ;;  %v1144_v23 = vmul.f32 -1.442695, %v1888_v19 }
 0x1eb   : > { %1483 = vpow2.f32 %v1141_v21  ;;  %v1142_v24 = vmul.f32 -1.442695, %v1892_v22 }
 0x1ec   : > { %1485 = vpow2.f32 %v1144_v23 }
 0x1ed   : > { %1487 = vpow2.f32 %v1142_v24  ;;  %v1388_v25 = vpop.f32.mrb[4].mxu1 }
 0x1ee   : > { %v1897_v26 = vadd.f32 %v1388_v25, %v1878_v13  ;;  %v744_v27 = vpop.f32.mrb[5].mxu1 }
 0x1ef   : > { %v1900_v28 = vadd.f32 %v1878_v13, %v744_v27  ;;  %v1389_v29 = vpop.f32.mrb[6].mxu1 }
 0x1f0   : > { %v1147_v30 = vmul.f32 -1.442695, %v1897_v26  ;;  %v1904_v31 = vadd.f32 %v1389_v29, %v1878_v13  ;;  %v747_v32 = vpop.f32.mrb[7].mxu1 }
 0x1f1   : > { %v1145_v33 = vmul.f32 -1.442695, %v1900_v28  ;;  %v1908_v34 = vadd.f32 %v1878_v13, %v747_v32 }
 0x1f2   : > { %1489 = vpow2.f32 %v1147_v30  ;;  %v1148_v35 = vmul.f32 -1.442695, %v1904_v31 }
 0x1f3   : > { %1491 = vpow2.f32 %v1145_v33  ;;  %v1146_v36 = vmul.f32 -1.442695, %v1908_v34 }
 0x1f4   : > { %v1482_v37 = vpop.eup %1481  ;;  %1493 = vpow2.f32 %v1148_v35 }
 0x1f5   : > { %v1484_v38 = vpop.eup %1483  ;;  %v841_v39 = vadd.f32 1.0, %v1482_v37  ;;  %1495 = vpow2.f32 %v1146_v36  ;;  %v1392_v40 = vpop.f32.mrb[8].mxu1 }
 0x1f6   : > { %v1486_v41 = vpop.eup %1485  ;;  %v839_v42 = vadd.f32 1.0, %v1484_v38  ;;  %v1913_v43 = vadd.f32 %v1392_v40, %v1878_v13  ;;  %v760_v44 = vpop.f32.mrb[9].mxu1 }
 0x1f7   : > { %v1488_v45 = vpop.eup %1487  ;;  %1497 = vrcp.f32 %v841_v39  ;;  %v842_v46 = vadd.f32 1.0, %v1486_v41  ;;  %v1916_v47 = vadd.f32 %v1878_v13, %v760_v44  ;;  %v1393_v48 = vpop.f32.mrb[10].mxu1 }
 0x1f8   : > { %1499 = vrcp.f32 %v839_v42  ;;  %v840_v49 = vadd.f32 1.0, %v1488_v45  ;;  %v1151_v50 = vmul.f32 -1.442695, %v1913_v43  ;;  %v1920_v51 = vadd.f32 %v1393_v48, %v1878_v13  ;;  %v763_v52 = vpop.f32.mrb[11].mxu1 }
 0x1f9   : > { %1501 = vrcp.f32 %v842_v46  ;;  %v1149_v53 = vmul.f32 -1.442695, %v1916_v47  ;;  %v1924_v54 = vadd.f32 %v1878_v13, %v763_v52 }
 0x1fa   : > { %1503 = vrcp.f32 %v840_v49  ;;  %v1152_v55 = vmul.f32 -1.442695, %v1920_v51 }
 0x1fb   : > { %1505 = vpow2.f32 %v1151_v50  ;;  %v1150_v56 = vmul.f32 -1.442695, %v1924_v54 }
 0x1fc   : > { %v1490_v57 = vpop.eup %1489  ;;  %1507 = vpow2.f32 %v1149_v53 }
 0x1fd   : > { %v1492_v58 = vpop.eup %1491  ;;  %v845_v59 = vadd.f32 1.0, %v1490_v57  ;;  %1509 = vpow2.f32 %v1152_v55  ;;  %v1396_v60 = vpop.f32.mrb[12].mxu1 }
 0x1fe   : > { %v1494_v62 = vpop.eup %1493  ;;  %v843_v63 = vadd.f32 1.0, %v1492_v58  ;;  %1511 = vpow2.f32 %v1150_v56  ;;  %v1929_v0 = vadd.f32 %v1396_v60, %v1878_v13  ;;  %v776_v1 = vpop.f32.mrb[13].mxu1 }
 0x1ff   : > { %v1496_v2 = vpop.eup %1495  ;;  %1513 = vrcp.f32 %v845_v59  ;;  %v846_v3 = vadd.f32 1.0, %v1494_v62  ;;  %v1933_v4 = vadd.f32 %v1878_v13, %v776_v1  ;;  %v1397_v5 = vpop.f32.mrb[14].mxu1 }
 0x200   : > { %1515 = vrcp.f32 %v843_v63  ;;  %v844_v6 = vadd.f32 1.0, %v1496_v2  ;;  %v1155_v7 = vmul.f32 -1.442695, %v1929_v0  ;;  %v1937_v8 = vadd.f32 %v1397_v5, %v1878_v13  ;;  %v779_v9 = vpop.f32.mrb[15].mxu1 }
 0x201   : > { %v1498_v10 = vpop.eup %1497  ;;  %1517 = vrcp.f32 %v846_v3  ;;  %v1153_v11 = vmul.f32 -1.442695, %v1933_v4  ;;  %v1941_v12 = vadd.f32 %v1878_v13, %v779_v9 }
 0x202   : > { %v1500_v14 = vpop.eup %1499  ;;  %1519 = vrcp.f32 %v844_v6  ;;  %v1156_v16 = vmul.f32 -1.442695, %v1937_v8  ;;  %v889_v21 = vmul.f32 %v1498_v10, %v1881_v15 }
 0x203   : > { %v1502_v17 = vpop.eup %1501  ;;  %1521 = vpow2.f32 %v1155_v7  ;;  %v1154_v18 = vmul.f32 -1.442695, %v1941_v12  ;;  %v887_v13 = vmul.f32 %v1500_v14, %v1884_v61 }
 0x204   : > { %v1504_v20 = vpop.eup %1503  ;;  %v890_v23 = vmul.f32 %v1502_v17, %v1888_v19  ;;  %1523 = vpow2.f32 %v1153_v11 }
 0x205   : > { %v1506_v24 = vpop.eup %1505  ;;  %v888_v25 = vmul.f32 %v1504_v20, %v1892_v22  ;;  %1525 = vpow2.f32 %v1156_v16 }
 0x206   : > { %v1508_v27 = vpop.eup %1507  ;;  %v1267_v29 = vpack.c.bf16 %v890_v23, %v889_v21  ;;  %v849_v30 = vadd.f32 1.0, %v1506_v24  ;;  %1527 = vpow2.f32 %v1154_v18 }
 0x207   : > { %v1510_v32 = vpop.eup %1509  ;;  %v1262_v33 = vpack.c.bf16 %v888_v25, %v887_v13  ;;  %v847_v35 = vadd.f32 1.0, %v1508_v27 }
 0x208   : > { %v1512_v36 = vpop.eup %1511  ;;  %1313 = vst [vmem:[%s1951_s13 + $0x8] sm:$0xff] %v1267_v29   ;;  %1529 = vrcp.f32 %v849_v30  ;;  %v850_v15 = vadd.f32 1.0, %v1510_v32 }
 0x209   : > { %v1514_v19 = vpop.eup %1513  ;;  %1263 = vst [vmem:[%s1951_s13] sm:$0xff] %v1262_v33   ;;  %1531 = vrcp.f32 %v847_v35  ;;  %v848_v61 = vadd.f32 1.0, %v1512_v36 }
 0x20a   : > { %v1516_v22 = vpop.eup %1515  ;;  %1533 = vrcp.f32 %v850_v15  ;;  %v893_v39 = vmul.f32 %v1514_v19, %v1897_v26 }
 0x20b   : > { %v1518_v37 = vpop.eup %1517  ;;  %1535 = vrcp.f32 %v848_v61  ;;  %v891_v42 = vmul.f32 %v1516_v22, %v1900_v28 }
 0x20c   : > { %v1520_v38 = vpop.eup %1519  ;;  %v894_v40 = vmul.f32 %v1518_v37, %v1904_v31 }
 0x20d   : > { %v1522_v41 = vpop.eup %1521  ;;  %v892_v44 = vmul.f32 %v1520_v38, %v1908_v34 }
 0x20e   : > { %v1524_v45 = vpop.eup %1523  ;;  %v1277_v46 = vpack.c.bf16 %v894_v40, %v893_v39  ;;  %v853_v48 = vadd.f32 1.0, %v1522_v41 }
 0x20f   : > { %v1526_v49 = vpop.eup %1525  ;;  %v1272_v50 = vpack.c.bf16 %v892_v44, %v891_v42  ;;  %v851_v52 = vadd.f32 1.0, %v1524_v45 }
 0x210   : > { %v1528_v53 = vpop.eup %1527  ;;  %1315 = vst [vmem:[%s1951_s13 + $0x18] sm:$0xff] %v1277_v46   ;;  %1537 = vrcp.f32 %v853_v48  ;;  %v854_v55 = vadd.f32 1.0, %v1526_v49 }
 0x211   : > { %1314 = vst [vmem:[%s1951_s13 + $0x10] sm:$0xff] %v1272_v50   ;;  %1539 = vrcp.f32 %v851_v52  ;;  %v852_v26 = vadd.f32 1.0, %v1528_v53 }
 0x212   : > { %v1530_v31 = vpop.eup %1529  ;;  %1541 = vrcp.f32 %v854_v55 }
 0x213   : > { %v1532_v28 = vpop.eup %1531  ;;  %1543 = vrcp.f32 %v852_v26  ;;  %v897_v57 = vmul.f32 %v1530_v31, %v1913_v43 }
 0x214   : > { %v1534_v34 = vpop.eup %1533  ;;  %v895_v59 = vmul.f32 %v1532_v28, %v1916_v47 }
 0x215   : > { %v1536_v56 = vpop.eup %1535  ;;  %v898_v58 = vmul.f32 %v1534_v34, %v1920_v51 }
 0x216   : > { %v896_v60 = vmul.f32 %v1536_v56, %v1924_v54 }
 0x217   : > { %v1287_v62 = vpack.c.bf16 %v898_v58, %v897_v57 }
 0x218   : > { %v1282_v63 = vpack.c.bf16 %v896_v60, %v895_v59 }
 0x219   : > { %1317 = vst [vmem:[%s1951_s13 + $0x28] sm:$0xff] %v1287_v62  }
 0x21a   : > { %v1538_v1 = vpop.eup %1537  ;;  %1316 = vst [vmem:[%s1951_s13 + $0x20] sm:$0xff] %v1282_v63  }
 0x21b   : > { %v1540_v2 = vpop.eup %1539  ;;  %v901_v51 = vmul.f32 %v1538_v1, %v1929_v0 }
 0x21c   : > { %v1542_v3 = vpop.eup %1541  ;;  %v899_v54 = vmul.f32 %v1540_v2, %v1933_v4 }
 0x21d   : > { %v1544_v43 = vpop.eup %1543  ;;  %v902_v47 = vmul.f32 %v1542_v3, %v1937_v8 }
 0x21e   : > { %v900_v5 = vmul.f32 %v1544_v43, %v1941_v12 }
 0x21f   : > { %v1297_v6 = vpack.c.bf16 %v902_v47, %v901_v51 }
 0x220   : > { %v1292_v7 = vpack.c.bf16 %v900_v5, %v899_v54 }
 0x221   : > { %1319 = vst [vmem:[%s1951_s13 + $0x38] sm:$0xff] %v1297_v6  }
 0x222   : > { %1318 = vst [vmem:[%s1951_s13 + $0x30] sm:$0xff] %v1292_v7  }
 0x223   : > { %1558 = shalt.err (!%p1555_p7)
}
 0x224   : > { %s1559_s21 = scalar_lea.hbm %s1975_s22, 1024  ;;  %s1563_s16 = scalar_lea.hbm %s2044_s7, 4096 }
 0x225   : > { %p1560_p9 = scmp.ne.s32.totalorder %s1975_s22, %s1559_s21  ;;  %p1564_p12 = scmp.lt.u32.totalorder %s1975_s22, %s2044_s7 }
 0x226   : > { %p1565_p13 = scmp.lt.u32.totalorder %s1563_s16, %s1559_s21  ;;  %p1567_p1 = scmp.lt.u32.totalorder %s1559_s21, %s1975_s22 }
 0x227   : > { %p1561_p10 = pnand %p1560_p9, %p1735_p3 }
 0x228   : > { %p1566_p0 = por %p1565_p13, %p1564_p12 }
 0x229   : > { %p1562_p11 = pneg %p1561_p10 }
 0x22a   : > { %p1568_p2 = por %p1567_p1, %p1566_p0 }
 0x22c   : > { %p1569_p4 = pnand %p1568_p2, %p1562_p11 }
 0x22e   : > { %1572 = shalt.err (!%p1569_p4)
}
 0x22f   : > { %s1642_s17 = smov 64   ;;  %s1643_s11 = smov 4  }
 0x230   : > { %1398 = dma.vmem_to_hbm [thread:$0]  (%p1735_p3), %s1979_s28, 1024, %s1975_s22, %s1985_s12, %s1642_s17, %s1642_s17, %s1643_s11  }
 0x231 PF: > { %p1404_p5 = scmp.ge.s32.totalorder %s1639_s8, 2  ;;  %s1014_s18 = sand.u32 1, %s1611_s24  }
 0x232   : > { %s1015_s20 = scalar_lea.sflag [#allocation3], %s1014_s18 }
 0x233   : > { %p1401_p6 = pnand %p1404_p5, %p1744_p8 }
 0x235   : > { %1606 = dma.done.wait (!%p1401_p6), %s1015_s20, 1024  }
 0x236   : > { %1608 = vsyncadd (!%p1401_p6), %s1015_s20, 4294966272  ;;  %s20_s8 = sadd.s32 1, %s1639_s8   ;;  %s2053_s28 = sld [smem:[#allocation5_spill]] }
 0x237   : > { %p17_p7 = scmp.ge.s32.totalorder %s20_s8, 6   ;;  %s2054_s14 = sld [smem:[#allocation6_spill]] }
 0x238   : > { %s2055_s30 = sld [smem:[#allocation7_spill]]  ;;  %s2056_s24 = smov %s1615_s25 }
 0x239   : > { %s2057_s25 = smov %s1619_s26  ;;  %s2058_s26 = smov %s1753_s19 }
 0x23a   : > { %s2059_s27 = smov %s1631_s29  ;;  %19 = sbr.rel (!%p17_p7) target bundleno = 5 (0x5), region = 89 }
 0x23d   : > { %s2060_s29 = smov %s2054_s14 }
 0x241   :  { %1020 = vsyncpa [#allocation3], 1 }
 0x242   :  { %1022 = vsyncpa [#allocation3 + $0x1], 1 }

</bundles_post_ra>
